<compile_context>
chip_gen: v7x
topology: tpu7x:2x2x1
jax: 0.10.0
libtpu: 0.0.40
codegen_flags: <defaults>
</compile_context>

<pallas_src>
import jax
import jax.numpy as jnp
from jax import lax
from jax.experimental import pallas as pl
from jax.experimental.pallas import tpu as pltpu

EPS = 1e-5


def _reflect_pad_1(x, H, W):
    # x: (H, W, C) value -> (H+2, W+2, C), 1-pixel reflection pad (PyTorch style).
    top = x[1:2, :, :]
    bot = x[H - 2:H - 1, :, :]
    xr = jnp.concatenate([top, x, bot], axis=0)          # (H+2, W, C)
    left = xr[:, 1:2, :]
    right = xr[:, W - 2:W - 1, :]
    return jnp.concatenate([left, xr, right], axis=1)    # (H+2, W+2, C)


def _conv3x3(xp, w, H, W, C):
    # xp: (H+2, W+2, C) reflect-padded input, w: (9*C, C) tap-major weights.
    if C >= 64:
        # Production-size channels: 9 accumulating MXU matmuls (K = C each).
        # Avoids the (H*W, 9C) im2col buffer and the lane-axis concatenate.
        acc = None
        for t, (dy, dx) in enumerate([(dy, dx) for dy in range(3) for dx in range(3)]):
            xs = xp[dy:dy + H, dx:dx + W, :].reshape(H * W, C)
            part = jnp.dot(xs, w[t * C:(t + 1) * C, :],
                           preferred_element_type=jnp.float32)
            acc = part if acc is None else acc + part
        return acc                                        # (H*W, C)
    # Small channels: im2col once, a single MXU matmul with K = 9*C.
    cols = [xp[dy:dy + H, dx:dx + W, :].reshape(H * W, C)
            for dy in range(3) for dx in range(3)]
    patches = jnp.concatenate(cols, axis=1)               # (H*W, 9*C)
    return jnp.dot(patches, w, preferred_element_type=jnp.float32)  # (H*W, C)


def _conv3x3_instance_norm(x, w, H, W, C):
    # x: (H, W, C) f32 value, w: (9*C, C).
    # Reflect-pad in VMEM, conv on the MXU, one-pass InstanceNorm2d
    # (affine=False, biased variance).  Conv bias is omitted on purpose:
    # IN(conv(x) + b) == IN(conv(x)) since IN removes the per-channel mean.
    xp = _reflect_pad_1(x, H, W)                          # (H+2, W+2, C)
    acc = _conv3x3(xp, w, H, W, C)                        # (H*W, C) f32
    inv_n = 1.0 / float(H * W)
    mean = jnp.sum(acc, axis=0, keepdims=True) * inv_n
    var = jnp.sum(acc * acc, axis=0, keepdims=True) * inv_n - mean * mean
    var = jnp.maximum(var, 0.0)
    return (acc - mean) * lax.rsqrt(var + EPS)            # (H*W, C)


def _resnet_block_kernel(x_ref, w1_ref, w2_ref, o_ref):
    # x_ref: (1, H, W, C) one batch element (NHWC), also the residual branch.
    # w*_ref: (9*C, C) tap-major conv weights (row = (dy*3+dx)*C + ci, col = co)
    # o_ref: (1, H, W, C)  out = x + IN(conv2(pad(relu(IN(conv1(pad(x)))))))
    _, H, W, C = x_ref.shape
    x = x_ref[0]                                           # (H, W, C) f32

    h = _conv3x3_instance_norm(x, w1_ref[...], H, W, C)
    h = jnp.maximum(h, 0.0).reshape(H, W, C)               # ReLU

    y = _conv3x3_instance_norm(h, w2_ref[...], H, W, C)

    out = x.reshape(H * W, C) + y                          # residual add
    o_ref[...] = out.reshape(1, H, W, C).astype(o_ref.dtype)


def resnet_block_pallas(x_nchw, w1, b1, w2, b2):
    """x_nchw: (N, C, H, W) float32.  w*: (Cout, Cin, 3, 3) PyTorch layout.

    b1/b2 are accepted for API parity with nn.Conv2d(..., bias=True) but are
    mathematically cancelled by the InstanceNorm that follows each conv, so
    they are not passed to the kernel.
    """
    del b1, b2  # exactly cancelled by InstanceNorm's mean subtraction
    x = jnp.transpose(x_nchw, (0, 2, 3, 1))                # -> NHWC
    N, H, W, C = x.shape

    # (Cout, Cin, 3, 3) -> (3, 3, Cin, Cout) -> (9*Cin, Cout)
    w1_m = jnp.transpose(w1, (2, 3, 1, 0)).reshape(9 * C, C)
    w2_m = jnp.transpose(w2, (2, 3, 1, 0)).reshape(9 * C, C)

    out = pl.pallas_call(
        _resnet_block_kernel,
        out_shape=jax.ShapeDtypeStruct((N, H, W, C), x.dtype),
        grid_spec=pltpu.PrefetchScalarGridSpec(
            num_scalar_prefetch=0,
            grid=(N,),
            in_specs=[
                pl.BlockSpec((1, H, W, C), lambda n: (n, 0, 0, 0)),
                pl.BlockSpec((9 * C, C), lambda n: (0, 0)),   # resident across grid
                pl.BlockSpec((9 * C, C), lambda n: (0, 0)),
            ],
            out_specs=pl.BlockSpec((1, H, W, C), lambda n: (n, 0, 0, 0)),
        ),
        compiler_params=pltpu.CompilerParams(
            dimension_semantics=("parallel",),        # batch elems independent
            vmem_limit_bytes=48 * 1024 * 1024,        # explicit, v7x-safe
        ),
    )(x, w1_m, w2_m)

    return jnp.transpose(out, (0, 3, 1, 2))                # back to NCHW


def _reference(x_nchw, w1, b1, w2, b2):
    """Pure-JAX reference matching PyTorch semantics (NCHW), bias included."""
    def conv(x, w, b):
        xp = jnp.pad(x, ((0, 0), (0, 0), (1, 1), (1, 1)), mode="reflect")
        y = lax.conv_general_dilated(
            xp, w, window_strides=(1, 1), padding="VALID",
            dimension_numbers=("NCHW", "OIHW", "NCHW"))
        return y + b[None, :, None, None]

    def inorm(x):
        m = jnp.mean(x, axis=(2, 3), keepdims=True)
        v = jnp.mean((x - m) ** 2, axis=(2, 3), keepdims=True)
        return (x - m) / jnp.sqrt(v + EPS)

    h = jnp.maximum(inorm(conv(x_nchw, w1, b1)), 0.0)
    return x_nchw + inorm(conv(h, w2, b2))


if __name__ == "__main__":
    key = jax.random.PRNGKey(0)
    N, C, H, W = 2, 4, 16, 16
    k_x, k_w1, k_b1, k_w2, k_b2 = jax.random.split(key, 5)

    x = jax.random.normal(k_x, (N, C, H, W), dtype=jnp.float32)
    # Deterministic synthetic parameters (Conv2d(dim, dim, 3) shapes).
    fan_in = C * 3 * 3
    w1 = jax.random.normal(k_w1, (C, C, 3, 3), dtype=jnp.float32) / jnp.sqrt(fan_in)
    b1 = jax.random.normal(k_b1, (C,), dtype=jnp.float32) * 0.1
    w2 = jax.random.normal(k_w2, (C, C, 3, 3), dtype=jnp.float32) / jnp.sqrt(fan_in)
    b2 = jax.random.normal(k_b2, (C,), dtype=jnp.float32) * 0.1

    out = resnet_block_pallas(x, w1, b1, w2, b2)
    out = jax.block_until_ready(out)

    ref = _reference(x, w1, b1, w2, b2)
    assert out.shape == (N, C, H, W)
    assert jnp.allclose(out, ref, atol=1e-3, rtol=1e-3), "mismatch vs reference"

    print("KERNEL_OK")
</pallas_src>

<mosaic_0001>
module attributes {stable_mosaic.version = 11 : i64} {
  func.func @_resnet_block_kernel(%arg0: i32, %arg1: memref<1x16x16x4xf32, #tpu.memory_space<vmem>>, %arg2: memref<36x4xf32, #tpu.memory_space<vmem>>, %arg3: memref<36x4xf32, #tpu.memory_space<vmem>>, %arg4: memref<1x16x16x4xf32, #tpu.memory_space<vmem>>) attributes {dimension_semantics = [#tpu.dimension_semantics<parallel>], iteration_bounds = array<i64: 2>, scalar_prefetch = 0 : i64, scratch_operands = 0 : i64, tpu.core_type = #tpu.core_type<tc>, window_params = [{transform_indices = @transform_0, window_bounds = array<i64: 1, 16, 16, 4>}, {pipeline_mode = #tpu.pipeline_mode<synchronous>, transform_indices = @transform_1, window_bounds = array<i64: 36, 4>}, {pipeline_mode = #tpu.pipeline_mode<synchronous>, transform_indices = @transform_2, window_bounds = array<i64: 36, 4>}, {transform_indices = @transform_3, window_bounds = array<i64: 1, 16, 16, 4>}]} {
    %c0 = arith.constant 0 : index
    %c0_0 = arith.constant 0 : index
    %c0_1 = arith.constant 0 : index
    %c0_2 = arith.constant 0 : index
    %0 = vector.load %arg1[%c0, %c0_0, %c0_1, %c0_2] : memref<1x16x16x4xf32, #tpu.memory_space<vmem>>, vector<1x16x16x4xf32>
    %1 = vector.shape_cast %0 : vector<1x16x16x4xf32> to vector<16x16x4xf32>
    %c0_3 = arith.constant 0 : index
    %c0_4 = arith.constant 0 : index
    %2 = vector.load %arg2[%c0_3, %c0_4] : memref<36x4xf32, #tpu.memory_space<vmem>>, vector<36x4xf32>
    %3 = vector.extract_strided_slice %1 {offsets = [1, 0, 0], sizes = [1, 16, 4], strides = [1, 1, 1]} : vector<16x16x4xf32> to vector<1x16x4xf32>
    %4 = vector.extract_strided_slice %1 {offsets = [14, 0, 0], sizes = [1, 16, 4], strides = [1, 1, 1]} : vector<16x16x4xf32> to vector<1x16x4xf32>
    %5 = tpu.concatenate %3, %1, %4 in 0 : vector<1x16x4xf32>, vector<16x16x4xf32>, vector<1x16x4xf32> -> vector<18x16x4xf32>
    %6 = vector.extract_strided_slice %5 {offsets = [0, 1, 0], sizes = [18, 1, 4], strides = [1, 1, 1]} : vector<18x16x4xf32> to vector<18x1x4xf32>
    %7 = vector.extract_strided_slice %5 {offsets = [0, 14, 0], sizes = [18, 1, 4], strides = [1, 1, 1]} : vector<18x16x4xf32> to vector<18x1x4xf32>
    %8 = tpu.concatenate %6, %5, %7 in 1 : vector<18x1x4xf32>, vector<18x16x4xf32>, vector<18x1x4xf32> -> vector<18x18x4xf32>
    %9 = vector.extract_strided_slice %8 {offsets = [0, 0, 0], sizes = [16, 16, 4], strides = [1, 1, 1]} : vector<18x18x4xf32> to vector<16x16x4xf32>
    %10 = vector.shape_cast %9 : vector<16x16x4xf32> to vector<256x4xf32>
    %11 = vector.extract_strided_slice %8 {offsets = [0, 1, 0], sizes = [16, 16, 4], strides = [1, 1, 1]} : vector<18x18x4xf32> to vector<16x16x4xf32>
    %12 = vector.shape_cast %11 : vector<16x16x4xf32> to vector<256x4xf32>
    %13 = vector.extract_strided_slice %8 {offsets = [0, 2, 0], sizes = [16, 16, 4], strides = [1, 1, 1]} : vector<18x18x4xf32> to vector<16x16x4xf32>
    %14 = vector.shape_cast %13 : vector<16x16x4xf32> to vector<256x4xf32>
    %15 = vector.extract_strided_slice %8 {offsets = [1, 0, 0], sizes = [16, 16, 4], strides = [1, 1, 1]} : vector<18x18x4xf32> to vector<16x16x4xf32>
    %16 = vector.shape_cast %15 : vector<16x16x4xf32> to vector<256x4xf32>
    %17 = vector.extract_strided_slice %8 {offsets = [1, 1, 0], sizes = [16, 16, 4], strides = [1, 1, 1]} : vector<18x18x4xf32> to vector<16x16x4xf32>
    %18 = vector.shape_cast %17 : vector<16x16x4xf32> to vector<256x4xf32>
    %19 = vector.extract_strided_slice %8 {offsets = [1, 2, 0], sizes = [16, 16, 4], strides = [1, 1, 1]} : vector<18x18x4xf32> to vector<16x16x4xf32>
    %20 = vector.shape_cast %19 : vector<16x16x4xf32> to vector<256x4xf32>
    %21 = vector.extract_strided_slice %8 {offsets = [2, 0, 0], sizes = [16, 16, 4], strides = [1, 1, 1]} : vector<18x18x4xf32> to vector<16x16x4xf32>
    %22 = vector.shape_cast %21 : vector<16x16x4xf32> to vector<256x4xf32>
    %23 = vector.extract_strided_slice %8 {offsets = [2, 1, 0], sizes = [16, 16, 4], strides = [1, 1, 1]} : vector<18x18x4xf32> to vector<16x16x4xf32>
    %24 = vector.shape_cast %23 : vector<16x16x4xf32> to vector<256x4xf32>
    %25 = vector.extract_strided_slice %8 {offsets = [2, 2, 0], sizes = [16, 16, 4], strides = [1, 1, 1]} : vector<18x18x4xf32> to vector<16x16x4xf32>
    %26 = vector.shape_cast %25 : vector<16x16x4xf32> to vector<256x4xf32>
    %27 = tpu.concatenate %10, %12, %14, %16, %18, %20, %22, %24, %26 in 1 : vector<256x4xf32>, vector<256x4xf32>, vector<256x4xf32>, vector<256x4xf32>, vector<256x4xf32>, vector<256x4xf32>, vector<256x4xf32>, vector<256x4xf32>, vector<256x4xf32> -> vector<256x36xf32>
    %cst = arith.constant dense<0.000000e+00> : vector<256x4xf32>
    %28 = tpu.matmul %27, %2, %cst {dimension_numbers = #tpu.dot_dimension_numbers<[1], [0], [0], [1], [0, 0, 1, 1], [], []>} : vector<256x36xf32>, vector<36x4xf32>, vector<256x4xf32> -> vector<256x4xf32>
    %cst_5 = arith.constant dense<0.000000e+00> : vector<4xf32>
    %29 = vector.multi_reduction <add>, %28, %cst_5 [0] : vector<256x4xf32> to vector<4xf32>
    %30 = vector.shape_cast %29 : vector<4xf32> to vector<1x4xf32>
    %cst_6 = arith.constant 3.906250e-03 : f32
    %31 = vector.broadcast %cst_6 : f32 to vector<1x4xf32>
    %32 = arith.mulf %30, %31 : vector<1x4xf32>
    %33 = arith.mulf %28, %28 : vector<256x4xf32>
    %cst_7 = arith.constant dense<0.000000e+00> : vector<4xf32>
    %34 = vector.multi_reduction <add>, %33, %cst_7 [0] : vector<256x4xf32> to vector<4xf32>
    %35 = vector.shape_cast %34 : vector<4xf32> to vector<1x4xf32>
    %cst_8 = arith.constant 3.906250e-03 : f32
    %36 = vector.broadcast %cst_8 : f32 to vector<1x4xf32>
    %37 = arith.mulf %35, %36 : vector<1x4xf32>
    %38 = arith.mulf %32, %32 : vector<1x4xf32>
    %39 = arith.subf %37, %38 : vector<1x4xf32>
    %cst_9 = arith.constant 0.000000e+00 : f32
    %40 = vector.broadcast %cst_9 : f32 to vector<1x4xf32>
    %41 = arith.maximumf %39, %40 : vector<1x4xf32>
    %42 = vector.broadcast %32 : vector<1x4xf32> to vector<256x4xf32>
    %43 = arith.subf %28, %42 : vector<256x4xf32>
    %cst_10 = arith.constant 9.99999974E-6 : f32
    %44 = vector.broadcast %cst_10 : f32 to vector<1x4xf32>
    %45 = arith.addf %41, %44 : vector<1x4xf32>
    %46 = math.rsqrt %45 : vector<1x4xf32>
    %47 = vector.broadcast %46 : vector<1x4xf32> to vector<256x4xf32>
    %48 = arith.mulf %43, %47 : vector<256x4xf32>
    %cst_11 = arith.constant 0.000000e+00 : f32
    %49 = vector.broadcast %cst_11 : f32 to vector<256x4xf32>
    %50 = arith.maximumf %48, %49 : vector<256x4xf32>
    %51 = vector.shape_cast %50 : vector<256x4xf32> to vector<16x16x4xf32>
    %c0_12 = arith.constant 0 : index
    %c0_13 = arith.constant 0 : index
    %52 = vector.load %arg3[%c0_12, %c0_13] : memref<36x4xf32, #tpu.memory_space<vmem>>, vector<36x4xf32>
    %53 = vector.extract_strided_slice %51 {offsets = [1, 0, 0], sizes = [1, 16, 4], strides = [1, 1, 1]} : vector<16x16x4xf32> to vector<1x16x4xf32>
    %54 = vector.extract_strided_slice %51 {offsets = [14, 0, 0], sizes = [1, 16, 4], strides = [1, 1, 1]} : vector<16x16x4xf32> to vector<1x16x4xf32>
    %55 = tpu.concatenate %53, %51, %54 in 0 : vector<1x16x4xf32>, vector<16x16x4xf32>, vector<1x16x4xf32> -> vector<18x16x4xf32>
    %56 = vector.extract_strided_slice %55 {offsets = [0, 1, 0], sizes = [18, 1, 4], strides = [1, 1, 1]} : vector<18x16x4xf32> to vector<18x1x4xf32>
    %57 = vector.extract_strided_slice %55 {offsets = [0, 14, 0], sizes = [18, 1, 4], strides = [1, 1, 1]} : vector<18x16x4xf32> to vector<18x1x4xf32>
    %58 = tpu.concatenate %56, %55, %57 in 1 : vector<18x1x4xf32>, vector<18x16x4xf32>, vector<18x1x4xf32> -> vector<18x18x4xf32>
    %59 = vector.extract_strided_slice %58 {offsets = [0, 0, 0], sizes = [16, 16, 4], strides = [1, 1, 1]} : vector<18x18x4xf32> to vector<16x16x4xf32>
    %60 = vector.shape_cast %59 : vector<16x16x4xf32> to vector<256x4xf32>
    %61 = vector.extract_strided_slice %58 {offsets = [0, 1, 0], sizes = [16, 16, 4], strides = [1, 1, 1]} : vector<18x18x4xf32> to vector<16x16x4xf32>
    %62 = vector.shape_cast %61 : vector<16x16x4xf32> to vector<256x4xf32>
    %63 = vector.extract_strided_slice %58 {offsets = [0, 2, 0], sizes = [16, 16, 4], strides = [1, 1, 1]} : vector<18x18x4xf32> to vector<16x16x4xf32>
    %64 = vector.shape_cast %63 : vector<16x16x4xf32> to vector<256x4xf32>
    %65 = vector.extract_strided_slice %58 {offsets = [1, 0, 0], sizes = [16, 16, 4], strides = [1, 1, 1]} : vector<18x18x4xf32> to vector<16x16x4xf32>
    %66 = vector.shape_cast %65 : vector<16x16x4xf32> to vector<256x4xf32>
    %67 = vector.extract_strided_slice %58 {offsets = [1, 1, 0], sizes = [16, 16, 4], strides = [1, 1, 1]} : vector<18x18x4xf32> to vector<16x16x4xf32>
    %68 = vector.shape_cast %67 : vector<16x16x4xf32> to vector<256x4xf32>
    %69 = vector.extract_strided_slice %58 {offsets = [1, 2, 0], sizes = [16, 16, 4], strides = [1, 1, 1]} : vector<18x18x4xf32> to vector<16x16x4xf32>
    %70 = vector.shape_cast %69 : vector<16x16x4xf32> to vector<256x4xf32>
    %71 = vector.extract_strided_slice %58 {offsets = [2, 0, 0], sizes = [16, 16, 4], strides = [1, 1, 1]} : vector<18x18x4xf32> to vector<16x16x4xf32>
    %72 = vector.shape_cast %71 : vector<16x16x4xf32> to vector<256x4xf32>
    %73 = vector.extract_strided_slice %58 {offsets = [2, 1, 0], sizes = [16, 16, 4], strides = [1, 1, 1]} : vector<18x18x4xf32> to vector<16x16x4xf32>
    %74 = vector.shape_cast %73 : vector<16x16x4xf32> to vector<256x4xf32>
    %75 = vector.extract_strided_slice %58 {offsets = [2, 2, 0], sizes = [16, 16, 4], strides = [1, 1, 1]} : vector<18x18x4xf32> to vector<16x16x4xf32>
    %76 = vector.shape_cast %75 : vector<16x16x4xf32> to vector<256x4xf32>
    %77 = tpu.concatenate %60, %62, %64, %66, %68, %70, %72, %74, %76 in 1 : vector<256x4xf32>, vector<256x4xf32>, vector<256x4xf32>, vector<256x4xf32>, vector<256x4xf32>, vector<256x4xf32>, vector<256x4xf32>, vector<256x4xf32>, vector<256x4xf32> -> vector<256x36xf32>
    %cst_14 = arith.constant dense<0.000000e+00> : vector<256x4xf32>
    %78 = tpu.matmul %77, %52, %cst_14 {dimension_numbers = #tpu.dot_dimension_numbers<[1], [0], [0], [1], [0, 0, 1, 1], [], []>} : vector<256x36xf32>, vector<36x4xf32>, vector<256x4xf32> -> vector<256x4xf32>
    %cst_15 = arith.constant dense<0.000000e+00> : vector<4xf32>
    %79 = vector.multi_reduction <add>, %78, %cst_15 [0] : vector<256x4xf32> to vector<4xf32>
    %80 = vector.shape_cast %79 : vector<4xf32> to vector<1x4xf32>
    %cst_16 = arith.constant 3.906250e-03 : f32
    %81 = vector.broadcast %cst_16 : f32 to vector<1x4xf32>
    %82 = arith.mulf %80, %81 : vector<1x4xf32>
    %83 = arith.mulf %78, %78 : vector<256x4xf32>
    %cst_17 = arith.constant dense<0.000000e+00> : vector<4xf32>
    %84 = vector.multi_reduction <add>, %83, %cst_17 [0] : vector<256x4xf32> to vector<4xf32>
    %85 = vector.shape_cast %84 : vector<4xf32> to vector<1x4xf32>
    %cst_18 = arith.constant 3.906250e-03 : f32
    %86 = vector.broadcast %cst_18 : f32 to vector<1x4xf32>
    %87 = arith.mulf %85, %86 : vector<1x4xf32>
    %88 = arith.mulf %82, %82 : vector<1x4xf32>
    %89 = arith.subf %87, %88 : vector<1x4xf32>
    %cst_19 = arith.constant 0.000000e+00 : f32
    %90 = vector.broadcast %cst_19 : f32 to vector<1x4xf32>
    %91 = arith.maximumf %89, %90 : vector<1x4xf32>
    %92 = vector.broadcast %82 : vector<1x4xf32> to vector<256x4xf32>
    %93 = arith.subf %78, %92 : vector<256x4xf32>
    %cst_20 = arith.constant 9.99999974E-6 : f32
    %94 = vector.broadcast %cst_20 : f32 to vector<1x4xf32>
    %95 = arith.addf %91, %94 : vector<1x4xf32>
    %96 = math.rsqrt %95 : vector<1x4xf32>
    %97 = vector.broadcast %96 : vector<1x4xf32> to vector<256x4xf32>
    %98 = arith.mulf %93, %97 : vector<256x4xf32>
    %99 = vector.shape_cast %1 : vector<16x16x4xf32> to vector<256x4xf32>
    %100 = arith.addf %99, %98 : vector<256x4xf32>
    %101 = vector.shape_cast %100 : vector<256x4xf32> to vector<1x16x16x4xf32>
    %c0_21 = arith.constant 0 : index
    %c0_22 = arith.constant 0 : index
    %c0_23 = arith.constant 0 : index
    %c0_24 = arith.constant 0 : index
    %102 = vector.load %arg4[%c0_21, %c0_22, %c0_23, %c0_24] : memref<1x16x16x4xf32, #tpu.memory_space<vmem>>, vector<1x16x16x4xf32>
    tpu.vector_store %arg4[%c0_21, %c0_22, %c0_23, %c0_24], %101 {strides = array<i32>} : memref<1x16x16x4xf32, #tpu.memory_space<vmem>>, vector<1x16x16x4xf32>,
    return
  }
  func.func @transform_0(%arg0: i32) -> (i32, i32, i32, i32) {
    %c0_i32 = arith.constant 0 : i32
    %c0_i32_0 = arith.constant 0 : i32
    %c0_i32_1 = arith.constant 0 : i32
    %c0_i32_2 = arith.constant 0 : i32
    return %arg0, %c0_i32, %c0_i32_0, %c0_i32_1 : i32, i32, i32, i32
  }
  func.func @transform_1(%arg0: i32) -> (i32, i32) {
    %c0_i32 = arith.constant 0 : i32
    %c0_i32_0 = arith.constant 0 : i32
    %c0_i32_1 = arith.constant 0 : i32
    return %c0_i32, %c0_i32_0 : i32, i32
  }
  func.func @transform_2(%arg0: i32) -> (i32, i32) {
    %c0_i32 = arith.constant 0 : i32
    %c0_i32_0 = arith.constant 0 : i32
    %c0_i32_1 = arith.constant 0 : i32
    return %c0_i32, %c0_i32_0 : i32, i32
  }
  func.func @transform_3(%arg0: i32) -> (i32, i32, i32, i32) {
    %c0_i32 = arith.constant 0 : i32
    %c0_i32_0 = arith.constant 0 : i32
    %c0_i32_1 = arith.constant 0 : i32
    %c0_i32_2 = arith.constant 0 : i32
    return %arg0, %c0_i32, %c0_i32_0, %c0_i32_1 : i32, i32, i32, i32
  }
}

</mosaic_0001>

<bundles_post_ra>
// kernel: tpu_custom_call.1
= control target key start
LH: loop header
LB: loop body
LE: loop exit
PB: predicated region body
PF: predicated region fallthrough
CT: control target
= control target key end

     0   :  { %s4690_s12 = smov 0   ;;  %s8792_s0 = inlined_call_operand.vmem [shape: f32[2,16,16,4], index: 0, kind: input, shape index: {}]   ;;  %s8793_s1 = inlined_call_operand.vmem [shape: f32[36,4], index: 1, kind: input, shape index: {}]   ;;  %s8794_s2 = inlined_call_operand.vmem [shape: f32[36,4], index: 2, kind: input, shape index: {}]   ;;  %s8795_s3 = inlined_call_operand.vmem [shape: f32[2,16,16,4], index: 3, kind: output, shape index: {}]  }
   0x1 LB: > { %s4317_s13 = sadd.s32 4294967295, %s4660_s12   ;;  %p4321_p0 = scmp.ge.s32.totalorder %s4660_s12, 1  ;;  %s4660_s12 = sphi %s4690_s12, %s13_s12  }
   0x2   : > { %p137_p1 = scmp.lt.s32.totalorder %s4660_s12, 3 }
   0x4   : > { %p138_p2 = pnand %p4321_p0, %p137_p1 }
   0x6   : > { %141 = sbr.rel (%p138_p2) target bundleno = 1803 (0x70b), region = 32 }
   0xd   : > { %p161_p3 = scmp.lt.s32.totalorder %s4317_s13, 1  ;;  %vm272_vm0 = vcmask 1040384   ;;  %vm462_vm1 = vcmask 1046528   ;;  %s4662_s18 = smov 4   ;;  %vm538_vm2 = vcmask 1045504   ;;  %vm1721_vm3 = vcmask 1043456  }
   0xe   : > { %s4663_s19 = smov 8   ;;  %s4664_s20 = smov 12   ;;  %vm1364_vm4 = vcmask 31744   ;;  %vm1395_vm5 = vcmask 64512   ;;  %vm1426_vm6 = vcmask 97280   ;;  %vm1459_vm7 = vcmask 130048  }
   0xf   : > { %s9538_s13 = smov (!%p161_p3, %s4317_s13), 1  ;;  %s4665_s21 = smov 16   ;;  %vm1492_vm8 = vcmask 162816   ;;  %vm1525_vm9 = vcmask 195584   ;;  %vm1558_vm10 = vcmask 228352   ;;  %vm1591_vm11 = vcmask 261120  }
  0x10   : > { %s4394_s14 = sshll.u32 %s9538_s13, 8  ;;  %s4666_s30 = smov 20   ;;  %vm1624_vm12 = vcmask 293888  }
  0x11   : > { %s4706_s17 = scalar_lea.vmem %s8792_s0, %s4394_s14  ;;  %s4667_s6 = smov 24  }
  0x12   : > { %v173_v0 = vld [vmem:[%s4706_s17 + $0x10] sm:$0xff]  ;;  %v174_v1 = vld [vmem:[%s4706_s17 + $0x18] sm:$0xff]  ;;  %v171_v2 = vld [vmem:[%s4706_s17] sm:$0xff]  ;;  %s4668_s7 = smov 28   ;;  %s4669_s8 = smov 32  }
  0x13   : > { %v224_v3 = vrot.slane %v173_v0, 1  ;;  %v273_v4 = vrot.slane %v173_v0, 7  ;;  %v274_v5 = vrot.slane %v174_v1, 7  ;;  %v172_v6 = vld [vmem:[%s4706_s17 + $0x8] sm:$0xff]  ;;  %v225_v7 = vrot.slane %v171_v2, 1  ;;  %v175_v8 = vld [vmem:[%s4706_s17 + $0x20] sm:$0xff] }
  0x14   : > { %v276_v9 = vrot.slane %v171_v2, 7  ;;  %v277_v10 = vrot.slane %v172_v6, 7  ;;  %v368_v11 = vrot.slane %v174_v1, 5  ;;  %v369_v12 = vrot.slane %v172_v6, 5  ;;  %v176_v15 = vld [vmem:[%s4706_s17 + $0x28] sm:$0xff]  ;;  %v177_v22 = vld [vmem:[%s4706_s17 + $0x30] sm:$0xff] }
  0x15   : > { %v4714_v13 = vsel %vm272_vm0, %v273_v4, %v274_v5  ;;  %v4717_v14 = vsel %vm272_vm0, %v224_v3, %v273_v4  ;;  %v226_v16 = vrot.slane %v175_v8, 1  ;;  %v279_v17 = vrot.slane %v175_v8, 7  ;;  %v178_v31 = vld [vmem:[%s4706_s17 + $0x38] sm:$0xff]  ;;  %v179_v36 = vld [vmem:[%s4706_s17 + $0x40] sm:$0xff]  ;;  %v180_v41 = vld [vmem:[%s4706_s17 + $0x48] sm:$0xff] }
  0x16   : > { %v463_v18 = vrot.slane %v4717_v14, 1  ;;  %v464_v19 = vrot.slane %v4714_v13, 1  ;;  %v4723_v20 = vsel %vm272_vm0, %v276_v9, %v277_v10  ;;  %v4726_v21 = vsel %vm272_vm0, %v225_v7, %v276_v9  ;;  %v181_v54 = vld [vmem:[%s4706_s17 + $0x50] sm:$0xff]  ;;  %v182_v59 = vld [vmem:[%s4706_s17 + $0x58] sm:$0xff]  ;;  %v183_v0 = vld [vmem:[%s4706_s17 + $0x60] sm:$0xff] }
  0x17   : > { %v468_v23 = vrot.slane %v4726_v21, 1  ;;  %v469_v24 = vrot.slane %v4723_v20, 1  ;;  %v4732_v25 = vsel %vm272_vm0, %v274_v5, %v368_v11  ;;  %v4735_v26 = vsel %vm272_vm0, %v277_v10, %v369_v12  ;;  %v184_v4 = vld [vmem:[%s4706_s17 + $0x68] sm:$0xff] }
  0x18   : > { %v4738_v27 = vsel %vm462_vm1, %v463_v18, %v464_v19  ;;  %v466_v28 = vrot.slane %v4732_v25, 1  ;;  %v471_v29 = vrot.slane %v4735_v26, 1  ;;  %v280_v30 = vrot.slane %v176_v15, 7 }
  0x19   : > { %626 = vrot.lane.b32.xlu0 %v4738_v27, %s4662_s18  ;;  %v4746_v32 = vsel %vm462_vm1, %v468_v23, %v469_v24  ;;  %v4749_v33 = vsel %vm272_vm0, %v226_v16, %v279_v17  ;;  %v370_v34 = vrot.slane %v176_v15, 5  ;;  %v227_v35 = vrot.slane %v177_v22, 1  ;;  %v186_v23 = vld [vmem:[%s4706_s17 + $0x78] sm:$0xff] }
  0x1a   : > { %630 = vrot.lane.b32.xlu1 %v4746_v32, %s4662_s18  ;;  %v4755_v37 = vsel %vm462_vm1, %v464_v19, %v466_v28  ;;  %v4758_v38 = vsel %vm462_vm1, %v469_v24, %v471_v29  ;;  %v4761_v39 = vsel %vm272_vm0, %v279_v17, %v280_v30  ;;  %v473_v40 = vrot.slane %v4749_v33, 1 }
  0x1b   : > { %v474_v42 = vrot.slane %v4761_v39, 1  ;;  %v4767_v43 = vsel %vm272_vm0, %v280_v30, %v370_v34  ;;  %v282_v44 = vrot.slane %v177_v22, 7  ;;  %v283_v45 = vrot.slane %v178_v31, 7  ;;  %v185_v22 = vld [vmem:[%s4706_s17 + $0x70] sm:$0xff]  ;;  %v187_v30 = vld [vmem:[%s4706_s17 + $0x80] sm:$0xff] }
  0x1c   : > { %v476_v46 = vrot.slane %v4767_v43, 1  ;;  %v371_v47 = vrot.slane %v178_v31, 5  ;;  %v228_v48 = vrot.slane %v179_v36, 1  ;;  %v285_v49 = vrot.slane %v179_v36, 7 }
  0x1d   : > { %628 = vrot.lane.b32.xlu0 %v4755_v37, %s4662_s18  ;;  %v4773_v50 = vsel %vm462_vm1, %v473_v40, %v474_v42  ;;  %v4776_v51 = vsel %vm272_vm0, %v282_v44, %v283_v45  ;;  %v4779_v52 = vsel %vm272_vm0, %v227_v35, %v282_v44  ;;  %v286_v53 = vrot.slane %v180_v41, 7  ;;  %v188_v40 = vld [vmem:[%s4706_s17 + $0x88] sm:$0xff] }
  0x1e   : > { %632 = vrot.lane.b32.xlu1 %v4758_v38, %s4662_s18  ;;  %v4785_v55 = vsel %vm462_vm1, %v474_v42, %v476_v46  ;;  %v478_v56 = vrot.slane %v4779_v52, 1  ;;  %v479_v57 = vrot.slane %v4776_v51, 1  ;;  %v4790_v58 = vsel %vm272_vm0, %v283_v45, %v371_v47 }
  0x1f   : > { %9025 = vst [vmem:[#allocation2_spill] sm:$0xff] %v4785_v55  ;;  %v481_v60 = vrot.slane %v4790_v58, 1  ;;  %v4795_v61 = vsel %vm272_vm0, %v285_v49, %v286_v53  ;;  %v4798_v62 = vsel %vm272_vm0, %v228_v48, %v285_v49  ;;  %v372_v63 = vrot.slane %v180_v41, 5 }
  0x20   : > { %v4802_v1 = vsel %vm462_vm1, %v478_v56, %v479_v57  ;;  %v483_v2 = vrot.slane %v4798_v62, 1  ;;  %v229_v3 = vrot.slane %v181_v54, 1  ;;  %v484_v5 = vrot.slane %v4795_v61, 1 }
  0x21   : > { %9026 = vst [vmem:[#allocation3_spill] sm:$0xff] %v4802_v1  ;;  %634 = vrot.lane.b32.xlu0 %v4773_v50, %s4662_s18  ;;  %v4810_v6 = vsel %vm272_vm0, %v286_v53, %v372_v63  ;;  %v288_v7 = vrot.slane %v181_v54, 7  ;;  %v289_v8 = vrot.slane %v182_v59, 7  ;;  %v4815_v9 = vsel %vm462_vm1, %v479_v57, %v481_v60  ;;  %v190_v60 = vld [vmem:[%s4706_s17 + $0x98] sm:$0xff] }
  0x22   : > { %636 = vrot.lane.b32.xlu1 %v4785_v55, %s4662_s18  ;;  %9027 = vst [vmem:[#allocation4_spill] sm:$0xff] %v4815_v9  ;;  %v486_v10 = vrot.slane %v4810_v6, 1  ;;  %v373_v11 = vrot.slane %v182_v59, 5  ;;  %v230_v12 = vrot.slane %v183_v0, 1  ;;  %v291_v17 = vrot.slane %v183_v0, 7  ;;  %v189_v59 = vld [vmem:[%s4706_s17 + $0x90] sm:$0xff] }
  0x23   : > { %v4819_v15 = vsel %vm272_vm0, %v288_v7, %v289_v8  ;;  %v4822_v16 = vsel %vm272_vm0, %v229_v3, %v288_v7  ;;  %v292_v18 = vrot.slane %v184_v4, 7  ;;  %v4832_v24 = vsel %vm462_vm1, %v483_v2, %v484_v5 }
  0x24   : > { %v4825_v19 = vsel %vm272_vm0, %v289_v8, %v373_v11  ;;  %9028 = vst [vmem:[#allocation5_spill] sm:$0xff] %v4832_v24  ;;  %v4835_v28 = vsel %vm462_vm1, %v484_v5, %v486_v10  ;;  %v374_v29 = vrot.slane %v184_v4, 5  ;;  %v488_v31 = vrot.slane %v4822_v16, 1 }
  0x25   : > { %638 = vrot.lane.b32.xlu0 %v4802_v1, %s4662_s18  ;;  %9029 = vst [vmem:[#allocation6_spill] sm:$0xff] %v4835_v28  ;;  %v489_v34 = vrot.slane %v4819_v15, 1  ;;  %v491_v35 = vrot.slane %v4825_v19, 1  ;;  %v4844_v36 = vsel %vm272_vm0, %v291_v17, %v292_v18  ;;  %v4848_v41 = vsel %vm272_vm0, %v230_v12, %v291_v17  ;;  %v191_v17 = vld [vmem:[%s4706_s17 + $0xa0] sm:$0xff] }
  0x26   : > { %640 = vrot.lane.b32.xlu1 %v4815_v9, %s4662_s18  ;;  %9030 = vst [vmem:[#allocation7_spill] sm:$0xff] %v4844_v36  ;;  %v231_v42 = vrot.slane %v185_v22, 1  ;;  %v294_v44 = vrot.slane %v185_v22, 7  ;;  %v295_v45 = vrot.slane %v186_v23, 7  ;;  %v4851_v46 = vsel %vm272_vm0, %v292_v18, %v374_v29  ;;  %v192_v29 = vld [vmem:[%s4706_s17 + $0xa8] sm:$0xff]  ;;  %v199_v9 = vld [vmem:[%s4706_s17 + $0xe0] sm:$0xff] }
  0x27   : > { %v375_v47 = vrot.slane %v186_v23, 5  ;;  %v232_v48 = vrot.slane %v187_v30, 1  ;;  %v297_v49 = vrot.slane %v187_v30, 7  ;;  %v298_v53 = vrot.slane %v188_v40, 7 }
  0x28   : > { %v4858_v54 = vsel %vm462_vm1, %v488_v31, %v489_v34  ;;  %v493_v56 = vrot.slane %v4848_v41, 1  ;;  %v494_v57 = vrot.slane %v4844_v36, 1  ;;  %v4865_v63 = vsel %vm462_vm1, %v489_v34, %v491_v35 }
  0x29   : > { %642 = vrot.lane.b32.xlu0 %v4832_v24, %s4662_s18  ;;  %9031 = vst [vmem:[#allocation8_spill] sm:$0xff] %v4858_v54  ;;  %9032 = vst [vmem:[#allocation9_spill] sm:$0xff] %v4865_v63  ;;  %v496_v0 = vrot.slane %v4851_v46, 1  ;;  %v4869_v2 = vsel %vm272_vm0, %v294_v44, %v295_v45  ;;  %v4872_v3 = vsel %vm272_vm0, %v231_v42, %v294_v44  ;;  %v376_v7 = vrot.slane %v188_v40, 5  ;;  %v198_v24 = vld [vmem:[%s4706_s17 + $0xd8] sm:$0xff] }
  0x2a   : > { %644 = vrot.lane.b32.xlu1 %v4835_v28, %s4662_s18  ;;  %9033 = vst [vmem:[#allocation10_spill] sm:$0xff] %v4869_v2  ;;  %9034 = vst [vmem:[#allocation11_spill] sm:$0xff] %v4872_v3  ;;  %v4875_v4 = vsel %vm272_vm0, %v295_v45, %v375_v47  ;;  %v4878_v5 = vsel %vm272_vm0, %v232_v48, %v297_v49  ;;  %v4883_v8 = vsel %vm272_vm0, %v297_v49, %v298_v53  ;;  %v197_v28 = vld [vmem:[%s4706_s17 + $0xd0] sm:$0xff] }
  0x2b   : > { %9035 = vst [vmem:[#allocation12_spill] sm:$0xff] %v4878_v5  ;;  %9036 = vst [vmem:[#allocation13_spill] sm:$0xff] %v4883_v8  ;;  %v233_v10 = vrot.slane %v189_v59, 1  ;;  %v300_v11 = vrot.slane %v189_v59, 7  ;;  %v301_v12 = vrot.slane %v190_v60, 7  ;;  %v4889_v18 = vsel %vm462_vm1, %v493_v56, %v494_v57 }
  0x2c   : > { %9037 = vst [vmem:[#allocation14_spill] sm:$0xff] %v4889_v18  ;;  %v498_v22 = vrot.slane %v4872_v3, 1  ;;  %v499_v23 = vrot.slane %v4869_v2, 1  ;;  %v4895_v30 = vsel %vm462_vm1, %v494_v57, %v496_v0  ;;  %v501_v31 = vrot.slane %v4875_v4, 1  ;;  %v194_v0 = vld [vmem:[%s4706_s17 + $0xb8] sm:$0xff] }
  0x2d   : > { %646 = vrot.lane.b32.xlu0 %v4858_v54, %s4662_s18  ;;  %9038 = vst [vmem:[#allocation15_spill] sm:$0xff] %v4895_v30  ;;  %v503_v34 = vrot.slane %v4878_v5, 1  ;;  %v504_v35 = vrot.slane %v4883_v8, 1  ;;  %v4901_v40 = vsel %vm272_vm0, %v298_v53, %v376_v7  ;;  %v377_v42 = vrot.slane %v190_v60, 5  ;;  %v193_v60 = vld [vmem:[%s4706_s17 + $0xb0] sm:$0xff] }
  0x2e   : > { %648 = vrot.lane.b32.xlu1 %v4865_v63, %s4662_s18  ;;  %v234_v44 = vrot.slane %v191_v17, 1  ;;  %v4906_v45 = vsel %vm272_vm0, %v300_v11, %v301_v12  ;;  %v4909_v47 = vsel %vm272_vm0, %v233_v10, %v300_v11  ;;  %v303_v48 = vrot.slane %v191_v17, 7  ;;  %v196_v63 = vld [vmem:[%s4706_s17 + $0xc8] sm:$0xff] }
  0x2f   : > { %v304_v49 = vrot.slane %v192_v29, 7  ;;  %v4914_v56 = vsel %vm462_vm1, %v498_v22, %v499_v23  ;;  %v378_v53 = vrot.slane %v192_v29, 5  ;;  %v4917_v57 = vsel %vm462_vm1, %v499_v23, %v501_v31 }
  0x30   : > { %9039 = vst [vmem:[#allocation16_spill] sm:$0xff] %v4914_v56  ;;  %9040 = vst [vmem:[#allocation17_spill] sm:$0xff] %v4917_v57  ;;  %v506_v59 = vrot.slane %v4901_v40, 1  ;;  %v508_v7 = vrot.slane %v4909_v47, 1  ;;  %v509_v10 = vrot.slane %v4906_v45, 1  ;;  %v4925_v11 = vsel %vm272_vm0, %v301_v12, %v377_v42 }
  0x31   : > { %650 = vrot.lane.b32.xlu0 %v4889_v18, %s4662_s18  ;;  %v4930_v17 = vsel %vm462_vm1, %v503_v34, %v504_v35  ;;  %v4933_v22 = vsel %vm272_vm0, %v303_v48, %v304_v49  ;;  %v4936_v23 = vsel %vm272_vm0, %v234_v44, %v303_v48  ;;  %v4941_v29 = vsel %vm272_vm0, %v304_v49, %v378_v53 }
  0x32   : > { %652 = vrot.lane.b32.xlu1 %v4895_v30, %s4662_s18  ;;  %9041 = vst [vmem:[#allocation18_spill] sm:$0xff] %v4930_v17  ;;  %9042 = vst [vmem:[#allocation19_spill] sm:$0xff] %v4933_v22  ;;  %v235_v12 = vrot.slane %v193_v60, 1  ;;  %v306_v31 = vrot.slane %v193_v60, 7  ;;  %v307_v42 = vrot.slane %v194_v0, 7  ;;  %v195_v30 = vld [vmem:[%s4706_s17 + $0xc0] sm:$0xff]  ;;  %v4950_v44 = vsel %vm462_vm1, %v508_v7, %v509_v10 }
  0x33   : > { %9043 = vst [vmem:[#allocation20_spill] sm:$0xff] %v4936_v23  ;;  %v511_v34 = vrot.slane %v4925_v11, 1  ;;  %v379_v18 = vrot.slane %v194_v0, 5  ;;  %9045 = vst [vmem:[#allocation22_spill] sm:$0xff] %v4950_v44  ;;  %v513_v48 = vrot.slane %v4936_v23, 1  ;;  %v514_v49 = vrot.slane %v4933_v22, 1 }
  0x34   : > { %v516_v53 = vrot.slane %v4941_v29, 1  ;;  %v4963_v60 = vsel %vm272_vm0, %v235_v12, %v306_v31  ;;  %v309_v0 = vrot.slane %v195_v30, 7  ;;  %v310_v7 = vrot.slane %v196_v63, 7 }
  0x35   : > { %654 = vrot.lane.b32.xlu0 %v4914_v56, %s4662_s18  ;;  %v4945_v56 = vsel %vm462_vm1, %v504_v35, %v506_v59  ;;  %v236_v35 = vrot.slane %v195_v30, 1  ;;  %v4960_v59 = vsel %vm272_vm0, %v306_v31, %v307_v42  ;;  %9047 = vst [vmem:[#allocation24_spill] sm:$0xff] %v4963_v60  ;;  %v380_v54 = vrot.slane %v196_v63, 5 }
  0x36   : > { %656 = vrot.lane.b32.xlu1 %v4917_v57, %s4662_s18  ;;  %9044 = vst [vmem:[#allocation21_spill] sm:$0xff] %v4945_v56  ;;  %9046 = vst [vmem:[#allocation23_spill] sm:$0xff] %v4960_v59  ;;  %v4969_v57 = vsel %vm272_vm0, %v307_v42, %v379_v18  ;;  %v518_v30 = vrot.slane %v4963_v60, 1  ;;  %v519_v12 = vrot.slane %v4960_v59, 1  ;;  %v4983_v18 = vsel %vm462_vm1, %v514_v49, %v516_v53 }
  0x37   : > { %9050 = vst [vmem:[#allocation27_spill] sm:$0xff] %v4983_v18  ;;  %v521_v63 = vrot.slane %v4969_v57, 1  ;;  %v4990_v31 = vsel %vm272_vm0, %v236_v35, %v309_v0  ;;  %v4993_v42 = vsel %vm272_vm0, %v310_v7, %v380_v54  ;;  %v381_v1 = vrot.slane %v198_v24, 5 }
  0x38   : > { %9052 = vst [vmem:[#allocation29_spill] sm:$0xff] %v4990_v31  ;;  %v523_v53 = vrot.slane %v4990_v31, 1  ;;  %v526_v35 = vrot.slane %v4993_v42, 1 }
  0x39   : > { %658 = vrot.lane.b32.xlu0 %v4930_v17, %s4662_s18  ;;  %v4966_v17 = vsel %vm462_vm1, %v509_v10, %v511_v34  ;;  %v4987_v10 = vsel %vm272_vm0, %v309_v0, %v310_v7  ;;  %v237_v34 = vrot.slane %v197_v28, 1  ;;  %v5006_v54 = vsel %vm462_vm1, %v519_v12, %v521_v63 }
  0x3a   : > { %660 = vrot.lane.b32.xlu1 %v4945_v56, %s4662_s18  ;;  %9048 = vst [vmem:[#allocation25_spill] sm:$0xff] %v4966_v17  ;;  %v4976_v56 = vsel %vm462_vm1, %v513_v48, %v514_v49  ;;  %9051 = vst [vmem:[#allocation28_spill] sm:$0xff] %v4987_v10  ;;  %v312_v48 = vrot.slane %v197_v28, 7  ;;  %v5000_v49 = vsel %vm462_vm1, %v518_v30, %v519_v12  ;;  %v524_v28 = vrot.slane %v4987_v10, 1 }
  0x3b   : > { %9049 = vst [vmem:[#allocation26_spill] sm:$0xff] %v4976_v56  ;;  %9053 = vst [vmem:[#allocation30_spill] sm:$0xff] %v5000_v49  ;;  %v315_v30 = vrot.slane %v199_v9, 7 }
  0x3c   : > { %9054 = vst [vmem:[#allocation31_spill] sm:$0xff] %v5006_v54  ;;  %v5014_v7 = vsel %vm272_vm0, %v237_v34, %v312_v48  ;;  %v5024_v12 = vsel %vm462_vm1, %v523_v53, %v524_v28 }
  0x3d   : > { %662 = vrot.lane.b32.xlu0 %v4950_v44, %s4662_s18  ;;  %v313_v44 = vrot.slane %v198_v24, 7  ;;  %v238_v24 = vrot.slane %v199_v9, 1  ;;  %9056 = vst [vmem:[#allocation33_spill] sm:$0xff] %v5014_v7  ;;  %9057 = vst [vmem:[#allocation34_spill] sm:$0xff] %v5024_v12  ;;  %v528_v63 = vrot.slane %v5014_v7, 1  ;;  %v5029_v9 = vsel %vm462_vm1, %v524_v28, %v526_v35 }
  0x3e   : > { %664 = vrot.lane.b32.xlu1 %v4966_v17, %s4662_s18  ;;  %v200_v17 = vld [vmem:[%s4706_s17 + $0xe8] sm:$0xff]  ;;  %9058 = vst [vmem:[#allocation35_spill] sm:$0xff] %v5029_v9 }
  0x3f   : > { %v5011_v0 = vsel %vm272_vm0, %v312_v48, %v313_v44  ;;  %v5017_v55 = vsel %vm272_vm0, %v313_v44, %v381_v1  ;;  %v5036_v44 = vsel %vm272_vm0, %v238_v24, %v315_v30 }
  0x40   : > { %9055 = vst [vmem:[#allocation32_spill] sm:$0xff] %v5011_v0  ;;  %v529_v34 = vrot.slane %v5011_v0, 1  ;;  %v531_v1 = vrot.slane %v5017_v55, 1  ;;  %9060 = vst [vmem:[#allocation37_spill] sm:$0xff] %v5036_v44  ;;  %v533_v28 = vrot.slane %v5036_v44, 1 }
  0x41   : > { %666 = vrot.lane.b32.xlu0 %v4976_v56, %s4662_s18  ;;  %v316_v56 = vrot.slane %v200_v17, 7 }
  0x42   : > { %668 = vrot.lane.b32.xlu1 %v4983_v18, %s4662_s18  ;;  %v382_v18 = vrot.slane %v200_v17, 5  ;;  %v5046_v53 = vsel %vm462_vm1, %v528_v63, %v529_v34 }
  0x43   : > { %v5033_v17 = vsel %vm272_vm0, %v315_v30, %v316_v56  ;;  %9061 = vst [vmem:[#allocation38_spill] sm:$0xff] %v5046_v53  ;;  %v540_v30 = vrot.slane %v4714_v13, 2 }
  0x44   : > { %9059 = vst [vmem:[#allocation36_spill] sm:$0xff] %v5033_v17  ;;  %v5039_v48 = vsel %vm272_vm0, %v316_v56, %v382_v18  ;;  %v534_v35 = vrot.slane %v5033_v17, 1  ;;  %v539_v18 = vrot.slane %v4717_v14, 2 }
  0x45   : > { %670 = vrot.lane.b32.xlu0 %v5000_v49, %s4662_s18  ;;  %v536_v24 = vrot.slane %v5039_v48, 1 }
  0x46   : > { %672 = vrot.lane.b32.xlu1 %v5006_v54, %s4662_s18  ;;  %v5051_v54 = vsel %vm462_vm1, %v529_v34, %v531_v1  ;;  %v5059_v56 = vsel %vm462_vm1, %v533_v28, %v534_v35  ;;  %v542_v34 = vrot.slane %v4732_v25, 2  ;;  %v5072_v1 = vsel %vm538_vm2, %v539_v18, %v540_v30 }
  0x47   : > { %9062 = vst [vmem:[#allocation39_spill] sm:$0xff] %v5051_v54  ;;  %9063 = vst [vmem:[#allocation40_spill] sm:$0xff] %v5059_v56  ;;  %v5064_v63 = vsel %vm462_vm1, %v534_v35, %v536_v24  ;;  %v544_v28 = vrot.slane %v4726_v21, 2  ;;  %v547_v35 = vrot.slane %v4735_v26, 2  ;;  %v549_v24 = vrot.slane %v4749_v33, 2 }
  0x48   : > { %9064 = vst [vmem:[#allocation41_spill] sm:$0xff] %v5064_v63  ;;  %v550_v18 = vrot.slane %v4761_v39, 2 }
  0x49   : > { %674 = vrot.lane.b32.xlu0 %v5024_v12, %s4662_s18 }
  0x4a   : > { %676 = vrot.lane.b32.xlu1 %v5029_v9, %s4662_s18  ;;  %v5098_v26 = vsel %vm538_vm2, %v549_v24, %v550_v18  ;;  %v560_v24 = vrot.slane %v4795_v61, 2 }
  0x4d   : > { %678 = vrot.lane.b32.xlu0 %v5046_v53, %s4662_s18  ;;  %v5077_v53 = vsel %vm538_vm2, %v540_v30, %v542_v34  ;;  %v552_v30 = vrot.slane %v4767_v43, 2  ;;  %v554_v34 = vrot.slane %v4779_v52, 2 }
  0x4e   : > { %680 = vrot.lane.b32.xlu1 %v5051_v54, %s4662_s18  ;;  %v545_v54 = vrot.slane %v4723_v20, 2 }
  0x50   : > { %v5085_v25 = vsel %vm538_vm2, %v544_v28, %v545_v54  ;;  %v555_v28 = vrot.slane %v4776_v51, 2 }
  0x51   : > { %682 = vrot.lane.b32.xlu0 %v5059_v56, %s4662_s18  ;;  %v5103_v56 = vsel %vm538_vm2, %v550_v18, %v552_v30  ;;  %v562_v18 = vrot.slane %v4810_v6, 2  ;;  %v564_v30 = vrot.slane %v4822_v16, 2 }
  0x52   : > { %684 = vrot.lane.b32.xlu1 %v5064_v63, %s4662_s18  ;;  %v5090_v63 = vsel %vm538_vm2, %v545_v54, %v547_v35  ;;  %v557_v54 = vrot.slane %v4790_v58, 2  ;;  %v5111_v43 = vsel %vm538_vm2, %v554_v34, %v555_v28  ;;  %v559_v35 = vrot.slane %v4798_v62, 2 }
  0x53   : > { %v565_v34 = vrot.slane %v4819_v15, 2  ;;  %v5129_v12 = vsel %vm538_vm2, %v560_v24, %v562_v18  ;;  %v574_v18 = vrot.slane %v4872_v3, 2 }
  0x54   : > { %v5116_v9 = vsel %vm538_vm2, %v555_v28, %v557_v54  ;;  %v5124_v58 = vsel %vm538_vm2, %v559_v35, %v560_v24  ;;  %9065 = vst [vmem:[#allocation42_spill] sm:$0xff] %v5129_v12  ;;  %v567_v28 = vrot.slane %v4825_v19, 2  ;;  %v569_v54 = vrot.slane %v4848_v41, 2 }
  0x55   : > { %716 = vrot.lane.b32.xlu0 %v5072_v1, %s4663_s19  ;;  %v5137_v6 = vsel %vm538_vm2, %v564_v30, %v565_v34  ;;  %v570_v35 = vrot.slane %v4844_v36, 2  ;;  %v572_v24 = vrot.slane %v4851_v46, 2  ;;  %v575_v30 = vrot.slane %v4869_v2, 2 }
  0x56   : > { %718 = vrot.lane.b32.xlu1 %v5077_v53, %s4663_s19  ;;  %v5142_v49 = vsel %vm538_vm2, %v565_v34, %v567_v28  ;;  %v577_v34 = vrot.slane %v4875_v4, 2  ;;  %v579_v28 = vrot.slane %v4878_v5, 2 }
  0x57   : > { %9066 = vst [vmem:[#allocation43_spill] sm:$0xff] %v5142_v49  ;;  %v5150_v19 = vsel %vm538_vm2, %v569_v54, %v570_v35  ;;  %v5163_v46 = vsel %vm538_vm2, %v574_v18, %v575_v30  ;;  %v580_v54 = vrot.slane %v4883_v8, 2  ;;  %v585_v18 = vrot.slane %v4906_v45, 2 }
  0x59   : > { %720 = vrot.lane.b32.xlu0 %v5085_v25, %s4663_s19  ;;  %v5176_v4 = vsel %vm538_vm2, %v579_v28, %v580_v54  ;;  %v590_v28 = vrot.slane %v4933_v22, 2 }
  0x5a   : > { %722 = vrot.lane.b32.xlu1 %v5090_v63, %s4663_s19 }
  0x5d   : > { %724 = vrot.lane.b32.xlu0 %v5098_v26, %s4663_s19 }
  0x5e   : > { %726 = vrot.lane.b32.xlu1 %v5103_v56, %s4663_s19 }
  0x61   : > { %728 = vrot.lane.b32.xlu0 %v5111_v43, %s4663_s19 }
  0x62   : > { %730 = vrot.lane.b32.xlu1 %v5116_v9, %s4663_s19 }
  0x65   : > { %732 = vrot.lane.b32.xlu0 %v5124_v58, %s4663_s19 }
  0x66   : > { %734 = vrot.lane.b32.xlu1 %v5129_v12, %s4663_s19  ;;  %v5155_v12 = vsel %vm538_vm2, %v570_v35, %v572_v24  ;;  %v582_v35 = vrot.slane %v4901_v40, 2  ;;  %v584_v24 = vrot.slane %v4909_v47, 2 }
  0x67   : > { %9067 = vst [vmem:[#allocation44_spill] sm:$0xff] %v5155_v12 }
  0x68   : > { %v5189_v40 = vsel %vm538_vm2, %v584_v24, %v585_v18  ;;  %v595_v24 = vrot.slane %v4960_v59, 2 }
  0x69   : > { %736 = vrot.lane.b32.xlu0 %v5137_v6, %s4663_s19 }
  0x6a   : > { %738 = vrot.lane.b32.xlu1 %v5142_v49, %s4663_s19  ;;  %v5168_v49 = vsel %vm538_vm2, %v575_v30, %v577_v34  ;;  %v587_v30 = vrot.slane %v4925_v11, 2  ;;  %v589_v34 = vrot.slane %v4936_v23, 2 }
  0x6b   : > { %9068 = vst [vmem:[#allocation45_spill] sm:$0xff] %v5168_v49 }
  0x6c   : > { %v5202_v11 = vsel %vm538_vm2, %v589_v34, %v590_v28  ;;  %v600_v34 = vrot.slane %v4987_v10, 2 }
  0x6d   : > { %740 = vrot.lane.b32.xlu0 %v5150_v19, %s4663_s19  ;;  %9071 = vst [vmem:[#allocation48_spill] sm:$0xff] %v5202_v11 }
  0x6e   : > { %742 = vrot.lane.b32.xlu1 %v5155_v12, %s4663_s19  ;;  %v5181_v12 = vsel %vm538_vm2, %v580_v54, %v582_v35  ;;  %v592_v54 = vrot.slane %v4941_v29, 2  ;;  %v594_v35 = vrot.slane %v4963_v60, 2 }
  0x6f   : > { %9069 = vst [vmem:[#allocation46_spill] sm:$0xff] %v5181_v12 }
  0x70   : > { %v5215_v29 = vsel %vm538_vm2, %v594_v35, %v595_v24  ;;  %v605_v35 = vrot.slane %v5011_v0, 2 }
  0x71   : > { %744 = vrot.lane.b32.xlu0 %v5163_v46, %s4663_s19  ;;  %9073 = vst [vmem:[#allocation50_spill] sm:$0xff] %v5215_v29 }
  0x72   : > { %746 = vrot.lane.b32.xlu1 %v5168_v49, %s4663_s19  ;;  %v5194_v49 = vsel %vm538_vm2, %v585_v18, %v587_v30  ;;  %v597_v18 = vrot.slane %v4969_v57, 2  ;;  %v599_v30 = vrot.slane %v4990_v31, 2 }
  0x73   : > { %9070 = vst [vmem:[#allocation47_spill] sm:$0xff] %v5194_v49 }
  0x74   : > { %v5228_v57 = vsel %vm538_vm2, %v599_v30, %v600_v34  ;;  %v610_v30 = vrot.slane %v5033_v17, 2 }
  0x75   : > { %748 = vrot.lane.b32.xlu0 %v5176_v4, %s4663_s19  ;;  %9075 = vst [vmem:[#allocation52_spill] sm:$0xff] %v5228_v57 }
  0x76   : > { %750 = vrot.lane.b32.xlu1 %v5181_v12, %s4663_s19  ;;  %v5207_v12 = vsel %vm538_vm2, %v590_v28, %v592_v54  ;;  %v602_v28 = vrot.slane %v4993_v42, 2  ;;  %v604_v54 = vrot.slane %v5014_v7, 2 }
  0x77   : > { %9072 = vst [vmem:[#allocation49_spill] sm:$0xff] %v5207_v12 }
  0x78   : > { %v5241_v42 = vsel %vm538_vm2, %v604_v54, %v605_v35 }
  0x79   : > { %752 = vrot.lane.b32.xlu0 %v5189_v40, %s4663_s19  ;;  %9077 = vst [vmem:[#allocation54_spill] sm:$0xff] %v5241_v42 }
  0x7a   : > { %754 = vrot.lane.b32.xlu1 %v5194_v49, %s4663_s19  ;;  %v5220_v49 = vsel %vm538_vm2, %v595_v24, %v597_v18  ;;  %v607_v24 = vrot.slane %v5017_v55, 2  ;;  %v609_v18 = vrot.slane %v5036_v44, 2 }
  0x7b   : > { %9074 = vst [vmem:[#allocation51_spill] sm:$0xff] %v5220_v49 }
  0x7c   : > { %v5254_v55 = vsel %vm538_vm2, %v609_v18, %v610_v30 }
  0x7d   : > { %756 = vrot.lane.b32.xlu0 %v5202_v11, %s4663_s19  ;;  %9079 = vst [vmem:[#allocation56_spill] sm:$0xff] %v5254_v55  ;;  %v206_v11 = vld [vmem:[%s8793_s1 + $0x18] sm:$0xff] }
  0x7e   : > { %758 = vrot.lane.b32.xlu1 %v5207_v12, %s4663_s19  ;;  %v5233_v12 = vsel %vm538_vm2, %v600_v34, %v602_v28  ;;  %v612_v34 = vrot.slane %v5039_v48, 2 }
  0x7f   : > { %9076 = vst [vmem:[#allocation53_spill] sm:$0xff] %v5233_v12 }
  0x80   : > { %v5259_v54 = vsel %vm538_vm2, %v610_v30, %v612_v34 }
  0x81   : > { %760 = vrot.lane.b32.xlu0 %v5215_v29, %s4663_s19  ;;  %9080 = vst [vmem:[#allocation57_spill] sm:$0xff] %v5259_v54 }
  0x82   : > { %762 = vrot.lane.b32.xlu1 %v5220_v49, %s4663_s19  ;;  %v5246_v49 = vsel %vm538_vm2, %v605_v35, %v607_v24 }
  0x83   : > { %9078 = vst [vmem:[#allocation55_spill] sm:$0xff] %v5246_v49 }
  0x85   : > { %764 = vrot.lane.b32.xlu0 %v5228_v57, %s4663_s19 }
  0x86   : > { %766 = vrot.lane.b32.xlu1 %v5233_v12, %s4663_s19 }
  0x89   : > { %768 = vrot.lane.b32.xlu0 %v5241_v42, %s4663_s19 }
  0x8a   : > { %770 = vrot.lane.b32.xlu1 %v5246_v49, %s4663_s19 }
  0x8b   : > { %v5256_v28 = vpop.permute.xlu0 %626 }
  0x8c   : > { %v5261_v12 = vpop.permute.xlu1 %630 }
  0x8d   : > { %772 = vrot.lane.b32.xlu0 %v5254_v55, %s4663_s19 }
  0x8e   : > { %774 = vrot.lane.b32.xlu1 %v5259_v54, %s4663_s19 }
  0x8f   : > { %v5267_v48 = vpop.permute.xlu0 %628 }
  0x90   : > { %v5269_v35 = vpop.permute.xlu1 %632 }
  0x91   : > { %806 = vrot.lane.b32.xlu0 %v4726_v21, %s4664_s20 }
  0x92   : > { %808 = vrot.lane.b32.xlu1 %v4723_v20, %s4664_s20 }
  0x93   : > { %v5275_v24 = vpop.permute.xlu0 %634 }
  0x94   : > { %9081 = vst [vmem:[#allocation58_spill] sm:$0xff] %v5275_v24  ;;  %v5277_v18 = vpop.permute.xlu1 %636  ;;  %v205_v24 = vld [vmem:[%s8793_s1 + $0x10] sm:$0xff] }
  0x95   : > { %9082 = vst [vmem:[#allocation59_spill] sm:$0xff] %v5277_v18  ;;  %810 = vrot.lane.b32.xlu0 %v4717_v14, %s4664_s20 }
  0x96   : > { %812 = vrot.lane.b32.xlu1 %v4714_v13, %s4664_s20 }
  0x97   : > { %v5283_v30 = vpop.permute.xlu0 %638 }
  0x98   : > { %9083 = vst [vmem:[#allocation60_spill] sm:$0xff] %v5283_v30  ;;  %v5285_v34 = vpop.permute.xlu1 %640 }
  0x99   : > { %9084 = vst [vmem:[#allocation61_spill] sm:$0xff] %v5285_v34  ;;  %814 = vrot.lane.b32.xlu0 %v4749_v33, %s4664_s20  ;;  %v5377_v34 = vld [vmem:[%s4706_s17 + $0xf8] sm:$0xff] }
  0x9a   : > { %816 = vrot.lane.b32.xlu1 %v4761_v39, %s4664_s20  ;;  %9107 = vst [vmem:[#allocation84_spill] sm:$0xff] %v5377_v34 }
  0x9b   : > { %v5291_v54 = vpop.permute.xlu0 %642 }
  0x9c   : > { %9085 = vst [vmem:[#allocation62_spill] sm:$0xff] %v5291_v54  ;;  %v5293_v55 = vpop.permute.xlu1 %644 }
  0x9d   : > { %9086 = vst [vmem:[#allocation63_spill] sm:$0xff] %v5293_v55  ;;  %818 = vrot.lane.b32.xlu0 %v4779_v52, %s4664_s20 }
  0x9e   : > { %820 = vrot.lane.b32.xlu1 %v4776_v51, %s4664_s20 }
  0x9f   : > { %v5299_v49 = vpop.permute.xlu0 %646 }
  0xa0   : > { %9087 = vst [vmem:[#allocation64_spill] sm:$0xff] %v5299_v49  ;;  %v5301_v42 = vpop.permute.xlu1 %648 }
  0xa1   : > { %9088 = vst [vmem:[#allocation65_spill] sm:$0xff] %v5301_v42  ;;  %822 = vrot.lane.b32.xlu0 %v4798_v62, %s4664_s20 }
  0xa2   : > { %824 = vrot.lane.b32.xlu1 %v4795_v61, %s4664_s20 }
  0xa3   : > { %v5307_v57 = vpop.permute.xlu0 %650 }
  0xa4   : > { %9089 = vst [vmem:[#allocation66_spill] sm:$0xff] %v5307_v57  ;;  %v5309_v54 = vpop.permute.xlu1 %652 }
  0xa5   : > { %9090 = vst [vmem:[#allocation67_spill] sm:$0xff] %v5309_v54  ;;  %826 = vrot.lane.b32.xlu0 %v4822_v16, %s4664_s20 }
  0xa6   : > { %828 = vrot.lane.b32.xlu1 %v4819_v15, %s4664_s20 }
  0xa7   : > { %v5315_v55 = vpop.permute.xlu0 %654 }
  0xa8   : > { %9091 = vst [vmem:[#allocation68_spill] sm:$0xff] %v5315_v55  ;;  %v5317_v49 = vpop.permute.xlu1 %656 }
  0xa9   : > { %9092 = vst [vmem:[#allocation69_spill] sm:$0xff] %v5317_v49  ;;  %830 = vrot.lane.b32.xlu0 %v4848_v41, %s4664_s20 }
  0xaa   : > { %832 = vrot.lane.b32.xlu1 %v4844_v36, %s4664_s20 }
  0xab   : > { %v5323_v42 = vpop.permute.xlu0 %658 }
  0xac   : > { %9093 = vst [vmem:[#allocation70_spill] sm:$0xff] %v5323_v42  ;;  %v5325_v57 = vpop.permute.xlu1 %660 }
  0xad   : > { %9094 = vst [vmem:[#allocation71_spill] sm:$0xff] %v5325_v57  ;;  %834 = vrot.lane.b32.xlu0 %v4872_v3, %s4664_s20 }
  0xae   : > { %836 = vrot.lane.b32.xlu1 %v4869_v2, %s4664_s20 }
  0xaf   : > { %v5331_v54 = vpop.permute.xlu0 %662 }
  0xb0   : > { %9095 = vst [vmem:[#allocation72_spill] sm:$0xff] %v5331_v54  ;;  %v5333_v55 = vpop.permute.xlu1 %664 }
  0xb1   : > { %9096 = vst [vmem:[#allocation73_spill] sm:$0xff] %v5333_v55  ;;  %838 = vrot.lane.b32.xlu0 %v4878_v5, %s4664_s20 }
  0xb2   : > { %840 = vrot.lane.b32.xlu1 %v4883_v8, %s4664_s20 }
  0xb3   : > { %v5339_v49 = vpop.permute.xlu0 %666 }
  0xb4   : > { %9097 = vst [vmem:[#allocation74_spill] sm:$0xff] %v5339_v49  ;;  %v5341_v42 = vpop.permute.xlu1 %668 }
  0xb5   : > { %9098 = vst [vmem:[#allocation75_spill] sm:$0xff] %v5341_v42  ;;  %842 = vrot.lane.b32.xlu0 %v4909_v47, %s4664_s20 }
  0xb6   : > { %844 = vrot.lane.b32.xlu1 %v4906_v45, %s4664_s20 }
  0xb7   : > { %v5347_v54 = vpop.permute.xlu0 %670 }
  0xb8   : > { %9099 = vst [vmem:[#allocation76_spill] sm:$0xff] %v5347_v54  ;;  %v5349_v55 = vpop.permute.xlu1 %672 }
  0xb9   : > { %9100 = vst [vmem:[#allocation77_spill] sm:$0xff] %v5349_v55  ;;  %846 = vrot.lane.b32.xlu0 %v4936_v23, %s4664_s20 }
  0xba   : > { %848 = vrot.lane.b32.xlu1 %v4933_v22, %s4664_s20  ;;  %v9136_v22 = vld [vmem:[#allocation17_spill] sm:$0xff] }
  0xbb   : > { %v5355_v49 = vpop.permute.xlu0 %674 }
  0xbc   : > { %9101 = vst [vmem:[#allocation78_spill] sm:$0xff] %v5355_v49  ;;  %v5357_v42 = vpop.permute.xlu1 %676  ;;  %v201_v49 = vld [vmem:[%s4706_s17 + $0xf0] sm:$0xff] }
  0xbd   : > { %9102 = vst [vmem:[#allocation79_spill] sm:$0xff] %v5357_v42  ;;  %850 = vrot.lane.b32.xlu0 %v4963_v60, %s4664_s20 }
  0xbe   : > { %852 = vrot.lane.b32.xlu1 %v4960_v59, %s4664_s20  ;;  %v9128_v59 = vld [vmem:[#allocation9_spill] sm:$0xff] }
  0xbf   : > { %v5363_v57 = vpop.permute.xlu0 %678 }
  0xc0   : > { %9103 = vst [vmem:[#allocation80_spill] sm:$0xff] %v5363_v57  ;;  %v5365_v54 = vpop.permute.xlu1 %680  ;;  %v318_v57 = vrot.slane %v201_v49, 7 }
  0xc1   : > { %9104 = vst [vmem:[#allocation81_spill] sm:$0xff] %v5365_v54  ;;  %854 = vrot.lane.b32.xlu0 %v4990_v31, %s4664_s20  ;;  %v239_v54 = vrot.slane %v201_v49, 1  ;;  %v8886_v31 = vrot.slane %v5377_v34, 7  ;;  %v9119_v34 = vld [vmem:[#allocation3_spill] sm:$0xff] }
  0xc2   : > { %856 = vrot.lane.b32.xlu1 %v4987_v10, %s4664_s20 }
  0xc3   : > { %v5371_v55 = vpop.permute.xlu0 %682  ;;  %v5400_v49 = vsel %vm272_vm0, %v318_v57, %v8886_v31 }
  0xc4   : > { %9105 = vst [vmem:[#allocation82_spill] sm:$0xff] %v5371_v55  ;;  %v5374_v42 = vpop.permute.xlu1 %684  ;;  %9109 = vst [vmem:[#allocation86_spill] sm:$0xff] %v5400_v49 }
  0xc5   : > { %9106 = vst [vmem:[#allocation83_spill] sm:$0xff] %v5374_v42  ;;  %858 = vrot.lane.b32.xlu0 %v5014_v7, %s4664_s20  ;;  %v5393_v42 = vsel %vm272_vm0, %v239_v54, %v318_v57  ;;  %v9120_v7 = vld [vmem:[#allocation4_spill] sm:$0xff] }
  0xc6   : > { %860 = vrot.lane.b32.xlu1 %v5011_v0, %s4664_s20  ;;  %9108 = vst [vmem:[#allocation85_spill] sm:$0xff] %v5393_v42 }
  0xc7   : > { %v5383_v29 = vpop.permute.xlu0 %716 }
  0xc8   : > { %v5386_v10 = vpop.permute.xlu1 %718 }
  0xc9   : > { %862 = vrot.lane.b32.xlu0 %v5036_v44, %s4664_s20 }
  0xca   : > { %864 = vrot.lane.b32.xlu1 %v5033_v17, %s4664_s20 }
  0xcb   : > { %v5395_v55 = vpop.permute.xlu0 %720 }
  0xcc   : > { %v5402_v0 = vpop.permute.xlu1 %722 }
  0xcd   : > { %866 = vrot.lane.b32.xlu0 %v5393_v42, %s4664_s20 }
  0xce   : > { %868 = vrot.lane.b32.xlu1 %v5400_v49, %s4664_s20 }
  0xcf   : > { %v5408_v44 = vpop.permute.xlu0 %724 }
  0xd0   : > { %9110 = vst [vmem:[#allocation87_spill] sm:$0xff] %v5408_v44  ;;  %v5410_v17 = vpop.permute.xlu1 %726 }
  0xd1   : > { %9111 = vst [vmem:[#allocation88_spill] sm:$0xff] %v5410_v17  ;;  %902 = vrot.lane.b32.xlu0 %v4746_v32, %s4665_s21  ;;  %v9116_v32 = vld [vmem:[#allocation2_spill] sm:$0xff] }
  0xd2   : > { %904 = vrot.lane.b32.xlu1 %v4758_v38, %s4665_s21  ;;  %v203_v17 = vld [vmem:[%s8793_s1] sm:$0xff] }
  0xd3   : > { %v5416_v57 = vpop.permute.xlu0 %728 }
  0xd4   : > { %9112 = vst [vmem:[#allocation89_spill] sm:$0xff] %v5416_v57  ;;  %v5418_v54 = vpop.permute.xlu1 %730  ;;  %v9124_v57 = vld [vmem:[#allocation6_spill] sm:$0xff] }
  0xd5   : > { %9113 = vst [vmem:[#allocation90_spill] sm:$0xff] %v5418_v54  ;;  %906 = vrot.lane.b32.xlu0 %v4738_v27, %s4665_s21 }
  0xd6   : > { %908 = vrot.lane.b32.xlu1 %v4755_v37, %s4665_s21 }
  0xd7   : > { %v5424_v31 = vpop.permute.xlu0 %732 }
  0xd8   : > { %9114 = vst [vmem:[#allocation91_spill] sm:$0xff] %v5424_v31  ;;  %v5426_v49 = vpop.permute.xlu1 %734 }
  0xd9   : > { %9115 = vst [vmem:[#allocation92_spill] sm:$0xff] %v5426_v49  ;;  %910 = vrot.lane.b32.xlu0 %v4773_v50, %s4665_s21  ;;  %v9123_v49 = vld [vmem:[#allocation5_spill] sm:$0xff] }
  0xda   : > { %912 = vrot.lane.b32.xlu1 %v9116_v32, %s4665_s21 }
  0xdb   : > { %v5432_v38 = vpop.permute.xlu0 %736 }
  0xdc   : > { %9117 = vst [vmem:[#allocation2_spill] sm:$0xff] %v5432_v38  ;;  %v5434_v42 = vpop.permute.xlu1 %738 }
  0xdd   : > { %9118 = vst [vmem:[#allocation93_spill] sm:$0xff] %v5434_v42  ;;  %914 = vrot.lane.b32.xlu0 %v9119_v34, %s4665_s21  ;;  %v9127_v42 = vld [vmem:[#allocation8_spill] sm:$0xff] }
  0xde   : > { %916 = vrot.lane.b32.xlu1 %v9120_v7, %s4665_s21 }
  0xdf   : > { %v5440_v54 = vpop.permute.xlu0 %740 }
  0xe0   : > { %9121 = vst [vmem:[#allocation3_spill] sm:$0xff] %v5440_v54  ;;  %v5442_v31 = vpop.permute.xlu1 %742 }
  0xe1   : > { %9122 = vst [vmem:[#allocation4_spill] sm:$0xff] %v5442_v31  ;;  %918 = vrot.lane.b32.xlu0 %v9123_v49, %s4665_s21  ;;  %v9131_v31 = vld [vmem:[#allocation14_spill] sm:$0xff] }
  0xe2   : > { %920 = vrot.lane.b32.xlu1 %v9124_v57, %s4665_s21 }
  0xe3   : > { %v5448_v30 = vpop.permute.xlu0 %744 }
  0xe4   : > { %9125 = vst [vmem:[#allocation5_spill] sm:$0xff] %v5448_v30  ;;  %v5450_v38 = vpop.permute.xlu1 %746  ;;  %v9132_v30 = vld [vmem:[#allocation15_spill] sm:$0xff] }
  0xe5   : > { %9126 = vst [vmem:[#allocation6_spill] sm:$0xff] %v5450_v38  ;;  %922 = vrot.lane.b32.xlu0 %v9127_v42, %s4665_s21  ;;  %v204_v38 = vld [vmem:[%s8793_s1 + $0x8] sm:$0xff] }
  0xe6   : > { %924 = vrot.lane.b32.xlu1 %v9128_v59, %s4665_s21  ;;  %v4586_v18 = vpack.c.bf16 %v204_v38, %v203_v17  ;;  %v4590_v17 = vpack.c.bf16 %v206_v11, %v205_v24 }
  0xe7   : > { %v5456_v60 = vpop.permute.xlu0 %748 }
  0xe8   : > { %9129 = vst [vmem:[#allocation8_spill] sm:$0xff] %v5456_v60  ;;  %v5458_v54 = vpop.permute.xlu1 %750  ;;  %4587 = vmatprep.subr.bf16.mxu0 %v4586_v18 }
  0xe9   : > { %9130 = vst [vmem:[#allocation9_spill] sm:$0xff] %v5458_v54  ;;  %926 = vrot.lane.b32.xlu0 %v9131_v31, %s4665_s21  ;;  %v9135_v54 = vld [vmem:[#allocation16_spill] sm:$0xff]  ;;  %4589 = vmatpush3.bf16.msra.mxu0 %v4586_v18  ;;  %v207_v18 = vld [vmem:[%s8793_s1 + $0x20] sm:$0xf] }
  0xea   : > { %928 = vrot.lane.b32.xlu1 %v9132_v30, %s4665_s21  ;;  %4591 = vmatprep.subr.bf16.mxu0 %v4590_v17 }
  0xeb   : > { %v5470_v44 = vpop.permute.xlu0 %752 }
  0xec   : > { %9133 = vst [vmem:[#allocation14_spill] sm:$0xff] %v5470_v44  ;;  %v5472_v60 = vpop.permute.xlu1 %754  ;;  %v9139_v44 = vld [vmem:[#allocation18_spill] sm:$0xff] }
  0xed   : > { %9134 = vst [vmem:[#allocation15_spill] sm:$0xff] %v5472_v60  ;;  %930 = vrot.lane.b32.xlu0 %v9135_v54, %s4665_s21  ;;  %4593 = vmatpush3.bf16.msra.mxu0 %v4590_v17 }
  0xee   : > { %932 = vrot.lane.b32.xlu1 %v9136_v22, %s4665_s21  ;;  %4478 = vmatprep.subr.msk.mxu0 %vm1721_vm3, %v207_v18 }
  0xef   : > { %v5484_v38 = vpop.permute.xlu0 %756 }
  0xf0   : > { %9137 = vst [vmem:[#allocation16_spill] sm:$0xff] %v5484_v38  ;;  %v5486_v60 = vpop.permute.xlu1 %758 }
  0xf1   : > { %9138 = vst [vmem:[#allocation17_spill] sm:$0xff] %v5486_v60  ;;  %934 = vrot.lane.b32.xlu0 %v9139_v44, %s4665_s21  ;;  %4479 = vmatpush3.msk.msra.mxu0 %vm1721_vm3, %v207_v18 }
  0xf2   : > { %998 = vrot.lane.b32.xlu1 %v5085_v25, %s4666_s30 }
  0xf3   : > { %v5495_v23 = vpop.permute.xlu0 %760 }
  0xf4   : > { %9140 = vst [vmem:[#allocation18_spill] sm:$0xff] %v5495_v23  ;;  %v5498_v11 = vpop.permute.xlu1 %762 }
  0xf5   : > { %9141 = vst [vmem:[#allocation94_spill] sm:$0xff] %v5498_v11  ;;  %1000 = vrot.lane.b32.xlu0 %v5090_v63, %s4666_s30 }
  0xf6   : > { %1094 = vrot.lane.b32.xlu1 %v4717_v14, %s4667_s6 }
  0xf7   : > { %v5505_v25 = vpop.permute.xlu0 %764 }
  0xf8   : > { %9142 = vst [vmem:[#allocation95_spill] sm:$0xff] %v5505_v25  ;;  %v5507_v24 = vpop.permute.xlu1 %766 }
  0xf9   : > { %9143 = vst [vmem:[#allocation96_spill] sm:$0xff] %v5507_v24  ;;  %1096 = vrot.lane.b32.xlu0 %v4714_v13, %s4667_s6 }
  0xfa   : > { %1184 = vrot.lane.b32.xlu1 %v4738_v27, %s4668_s7 }
  0xfb   : > { %v5513_v17 = vpop.permute.xlu0 %768 }
  0xfc   : > { %9144 = vst [vmem:[#allocation97_spill] sm:$0xff] %v5513_v17  ;;  %v5515_v63 = vpop.permute.xlu1 %770 }
  0xfd   : > { %9145 = vst [vmem:[#allocation98_spill] sm:$0xff] %v5515_v63  ;;  %1186 = vrot.lane.b32.xlu0 %v4755_v37, %s4668_s7 }
  0xfe   : > { %1274 = vrot.lane.b32.xlu1 %v5072_v1, %s4669_s8 }
  0xff   : > { %v5521_v18 = vpop.permute.xlu0 %772 }
 0x100   : > { %9146 = vst [vmem:[#allocation99_spill] sm:$0xff] %v5521_v18  ;;  %v5523_v24 = vpop.permute.xlu1 %774 }
 0x101   : > { %9147 = vst [vmem:[#allocation100_spill] sm:$0xff] %v5523_v24  ;;  %1002 = vrot.lane.b32.xlu0 %v5072_v1, %s4666_s30 }
 0x102   : > { %1276 = vrot.lane.b32.xlu1 %v5077_v53, %s4669_s8 }
 0x103   : > { %v5529_v27 = vpop.permute.xlu0 %806 }
 0x104   : > { %v5531_v63 = vpop.permute.xlu1 %808 }
 0x105   : > { %1004 = vrot.lane.b32.xlu0 %v5077_v53, %s4666_s30 }
 0x106   : > { %1098 = vrot.lane.b32.xlu1 %v4749_v33, %s4667_s6 }
 0x107   : > { %v5537_v37 = vpop.permute.xlu0 %810 }
 0x108   : > { %v5539_v18 = vpop.permute.xlu1 %812 }
 0x109   : > { %1100 = vrot.lane.b32.xlu0 %v4761_v39, %s4667_s6 }
 0x10a   : > { %1188 = vrot.lane.b32.xlu1 %v4773_v50, %s4668_s7 }
 0x10b   : > { %v5545_v1 = vpop.permute.xlu0 %814 }
 0x10c   : > { %v5547_v24 = vpop.permute.xlu1 %816 }
 0x10d   : > { %1190 = vrot.lane.b32.xlu0 %v9116_v32, %s4668_s7 }
 0x10e   : > { %1278 = vrot.lane.b32.xlu1 %v5098_v26, %s4669_s8 }
 0x10f   : > { %v5553_v53 = vpop.permute.xlu0 %818 }
 0x110   : > { %v5555_v17 = vpop.permute.xlu1 %820 }
 0x111   : > { %1006 = vrot.lane.b32.xlu0 %v5098_v26, %s4666_s30 }
 0x112   : > { %1280 = vrot.lane.b32.xlu1 %v5103_v56, %s4669_s8 }
 0x113   : > { %v5561_v50 = vpop.permute.xlu0 %822 }
 0x114   : > { %v5563_v25 = vpop.permute.xlu1 %824 }
 0x115   : > { %1008 = vrot.lane.b32.xlu0 %v5103_v56, %s4666_s30 }
 0x116   : > { %1102 = vrot.lane.b32.xlu1 %v4779_v52, %s4667_s6 }
 0x117   : > { %v5569_v32 = vpop.permute.xlu0 %826 }
 0x118   : > { %v5571_v11 = vpop.permute.xlu1 %828 }
 0x119   : > { %1104 = vrot.lane.b32.xlu0 %v4776_v51, %s4667_s6 }
 0x11a   : > { %1192 = vrot.lane.b32.xlu1 %v9119_v34, %s4668_s7 }
 0x11b   : > { %v5577_v26 = vpop.permute.xlu0 %830 }
 0x11c   : > { %v5579_v23 = vpop.permute.xlu1 %832 }
 0x11d   : > { %1194 = vrot.lane.b32.xlu0 %v9120_v7, %s4668_s7 }
 0x11e   : > { %1282 = vrot.lane.b32.xlu1 %v5111_v43, %s4669_s8 }
 0x11f   : > { %v5585_v56 = vpop.permute.xlu0 %834 }
 0x120   : > { %9148 = vst [vmem:[#allocation101_spill] sm:$0xff] %v5585_v56  ;;  %v5587_v60 = vpop.permute.xlu1 %836 }
 0x121   : > { %9149 = vst [vmem:[#allocation102_spill] sm:$0xff] %v5587_v60  ;;  %1010 = vrot.lane.b32.xlu0 %v5111_v43, %s4666_s30 }
 0x122   : > { %1284 = vrot.lane.b32.xlu1 %v5116_v9, %s4669_s8 }
 0x123   : > { %v5593_v34 = vpop.permute.xlu0 %838 }
 0x124   : > { %9150 = vst [vmem:[#allocation103_spill] sm:$0xff] %v5593_v34  ;;  %v5595_v38 = vpop.permute.xlu1 %840 }
 0x125   : > { %9151 = vst [vmem:[#allocation104_spill] sm:$0xff] %v5595_v38  ;;  %1012 = vrot.lane.b32.xlu0 %v5116_v9, %s4666_s30 }
 0x126   : > { %1106 = vrot.lane.b32.xlu1 %v4798_v62, %s4667_s6 }
 0x127   : > { %v5601_v7 = vpop.permute.xlu0 %842 }
 0x128   : > { %9152 = vst [vmem:[#allocation105_spill] sm:$0xff] %v5601_v7  ;;  %v5603_v56 = vpop.permute.xlu1 %844 }
 0x129   : > { %9153 = vst [vmem:[#allocation106_spill] sm:$0xff] %v5603_v56  ;;  %1108 = vrot.lane.b32.xlu0 %v4795_v61, %s4667_s6  ;;  %v9158_v56 = vld [vmem:[#allocation42_spill] sm:$0xff] }
 0x12a   : > { %1196 = vrot.lane.b32.xlu1 %v9123_v49, %s4668_s7 }
 0x12b   : > { %v5609_v43 = vpop.permute.xlu0 %846 }
 0x12c   : > { %9154 = vst [vmem:[#allocation107_spill] sm:$0xff] %v5609_v43  ;;  %v5611_v34 = vpop.permute.xlu1 %848 }
 0x12d   : > { %9155 = vst [vmem:[#allocation108_spill] sm:$0xff] %v5611_v34  ;;  %1198 = vrot.lane.b32.xlu0 %v9124_v57, %s4668_s7 }
 0x12e   : > { %1286 = vrot.lane.b32.xlu1 %v5124_v58, %s4669_s8 }
 0x12f   : > { %v5617_v9 = vpop.permute.xlu0 %850 }
 0x130   : > { %9156 = vst [vmem:[#allocation109_spill] sm:$0xff] %v5617_v9  ;;  %v5619_v7 = vpop.permute.xlu1 %852 }
 0x131   : > { %9157 = vst [vmem:[#allocation110_spill] sm:$0xff] %v5619_v7  ;;  %1014 = vrot.lane.b32.xlu0 %v5124_v58, %s4666_s30 }
 0x132   : > { %1288 = vrot.lane.b32.xlu1 %v9158_v56, %s4669_s8 }
 0x133   : > { %v5625_v49 = vpop.permute.xlu0 %854 }
 0x134   : > { %9159 = vst [vmem:[#allocation42_spill] sm:$0xff] %v5625_v49  ;;  %v5627_v43 = vpop.permute.xlu1 %856 }
 0x135   : > { %9160 = vst [vmem:[#allocation111_spill] sm:$0xff] %v5627_v43  ;;  %1016 = vrot.lane.b32.xlu0 %v9158_v56, %s4666_s30  ;;  %v9168_v43 = vld [vmem:[#allocation44_spill] sm:$0xff] }
 0x136   : > { %1110 = vrot.lane.b32.xlu1 %v4822_v16, %s4667_s6 }
 0x137   : > { %v5633_v57 = vpop.permute.xlu0 %858 }
 0x138   : > { %9161 = vst [vmem:[#allocation112_spill] sm:$0xff] %v5633_v57  ;;  %v5635_v9 = vpop.permute.xlu1 %860 }
 0x139   : > { %9162 = vst [vmem:[#allocation113_spill] sm:$0xff] %v5635_v9  ;;  %1112 = vrot.lane.b32.xlu0 %v4819_v15, %s4667_s6  ;;  %v9167_v9 = vld [vmem:[#allocation43_spill] sm:$0xff] }
 0x13a   : > { %1200 = vrot.lane.b32.xlu1 %v9127_v42, %s4668_s7 }
 0x13b   : > { %v5641_v58 = vpop.permute.xlu0 %862 }
 0x13c   : > { %9163 = vst [vmem:[#allocation114_spill] sm:$0xff] %v5641_v58  ;;  %v5643_v49 = vpop.permute.xlu1 %864 }
 0x13d   : > { %9164 = vst [vmem:[#allocation115_spill] sm:$0xff] %v5643_v49  ;;  %1202 = vrot.lane.b32.xlu0 %v9128_v59, %s4668_s7 }
 0x13e   : > { %1290 = vrot.lane.b32.xlu1 %v5137_v6, %s4669_s8 }
 0x13f   : > { %v5649_v56 = vpop.permute.xlu0 %866 }
 0x140   : > { %9165 = vst [vmem:[#allocation116_spill] sm:$0xff] %v5649_v56  ;;  %v5651_v57 = vpop.permute.xlu1 %868 }
 0x141   : > { %9166 = vst [vmem:[#allocation117_spill] sm:$0xff] %v5651_v57  ;;  %1018 = vrot.lane.b32.xlu0 %v5137_v6, %s4666_s30 }
 0x142   : > { %1292 = vrot.lane.b32.xlu1 %v9167_v9, %s4669_s8 }
 0x143   : > { %v903_v42 = vpop.permute.xlu0 %902 }
 0x144   : > { %v5657_v58 = vpop.permute.xlu1 %904 }
 0x145   : > { %1020 = vrot.lane.b32.xlu0 %v9167_v9, %s4666_s30 }
 0x146   : > { %1114 = vrot.lane.b32.xlu1 %v4848_v41, %s4667_s6 }
 0x147   : > { %v5663_v59 = vpop.permute.xlu0 %906 }
 0x148   : > { %v5665_v56 = vpop.permute.xlu1 %908 }
 0x149   : > { %1116 = vrot.lane.b32.xlu0 %v4844_v36, %s4667_s6 }
 0x14a   : > { %1204 = vrot.lane.b32.xlu1 %v9131_v31, %s4668_s7 }
 0x14b   : > { %v5671_v6 = vpop.permute.xlu0 %910 }
 0x14c   : > { %v5673_v57 = vpop.permute.xlu1 %912 }
 0x14d   : > { %1206 = vrot.lane.b32.xlu0 %v9132_v30, %s4668_s7 }
 0x14e   : > { %1294 = vrot.lane.b32.xlu1 %v5150_v19, %s4669_s8 }
 0x14f   : > { %v5679_v9 = vpop.permute.xlu0 %914 }
 0x150   : > { %v5681_v49 = vpop.permute.xlu1 %916 }
 0x151   : > { %1022 = vrot.lane.b32.xlu0 %v5150_v19, %s4666_s30 }
 0x152   : > { %1296 = vrot.lane.b32.xlu1 %v9168_v43, %s4669_s8 }
 0x153   : > { %v5687_v31 = vpop.permute.xlu0 %918 }
 0x154   : > { %v5689_v7 = vpop.permute.xlu1 %920 }
 0x155   : > { %1024 = vrot.lane.b32.xlu0 %v9168_v43, %s4666_s30 }
 0x156   : > { %1118 = vrot.lane.b32.xlu1 %v4872_v3, %s4667_s6 }
 0x157   : > { %v5695_v30 = vpop.permute.xlu0 %922 }
 0x158   : > { %v5697_v34 = vpop.permute.xlu1 %924 }
 0x159   : > { %1120 = vrot.lane.b32.xlu0 %v4869_v2, %s4667_s6  ;;  %v9170_v2 = vld [vmem:[#allocation45_spill] sm:$0xff] }
 0x15a   : > { %1208 = vrot.lane.b32.xlu1 %v9135_v54, %s4668_s7 }
 0x15b   : > { %v5703_v19 = vpop.permute.xlu0 %926 }
 0x15c   : > { %v5705_v38 = vpop.permute.xlu1 %928 }
 0x15d   : > { %1210 = vrot.lane.b32.xlu0 %v9136_v22, %s4668_s7 }
 0x15e   : > { %1298 = vrot.lane.b32.xlu1 %v5163_v46, %s4669_s8 }
 0x15f   : > { %v5711_v43 = vpop.permute.xlu0 %930 }
 0x160   : > { %v5713_v3 = vpop.permute.xlu1 %932 }
 0x161   : > { %9169 = vst [vmem:[#allocation43_spill] sm:$0xff] %v5713_v3  ;;  %1026 = vrot.lane.b32.xlu0 %v5163_v46, %s4666_s30  ;;  %v1365_v46 = vsel %vm1364_vm4, %v4717_v14, %v5256_v28  ;;  %v9172_v14 = vld [vmem:[#allocation21_spill] sm:$0xff] }
 0x162   : > { %1300 = vrot.lane.b32.xlu1 %v9170_v2, %s4669_s8 }
 0x163   : > { %v5719_v54 = vpop.permute.xlu0 %934 }
 0x164   : > { %9171 = vst [vmem:[#allocation44_spill] sm:$0xff] %v5719_v54  ;;  %v999_v60 = vpop.permute.xlu1 %998 }
 0x165   : > { %1028 = vrot.lane.b32.xlu0 %v9170_v2, %s4666_s30  ;;  %v5734_v2 = vsel %vm1395_vm5, %v1365_v46, %v5383_v29 }
 0x166   : > { %1122 = vrot.lane.b32.xlu1 %v4878_v5, %s4667_s6  ;;  %v1427_v54 = vsel %vm1426_vm6, %v5734_v2, %v5529_v27 }
 0x167   : > { %v1001_v22 = vpop.permute.xlu0 %1000  ;;  %v1460_v3 = vsel %vm1459_vm7, %v1427_v54, %v903_v42 }
 0x168   : > { %v1095_v36 = vpop.permute.xlu1 %1094  ;;  %v1493_v29 = vsel %vm1492_vm8, %v1460_v3, %v999_v60 }
 0x169   : > { %1124 = vrot.lane.b32.xlu0 %v4883_v8, %s4667_s6  ;;  %v1526_v27 = vsel %vm1525_vm9, %v1493_v29, %v1095_v36 }
 0x16a   : > { %1212 = vrot.lane.b32.xlu1 %v9139_v44, %s4668_s7  ;;  %v1366_v44 = vsel %vm1364_vm4, %v4714_v13, %v5267_v48 }
 0x16b   : > { %v1097_v5 = vpop.permute.xlu0 %1096  ;;  %v5750_v28 = vsel %vm1395_vm5, %v1366_v44, %v5386_v10  ;;  %v9173_v44 = vld [vmem:[#allocation46_spill] sm:$0xff] }
 0x16c   : > { %v1185_v8 = vpop.permute.xlu1 %1184  ;;  %v1428_v54 = vsel %vm1426_vm6, %v5750_v28, %v5531_v63 }
 0x16d   : > { %1214 = vrot.lane.b32.xlu0 %v9172_v14, %s4668_s7  ;;  %v1559_v13 = vsel %vm1558_vm10, %v1526_v27, %v1185_v8  ;;  %v1461_v3 = vsel %vm1459_vm7, %v1428_v54, %v5657_v58 }
 0x16e   : > { %1302 = vrot.lane.b32.xlu1 %v5176_v4, %s4669_s8  ;;  %v1494_v10 = vsel %vm1492_vm8, %v1461_v3, %v1001_v22 }
 0x16f   : > { %v1187_v42 = vpop.permute.xlu0 %1186  ;;  %v1527_v36 = vsel %vm1525_vm9, %v1494_v10, %v1097_v5  ;;  %v1367_v5 = vsel %vm1364_vm4, %v4726_v21, %v5261_v12  ;;  %v1368_v21 = vsel %vm1364_vm4, %v4723_v20, %v5269_v35  ;;  %v9175_v10 = vld [vmem:[#allocation25_spill] sm:$0xff] }
 0x170   : > { %v1275_v48 = vpop.permute.xlu1 %1274  ;;  %v1560_v8 = vsel %vm1558_vm10, %v1527_v36, %v1187_v42 }
 0x171   : > { %936 = vrot.lane.b32.xlu0 %v9172_v14, %s4665_s21  ;;  %v1592_v60 = vsel %vm1591_vm11, %v1559_v13, %v1275_v48  ;;  %v1398_v14 = vsel %vm1395_vm5, %v1367_v5, %v5395_v55  ;;  %v9174_v13 = vld [vmem:[#allocation22_spill] sm:$0xff]  ;;  %v1399_v55 = vsel %vm1395_vm5, %v1368_v21, %v5402_v0 }
 0x172   : > { %1030 = vrot.lane.b32.xlu1 %v5176_v4, %s4666_s30  ;;  %4480 = vmatprep.mubr.msk.f32.mxu0 %vm1624_vm12, %v1592_v60  ;;  %v1429_v27 = vsel %vm1426_vm6, %v1398_v14, %v5537_v37 }
 0x173   : > { %v1003_v63 = vpop.permute.xlu0 %1002  ;;  %v1462_v54 = vsel %vm1459_vm7, %v1429_v27, %v5663_v59  ;;  %v1430_v59 = vsel %vm1426_vm6, %v1399_v55, %v5539_v18  ;;  %v9178_v27 = vld [vmem:[#allocation19_spill] sm:$0xff] }
 0x174   : > { %v1277_v46 = vpop.permute.xlu1 %1276  ;;  %v1495_v12 = vsel %vm1492_vm8, %v1462_v54, %v1003_v63  ;;  %v1463_v20 = vsel %vm1459_vm7, %v1430_v59, %v5665_v56  ;;  %v9180_v59 = vld [vmem:[#allocation27_spill] sm:$0xff] }
 0x175   : > { %v1593_v58 = vsel %vm1591_vm11, %v1560_v8, %v1277_v46  ;;  %1304 = vrot.lane.b32.xlu0 %v9173_v44, %s4669_s8 }
 0x176   : > { %1032 = vrot.lane.b32.xlu1 %v9173_v44, %s4666_s30  ;;  %4481 = vmatmul.mubr.msk.f32.vlgmr.msra.gmra.mrb[0].mxu0 %vm1624_vm12, %v1593_v58  ;;  %v9176_v44 = vld [vmem:[#allocation47_spill] sm:$0xff] }
 0x177   : > { %v1005_v22 = vpop.permute.xlu0 %1004 }
 0x178   : > { %v1099_v4 = vpop.permute.xlu1 %1098  ;;  %v1496_v36 = vsel %vm1492_vm8, %v1463_v20, %v1005_v22 }
 0x179   : > { %1126 = vrot.lane.b32.xlu0 %v4909_v47, %s4667_s6  ;;  %v1528_v37 = vsel %vm1525_vm9, %v1495_v12, %v1099_v4  ;;  %v1431_v4 = vsel %vm1426_vm6, %v5734_v2, %v5545_v1  ;;  %v9179_v12 = vld [vmem:[#allocation26_spill] sm:$0xff] }
 0x17a   : > { %1128 = vrot.lane.b32.xlu1 %v4906_v45, %s4667_s6  ;;  %v1464_v14 = vsel %vm1459_vm7, %v1431_v4, %v5671_v6 }
 0x17b   : > { %v1101_v29 = vpop.permute.xlu0 %1100 }
 0x17c   : > { %v1189_v42 = vpop.permute.xlu1 %1188  ;;  %v1529_v0 = vsel %vm1525_vm9, %v1496_v36, %v1101_v29  ;;  %v9183_v36 = vld [vmem:[#allocation87_spill] sm:$0xff] }
 0x17d   : > { %1216 = vrot.lane.b32.xlu0 %v9174_v13, %s4668_s7  ;;  %v1561_v3 = vsel %vm1558_vm10, %v1528_v37, %v1189_v42 }
 0x17e   : > { %938 = vrot.lane.b32.xlu1 %v9174_v13, %s4665_s21  ;;  %v1432_v13 = vsel %vm1426_vm6, %v5750_v28, %v5547_v24 }
 0x17f   : > { %v1191_v48 = vpop.permute.xlu0 %1190  ;;  %v1465_v6 = vsel %vm1459_vm7, %v1432_v13, %v5673_v57 }
 0x180   : > { %v1279_v60 = vpop.permute.xlu1 %1278  ;;  %v1562_v63 = vsel %vm1558_vm10, %v1529_v0, %v1191_v48 }
 0x181   : > { %v1594_v35 = vsel %vm1591_vm11, %v1561_v3, %v1279_v60  ;;  %1218 = vrot.lane.b32.xlu0 %v9175_v10, %s4668_s7  ;;  %v9181_v3 = vld [vmem:[#allocation48_spill] sm:$0xff] }
 0x182   : > { %1306 = vrot.lane.b32.xlu1 %v5189_v40, %s4669_s8  ;;  %4483 = vmatprep.mubr.msk.f32.mxu0 %vm1624_vm12, %v1594_v35  ;;  %v9182_v35 = vld [vmem:[#allocation58_spill] sm:$0xff] }
 0x183   : > { %v1007_v18 = vpop.permute.xlu0 %1006 }
 0x184   : > { %v1281_v8 = vpop.permute.xlu1 %1280  ;;  %v1497_v29 = vsel %vm1492_vm8, %v1464_v14, %v1007_v18 }
 0x185   : > { %v1595_v56 = vsel %vm1591_vm11, %v1562_v63, %v1281_v8  ;;  %940 = vrot.lane.b32.xlu0 %v9175_v10, %s4665_s21  ;;  %v1369_v10 = vsel %vm1364_vm4, %v4749_v33, %v9182_v35 }
 0x186   : > { %1034 = vrot.lane.b32.xlu1 %v5189_v40, %s4666_s30  ;;  %4484 = vmatmul.mubr.msk.f32.gmra.mrb[2].mxu0 %vm1624_vm12, %v1595_v56  ;;  %v9177_v40 = vld [vmem:[#allocation20_spill] sm:$0xff]  ;;  %v1400_v0 = vsel %vm1395_vm5, %v1369_v10, %v9183_v36  ;;  %v9194_v36 = vld [vmem:[#allocation61_spill] sm:$0xff] }
 0x187   : > { %v1009_v46 = vpop.permute.xlu0 %1008  ;;  %v1433_v63 = vsel %vm1426_vm6, %v1400_v0, %v5553_v53 }
 0x188   : > { %v1103_v58 = vpop.permute.xlu1 %1102  ;;  %v1498_v55 = vsel %vm1492_vm8, %v1465_v6, %v1009_v46  ;;  %v1466_v56 = vsel %vm1459_vm7, %v1433_v63, %v5679_v9  ;;  %v9184_v46 = vld [vmem:[#allocation49_spill] sm:$0xff] }
 0x189   : > { %1308 = vrot.lane.b32.xlu0 %v9176_v44, %s4669_s8  ;;  %v1530_v42 = vsel %vm1525_vm9, %v1497_v29, %v1103_v58  ;;  %v9185_v58 = vld [vmem:[#allocation59_spill] sm:$0xff] }
 0x18a   : > { %1036 = vrot.lane.b32.xlu1 %v9176_v44, %s4666_s30  ;;  %v1370_v33 = vsel %vm1364_vm4, %v4761_v39, %v9185_v58 }
 0x18b   : > { %v1105_v22 = vpop.permute.xlu0 %1104 }
 0x18c   : > { %v1193_v5 = vpop.permute.xlu1 %1192  ;;  %v1531_v24 = vsel %vm1525_vm9, %v1498_v55, %v1105_v22  ;;  %v9186_v22 = vld [vmem:[#allocation88_spill] sm:$0xff] }
 0x18d   : > { %1130 = vrot.lane.b32.xlu0 %v9177_v40, %s4667_s6  ;;  %v1563_v1 = vsel %vm1558_vm10, %v1530_v42, %v1193_v5  ;;  %v1401_v4 = vsel %vm1395_vm5, %v1370_v33, %v9186_v22  ;;  %v9196_v33 = vld [vmem:[#allocation51_spill] sm:$0xff] }
 0x18e   : > { %1132 = vrot.lane.b32.xlu1 %v9178_v27, %s4667_s6  ;;  %v1434_v9 = vsel %vm1426_vm6, %v1401_v4, %v5555_v17 }
 0x18f   : > { %v1195_v54 = vpop.permute.xlu0 %1194  ;;  %v1467_v39 = vsel %vm1459_vm7, %v1434_v9, %v5681_v49  ;;  %v9198_v9 = vld [vmem:[#allocation28_spill] sm:$0xff] }
 0x190   : > { %v1283_v2 = vpop.permute.xlu1 %1282  ;;  %v1564_v37 = vsel %vm1558_vm10, %v1531_v24, %v1195_v54  ;;  %v9187_v54 = vld [vmem:[#allocation24_spill] sm:$0xff] }
 0x191   : > { %v1596_v21 = vsel %vm1591_vm11, %v1563_v1, %v1283_v2  ;;  %1220 = vrot.lane.b32.xlu0 %v9179_v12, %s4668_s7  ;;  %v9188_v1 = vld [vmem:[#allocation23_spill] sm:$0xff] }
 0x192   : > { %942 = vrot.lane.b32.xlu1 %v9179_v12, %s4665_s21  ;;  %4486 = vmatprep.mubr.msk.f32.mxu0 %vm1624_vm12, %v1596_v21  ;;  %v9189_v12 = vld [vmem:[#allocation30_spill] sm:$0xff] }
 0x193   : > { %v1011_v28 = vpop.permute.xlu0 %1010 }
 0x194   : > { %v1285_v48 = vpop.permute.xlu1 %1284  ;;  %v1499_v44 = vsel %vm1492_vm8, %v1466_v56, %v1011_v28  ;;  %v9190_v28 = vld [vmem:[#allocation31_spill] sm:$0xff] }
 0x195   : > { %v1597_v57 = vsel %vm1591_vm11, %v1564_v37, %v1285_v48  ;;  %1222 = vrot.lane.b32.xlu0 %v9180_v59, %s4668_s7  ;;  %v9191_v37 = vld [vmem:[#allocation60_spill] sm:$0xff] }
 0x196   : > { %1310 = vrot.lane.b32.xlu1 %v9181_v3, %s4669_s8  ;;  %4487 = vmatmul.mubr.msk.f32.gmra.mrb[4].mxu0 %vm1624_vm12, %v1597_v57  ;;  %v1371_v48 = vsel %vm1364_vm4, %v4779_v52, %v9191_v37  ;;  %v9192_v57 = vld [vmem:[#allocation50_spill] sm:$0xff]  ;;  %v1372_v52 = vsel %vm1364_vm4, %v4776_v51, %v9194_v36  ;;  %v9204_v37 = vld [vmem:[#allocation52_spill] sm:$0xff] }
 0x197   : > { %v1013_v60 = vpop.permute.xlu0 %1012 }
 0x198   : > { %v1107_v20 = vpop.permute.xlu1 %1106  ;;  %v1500_v13 = vsel %vm1492_vm8, %v1467_v39, %v1013_v60  ;;  %v9199_v39 = vld [vmem:[#allocation34_spill] sm:$0xff] }
 0x199   : > { %944 = vrot.lane.b32.xlu0 %v9180_v59, %s4665_s21  ;;  %v1532_v53 = vsel %vm1525_vm9, %v1499_v44, %v1107_v20  ;;  %v9193_v59 = vld [vmem:[#allocation89_spill] sm:$0xff] }
 0x19a   : > { %1038 = vrot.lane.b32.xlu1 %v9181_v3, %s4666_s30  ;;  %v1402_v3 = vsel %vm1395_vm5, %v1371_v48, %v9193_v59  ;;  %v9205_v48 = vld [vmem:[#allocation92_spill] sm:$0xff] }
 0x19b   : > { %v1109_v18 = vpop.permute.xlu0 %1108  ;;  %v1435_v20 = vsel %vm1426_vm6, %v1402_v3, %v5561_v50 }
 0x19c   : > { %v1197_v8 = vpop.permute.xlu1 %1196  ;;  %v1533_v17 = vsel %vm1525_vm9, %v1500_v13, %v1109_v18  ;;  %v1468_v10 = vsel %vm1459_vm7, %v1435_v20, %v5687_v31  ;;  %v9195_v18 = vld [vmem:[#allocation90_spill] sm:$0xff] }
 0x19d   : > { %1312 = vrot.lane.b32.xlu0 %v9184_v46, %s4669_s8  ;;  %v1565_v14 = vsel %vm1558_vm10, %v1532_v53, %v1197_v8  ;;  %v1403_v63 = vsel %vm1395_vm5, %v1372_v52, %v9195_v18 }
 0x19e   : > { %1040 = vrot.lane.b32.xlu1 %v9184_v46, %s4666_s30  ;;  %v1436_v31 = vsel %vm1426_vm6, %v1403_v63, %v5563_v25 }
 0x19f   : > { %v1199_v5 = vpop.permute.xlu0 %1198  ;;  %v1469_v51 = vsel %vm1459_vm7, %v1436_v31, %v5689_v7 }
 0x1a0   : > { %v1287_v29 = vpop.permute.xlu1 %1286  ;;  %v1566_v6 = vsel %vm1558_vm10, %v1533_v17, %v1199_v5  ;;  %v9197_v5 = vld [vmem:[#allocation29_spill] sm:$0xff]  ;;  %v9201_v17 = vld [vmem:[#allocation91_spill] sm:$0xff] }
 0x1a1   : > { %v1598_v42 = vsel %vm1591_vm11, %v1565_v14, %v1287_v29  ;;  %1134 = vrot.lane.b32.xlu0 %v9187_v54, %s4667_s6 }
 0x1a2   : > { %1136 = vrot.lane.b32.xlu1 %v9188_v1, %s4667_s6  ;;  %4489 = vmatprep.mubr.msk.f32.mxu0 %vm1624_vm12, %v1598_v42  ;;  %v9200_v42 = vld [vmem:[#allocation62_spill] sm:$0xff] }
 0x1a3   : > { %v1015_v2 = vpop.permute.xlu0 %1014  ;;  %v1373_v13 = vsel %vm1364_vm4, %v4798_v62, %v9200_v42 }
 0x1a4   : > { %v1289_v21 = vpop.permute.xlu1 %1288  ;;  %v1501_v0 = vsel %vm1492_vm8, %v1468_v10, %v1015_v2  ;;  %v1404_v2 = vsel %vm1395_vm5, %v1373_v13, %v9201_v17  ;;  %v9214_v17 = vld [vmem:[#allocation39_spill] sm:$0xff] }
 0x1a5   : > { %v1599_v49 = vsel %vm1591_vm11, %v1566_v6, %v1289_v21  ;;  %1224 = vrot.lane.b32.xlu0 %v9189_v12, %s4668_s7  ;;  %v1437_v21 = vsel %vm1426_vm6, %v1404_v2, %v5569_v32 }
 0x1a6   : > { %946 = vrot.lane.b32.xlu1 %v9189_v12, %s4665_s21  ;;  %4490 = vmatmul.mubr.msk.f32.gmra.mrb[6].mxu0 %vm1624_vm12, %v1599_v49  ;;  %v1470_v12 = vsel %vm1459_vm7, %v1437_v21, %v5695_v30 }
 0x1a7   : > { %v1017_v55 = vpop.permute.xlu0 %1016 }
 0x1a8   : > { %v1111_v24 = vpop.permute.xlu1 %1110  ;;  %v1502_v44 = vsel %vm1492_vm8, %v1469_v51, %v1017_v55  ;;  %v9202_v55 = vld [vmem:[#allocation35_spill] sm:$0xff] }
 0x1a9   : > { %1226 = vrot.lane.b32.xlu0 %v9190_v28, %s4668_s7  ;;  %v1534_v50 = vsel %vm1525_vm9, %v1501_v0, %v1111_v24  ;;  %v9203_v24 = vld [vmem:[#allocation63_spill] sm:$0xff]  ;;  %v9206_v0 = vld [vmem:[#allocation53_spill] sm:$0xff] }
 0x1aa   : > { %1314 = vrot.lane.b32.xlu1 %v9192_v57, %s4669_s8  ;;  %v1374_v62 = vsel %vm1364_vm4, %v4795_v61, %v9203_v24 }
 0x1ab   : > { %v1113_v60 = vpop.permute.xlu0 %1112 }
 0x1ac   : > { %v1201_v35 = vpop.permute.xlu1 %1200  ;;  %v1535_v25 = vsel %vm1525_vm9, %v1502_v44, %v1113_v60 }
 0x1ad   : > { %948 = vrot.lane.b32.xlu0 %v9190_v28, %s4665_s21  ;;  %v1567_v56 = vsel %vm1558_vm10, %v1534_v50, %v1201_v35  ;;  %v9207_v50 = vld [vmem:[#allocation33_spill] sm:$0xff] }
 0x1ae   : > { %1042 = vrot.lane.b32.xlu1 %v9192_v57, %s4666_s30  ;;  %v1405_v57 = vsel %vm1395_vm5, %v1374_v62, %v9205_v48  ;;  %v9216_v62 = vld [vmem:[#allocation55_spill] sm:$0xff] }
 0x1af   : > { %v1203_v8 = vpop.permute.xlu0 %1202  ;;  %v1438_v30 = vsel %vm1426_vm6, %v1405_v57, %v5571_v11  ;;  %v9218_v48 = vld [vmem:[#allocation3_spill] sm:$0xff] }
 0x1b0   : > { %v1291_v46 = vpop.permute.xlu1 %1290  ;;  %v1568_v4 = vsel %vm1558_vm10, %v1535_v25, %v1203_v8  ;;  %v1471_v61 = vsel %vm1459_vm7, %v1438_v30, %v5697_v34  ;;  %v9208_v8 = vld [vmem:[#allocation64_spill] sm:$0xff] }
 0x1b1   : > { %v1600_v58 = vsel %vm1591_vm11, %v1567_v56, %v1291_v46  ;;  %1316 = vrot.lane.b32.xlu0 %v9196_v33, %s4669_s8  ;;  %v1375_v31 = vsel %vm1364_vm4, %v4822_v16, %v9208_v8  ;;  %v9209_v56 = vld [vmem:[#allocation32_spill] sm:$0xff]  ;;  %v9210_v46 = vld [vmem:[#allocation2_spill] sm:$0xff] }
 0x1b2   : > { %1044 = vrot.lane.b32.xlu1 %v9196_v33, %s4666_s30  ;;  %4492 = vmatprep.mubr.msk.f32.mxu0 %vm1624_vm12, %v1600_v58  ;;  %v1406_v51 = vsel %vm1395_vm5, %v1375_v31, %v9210_v46  ;;  %v9226_v31 = vld [vmem:[#allocation102_spill] sm:$0xff] }
 0x1b3   : > { %v1019_v22 = vpop.permute.xlu0 %1018  ;;  %v1439_v33 = vsel %vm1426_vm6, %v1406_v51, %v5577_v26 }
 0x1b4   : > { %v1293_v53 = vpop.permute.xlu1 %1292  ;;  %v1503_v28 = vsel %vm1492_vm8, %v1470_v12, %v1019_v22  ;;  %v1472_v25 = vsel %vm1459_vm7, %v1439_v33, %v5703_v19  ;;  %v9211_v22 = vld [vmem:[#allocation38_spill] sm:$0xff] }
 0x1b5   : > { %v1601_v7 = vsel %vm1591_vm11, %v1568_v4, %v1293_v53  ;;  %1138 = vrot.lane.b32.xlu0 %v9197_v5, %s4667_s6  ;;  %v9212_v4 = vld [vmem:[#allocation65_spill] sm:$0xff] }
 0x1b6   : > { %1140 = vrot.lane.b32.xlu1 %v9198_v9, %s4667_s6  ;;  %4493 = vmatmul.mubr.msk.f32.gmra.mrb[8].mxu0 %vm1624_vm12, %v1601_v7  ;;  %v1376_v16 = vsel %vm1364_vm4, %v4819_v15, %v9212_v4  ;;  %v9213_v7 = vld [vmem:[#allocation93_spill] sm:$0xff] }
 0x1b7   : > { %v1021_v14 = vpop.permute.xlu0 %1020 }
 0x1b8   : > { %v1115_v29 = vpop.permute.xlu1 %1114  ;;  %v1504_v35 = vsel %vm1492_vm8, %v1471_v61, %v1021_v14  ;;  %v1407_v14 = vsel %vm1395_vm5, %v1376_v16, %v9213_v7  ;;  %v9220_v61 = vld [vmem:[#allocation37_spill] sm:$0xff]  ;;  %v9229_v16 = vld [vmem:[#allocation56_spill] sm:$0xff] }
 0x1b9   : > { %1228 = vrot.lane.b32.xlu0 %v9199_v39, %s4668_s7  ;;  %v1536_v32 = vsel %vm1525_vm9, %v1503_v28, %v1115_v29  ;;  %v1440_v19 = vsel %vm1426_vm6, %v1407_v14, %v5579_v23  ;;  %v9217_v28 = vld [vmem:[#allocation66_spill] sm:$0xff] }
 0x1ba   : > { %950 = vrot.lane.b32.xlu1 %v9199_v39, %s4665_s21  ;;  %v1473_v15 = vsel %vm1459_vm7, %v1440_v19, %v5705_v38 }
 0x1bb   : > { %v1117_v6 = vpop.permute.xlu0 %1116 }
 0x1bc   : > { %v1205_v49 = vpop.permute.xlu1 %1204  ;;  %v1537_v11 = vsel %vm1525_vm9, %v1504_v35, %v1117_v6  ;;  %v9215_v6 = vld [vmem:[#allocation54_spill] sm:$0xff] }
 0x1bd   : > { %1230 = vrot.lane.b32.xlu0 %v9202_v55, %s4668_s7  ;;  %v1569_v3 = vsel %vm1558_vm10, %v1536_v32, %v1205_v49 }
 0x1be   : > { %1318 = vrot.lane.b32.xlu1 %v9204_v37, %s4669_s8 }
 0x1bf   : > { %v1207_v59 = vpop.permute.xlu0 %1206 }
 0x1c0   : > { %v1295_v60 = vpop.permute.xlu1 %1294  ;;  %v1570_v36 = vsel %vm1558_vm10, %v1537_v11, %v1207_v59  ;;  %v9219_v59 = vld [vmem:[#allocation101_spill] sm:$0xff] }
 0x1c1   : > { %v1602_v20 = vsel %vm1591_vm11, %v1569_v3, %v1295_v60  ;;  %952 = vrot.lane.b32.xlu0 %v9202_v55, %s4665_s21 }
 0x1c2   : > { %1046 = vrot.lane.b32.xlu1 %v9204_v37, %s4666_s30  ;;  %4495 = vmatprep.mubr.msk.f32.mxu0 %vm1624_vm12, %v1602_v20  ;;  %v1377_v37 = vsel %vm1364_vm4, %v4848_v41, %v9217_v28  ;;  %v9221_v41 = vld [vmem:[#allocation36_spill] sm:$0xff]  ;;  %v9238_v28 = vld [vmem:[#allocation103_spill] sm:$0xff] }
 0x1c3   : > { %v1023_v10 = vpop.permute.xlu0 %1022  ;;  %v1408_v57 = vsel %vm1395_vm5, %v1377_v37, %v9218_v48 }
 0x1c4   : > { %v1297_v52 = vpop.permute.xlu1 %1296  ;;  %v1505_v53 = vsel %vm1492_vm8, %v1472_v25, %v1023_v10  ;;  %v1441_v30 = vsel %vm1426_vm6, %v1408_v57, %v9219_v59  ;;  %v9239_v57 = vld [vmem:[#allocation44_spill] sm:$0xff] }
 0x1c5   : > { %v1603_v34 = vsel %vm1591_vm11, %v1570_v36, %v1297_v52  ;;  %1320 = vrot.lane.b32.xlu0 %v9206_v0, %s4669_s8  ;;  %v1474_v60 = vsel %vm1459_vm7, %v1441_v30, %v5711_v43  ;;  %v9222_v52 = vld [vmem:[#allocation67_spill] sm:$0xff] }
 0x1c6   : > { %1048 = vrot.lane.b32.xlu1 %v9206_v0, %s4666_s30  ;;  %4496 = vmatmul.mubr.msk.f32.gmra.mrb[10].mxu0 %vm1624_vm12, %v1603_v34  ;;  %v9223_v34 = vld [vmem:[#allocation7_spill] sm:$0xff] }
 0x1c7   : > { %v1025_v18 = vpop.permute.xlu0 %1024  ;;  %v1378_v0 = vsel %vm1364_vm4, %v9223_v34, %v9222_v52  ;;  %v9240_v52 = vld [vmem:[#allocation69_spill] sm:$0xff]  ;;  %v9241_v34 = vld [vmem:[#allocation10_spill] sm:$0xff] }
 0x1c8   : > { %v1119_v63 = vpop.permute.xlu1 %1118  ;;  %v1506_v2 = vsel %vm1492_vm8, %v1473_v15, %v1025_v18  ;;  %v9224_v18 = vld [vmem:[#allocation40_spill] sm:$0xff]  ;;  %v9231_v15 = vld [vmem:[#allocation57_spill] sm:$0xff] }
 0x1c9   : > { %1142 = vrot.lane.b32.xlu0 %v9207_v50, %s4667_s6  ;;  %v1538_v26 = vsel %vm1525_vm9, %v1505_v53, %v1119_v63  ;;  %v9225_v63 = vld [vmem:[#allocation4_spill] sm:$0xff] }
 0x1ca   : > { %1144 = vrot.lane.b32.xlu1 %v9209_v56, %s4667_s6  ;;  %v1409_v8 = vsel %vm1395_vm5, %v1378_v0, %v9225_v63  ;;  %v1380_v0 = vsel %vm1364_vm4, %v9241_v34, %v9240_v52 }
 0x1cb   : > { %v1121_v58 = vpop.permute.xlu0 %1120  ;;  %v1442_v46 = vsel %vm1426_vm6, %v1409_v8, %v9226_v31  ;;  %v9243_v31 = vld [vmem:[#allocation104_spill] sm:$0xff] }
 0x1cc   : > { %v1209_v44 = vpop.permute.xlu1 %1208  ;;  %v1539_v23 = vsel %vm1525_vm9, %v1506_v2, %v1121_v58  ;;  %v9227_v58 = vld [vmem:[#allocation43_spill] sm:$0xff] }
 0x1cd   : > { %1232 = vrot.lane.b32.xlu0 %v9211_v22, %s4668_s7  ;;  %v1571_v39 = vsel %vm1558_vm10, %v1538_v26, %v1209_v44  ;;  %v1475_v33 = vsel %vm1459_vm7, %v1442_v46, %v9227_v58 }
 0x1ce   : > { %954 = vrot.lane.b32.xlu1 %v9211_v22, %s4665_s21  ;;  %v9228_v22 = vld [vmem:[#allocation41_spill] sm:$0xff] }
 0x1cf   : > { %v1211_v29 = vpop.permute.xlu0 %1210 }
 0x1d0   : > { %v1299_v42 = vpop.permute.xlu1 %1298  ;;  %v1572_v49 = vsel %vm1558_vm10, %v1539_v23, %v1211_v29  ;;  %v9230_v29 = vld [vmem:[#allocation84_spill] sm:$0xff] }
 0x1d1   : > { %v1604_v13 = vsel %vm1591_vm11, %v1571_v39, %v1299_v42  ;;  %1234 = vrot.lane.b32.xlu0 %v9214_v17, %s4668_s7  ;;  %v383_v19 = vrot.slane %v9230_v29, 5 }
 0x1d2   : > { %1322 = vrot.lane.b32.xlu1 %v9215_v6, %s4669_s8  ;;  %4498 = vmatprep.mubr.msk.f32.mxu0 %vm1624_vm12, %v1604_v13  ;;  %v9232_v13 = vld [vmem:[#allocation68_spill] sm:$0xff] }
 0x1d3   : > { %v1027_v21 = vpop.permute.xlu0 %1026 }
 0x1d4   : > { %v1301_v12 = vpop.permute.xlu1 %1300  ;;  %v1507_v20 = vsel %vm1492_vm8, %v1474_v60, %v1027_v21  ;;  %v9235_v21 = vld [vmem:[#allocation86_spill] sm:$0xff] }
 0x1d5   : > { %v1605_v38 = vsel %vm1591_vm11, %v1572_v49, %v1301_v12  ;;  %956 = vrot.lane.b32.xlu0 %v9214_v17, %s4665_s21  ;;  %v9233_v17 = vld [vmem:[#allocation11_spill] sm:$0xff]  ;;  %v617_v49 = vrot.slane %v9235_v21, 1  ;;  %v9236_v12 = vld [vmem:[#allocation5_spill] sm:$0xff] }
 0x1d6   : > { %1050 = vrot.lane.b32.xlu1 %v9215_v6, %s4666_s30  ;;  %4499 = vmatmul.mubr.msk.f32.gmra.mrb[12].mxu0 %vm1624_vm12, %v1605_v38  ;;  %v1379_v2 = vsel %vm1364_vm4, %v9233_v17, %v9232_v13  ;;  %v9234_v6 = vld [vmem:[#allocation85_spill] sm:$0xff]  ;;  %v9246_v13 = vld [vmem:[#allocation8_spill] sm:$0xff] }
 0x1d7   : > { %v1029_v55 = vpop.permute.xlu0 %1028  ;;  %v616_v23 = vrot.slane %v9234_v6, 1  ;;  %v1410_v38 = vsel %vm1395_vm5, %v1379_v2, %v9236_v12  ;;  %v621_v60 = vrot.slane %v9234_v6, 2 }
 0x1d8   : > { %v1123_v24 = vpop.permute.xlu1 %1122  ;;  %v1508_v25 = vsel %vm1492_vm8, %v1475_v33, %v1029_v55  ;;  %v1443_v37 = vsel %vm1426_vm6, %v1410_v38, %v9238_v28  ;;  %v9248_v28 = vld [vmem:[#allocation71_spill] sm:$0xff] }
 0x1d9   : > { %1324 = vrot.lane.b32.xlu0 %v9216_v62, %s4669_s8  ;;  %v1540_v35 = vsel %vm1525_vm9, %v1507_v20, %v1123_v24  ;;  %v9237_v24 = vrot.slane %v9230_v29, 7  ;;  %v618_v30 = vsel %vm462_vm1, %v616_v23, %v617_v49  ;;  %v622_v20 = vrot.slane %v9235_v21, 2 }
 0x1da   : > { %1052 = vrot.lane.b32.xlu1 %v9216_v62, %s4666_s30 }
 0x1db   : > { %v1125_v32 = vpop.permute.xlu0 %1124  ;;  %v431_v62 = vsel %vm272_vm0, %v9237_v24, %v383_v19  ;;  %v623_v33 = vsel %vm538_vm2, %v621_v60, %v622_v20 }
 0x1dc   : > { %v1213_v3 = vpop.permute.xlu1 %1212  ;;  %v1541_v4 = vsel %vm1525_vm9, %v1508_v25, %v1125_v32  ;;  %v1476_v32 = vsel %vm1459_vm7, %v1443_v37, %v9239_v57  ;;  %v9249_v37 = vld [vmem:[#allocation13_spill] sm:$0xff] }
 0x1dd   : > { %1146 = vrot.lane.b32.xlu0 %v9220_v61, %s4667_s6  ;;  %v1573_v10 = vsel %vm1558_vm10, %v1540_v35, %v1213_v3  ;;  %v619_v3 = vrot.slane %v431_v62, 1  ;;  %v1382_v57 = vsel %vm1364_vm4, %v9249_v37, %v9248_v28 }
 0x1de   : > { %1148 = vrot.lane.b32.xlu1 %v9221_v41, %s4667_s6 }
 0x1df   : > { %v1215_v11 = vpop.permute.xlu0 %1214  ;;  %v620_v8 = vsel %vm462_vm1, %v617_v49, %v619_v3 }
 0x1e0   : > { %v1303_v36 = vpop.permute.xlu1 %1302  ;;  %v1574_v53 = vsel %vm1558_vm10, %v1541_v4, %v1215_v11 }
 0x1e1   : > { %v1606_v43 = vsel %vm1591_vm11, %v1573_v10, %v1303_v36  ;;  %1236 = vrot.lane.b32.xlu0 %v9224_v18, %s4668_s7 }
 0x1e2   : > { %958 = vrot.lane.b32.xlu1 %v9224_v18, %s4665_s21  ;;  %4501 = vmatprep.mubr.msk.f32.mxu0 %vm1624_vm12, %v1606_v43  ;;  %v9242_v18 = vld [vmem:[#allocation6_spill] sm:$0xff] }
 0x1e3   : > { %v937_v51 = vpop.permute.xlu0 %936  ;;  %v1411_v63 = vsel %vm1395_vm5, %v1380_v0, %v9242_v18 }
 0x1e4   : > { %v1031_v44 = vpop.permute.xlu1 %1030  ;;  %v1444_v46 = vsel %vm1426_vm6, %v1411_v63, %v9243_v31  ;;  %v9252_v63 = vld [vmem:[#allocation72_spill] sm:$0xff]  ;;  %v9253_v31 = vld [vmem:[#allocation14_spill] sm:$0xff] }
 0x1e5   : > { %1238 = vrot.lane.b32.xlu0 %v9228_v22, %s4668_s7  ;;  %v1509_v59 = vsel %vm1492_vm8, %v1476_v32, %v1031_v44  ;;  %v1477_v44 = vsel %vm1459_vm7, %v1444_v46, %v937_v51 }
 0x1e6   : > { %1326 = vrot.lane.b32.xlu1 %v9229_v16, %s4669_s8 }
 0x1e7   : > { %v1305_v7 = vpop.permute.xlu0 %1304 }
 0x1e8   : > { %v1607_v14 = vsel %vm1591_vm11, %v1574_v53, %v1305_v7  ;;  %v1033_v26 = vpop.permute.xlu1 %1032 }
 0x1e9   : > { %960 = vrot.lane.b32.xlu0 %v9228_v22, %s4665_s21  ;;  %4502 = vmatmul.mubr.msk.f32.gmra.mrb[14].mxu0 %vm1624_vm12, %v1607_v14  ;;  %v1510_v22 = vsel %vm1492_vm8, %v1477_v44, %v1033_v26 }
 0x1ea   : > { %1054 = vrot.lane.b32.xlu1 %v9229_v16, %s4666_s30  ;;  %v624_v16 = vrot.slane %v431_v62, 2 }
 0x1eb   : > { %v1127_v39 = vpop.permute.xlu0 %1126 }
 0x1ec   : > { %v1129_v42 = vpop.permute.xlu1 %1128  ;;  %v1542_v35 = vsel %vm1525_vm9, %v1509_v59, %v1127_v39  ;;  %v625_v51 = vsel %vm538_vm2, %v622_v20, %v624_v16  ;;  %v9244_v39 = vld [vmem:[#allocation70_spill] sm:$0xff]  ;;  %v9250_v59 = vld [vmem:[#allocation9_spill] sm:$0xff] }
 0x1ed   : > { %1328 = vrot.lane.b32.xlu0 %v9231_v15, %s4669_s8  ;;  %v1543_v4 = vsel %vm1525_vm9, %v1510_v22, %v1129_v42  ;;  %v9245_v42 = vld [vmem:[#allocation12_spill] sm:$0xff] }
 0x1ee   : > { %1056 = vrot.lane.b32.xlu1 %v9231_v15, %s4666_s30  ;;  %v1381_v15 = vsel %vm1364_vm4, %v9245_v42, %v9244_v39  ;;  %v9257_v39 = vld [vmem:[#allocation108_spill] sm:$0xff] }
 0x1ef   : > { %v1217_v55 = vpop.permute.xlu0 %1216  ;;  %v1412_v17 = vsel %vm1395_vm5, %v1381_v15, %v9246_v13 }
 0x1f0   : > { %v939_v48 = vpop.permute.xlu1 %938  ;;  %v1575_v10 = vsel %vm1558_vm10, %v1542_v35, %v1217_v55 }
 0x1f1   : > { %1150 = vrot.lane.b32.xlu0 %v9234_v6, %s4667_s6  ;;  %v9247_v6 = vld [vmem:[#allocation105_spill] sm:$0xff] }
 0x1f2   : > { %1152 = vrot.lane.b32.xlu1 %v9235_v21, %s4667_s6  ;;  %v1445_v23 = vsel %vm1426_vm6, %v1412_v17, %v9247_v6 }
 0x1f3   : > { %v1219_v11 = vpop.permute.xlu0 %1218  ;;  %v1478_v49 = vsel %vm1459_vm7, %v1445_v23, %v939_v48  ;;  %v9251_v48 = vld [vmem:[#allocation106_spill] sm:$0xff] }
 0x1f4   : > { %v1307_v36 = vpop.permute.xlu1 %1306  ;;  %v1576_v53 = vsel %vm1558_vm10, %v1543_v4, %v1219_v11 }
 0x1f5   : > { %v1608_v43 = vsel %vm1591_vm11, %v1575_v10, %v1307_v36  ;;  %1240 = vrot.lane.b32.xlu0 %v618_v30, %s4668_s7 }
 0x1f6   : > { %962 = vrot.lane.b32.xlu1 %v618_v30, %s4665_s21  ;;  %4504 = vmatprep.mubr.msk.f32.mxu0 %vm1624_vm12, %v1608_v43  ;;  %v1413_v30 = vsel %vm1395_vm5, %v1382_v57, %v9250_v59  ;;  %v9260_v57 = vld [vmem:[#allocation109_spill] sm:$0xff] }
 0x1f7   : > { %v941_v58 = vpop.permute.xlu0 %940  ;;  %v1446_v3 = vsel %vm1426_vm6, %v1413_v30, %v9251_v48 }
 0x1f8   : > { %v1035_v25 = vpop.permute.xlu1 %1034  ;;  %v1479_v20 = vsel %vm1459_vm7, %v1446_v3, %v941_v58 }
 0x1f9   : > { %1242 = vrot.lane.b32.xlu0 %v620_v8, %s4668_s7  ;;  %v1511_v12 = vsel %vm1492_vm8, %v1478_v49, %v1035_v25 }
 0x1fa   : > { %1330 = vrot.lane.b32.xlu1 %v623_v33, %s4669_s8 }
 0x1fb   : > { %v1309_v7 = vpop.permute.xlu0 %1308 }
 0x1fc   : > { %v1609_v14 = vsel %vm1591_vm11, %v1576_v53, %v1309_v7  ;;  %v1037_v29 = vpop.permute.xlu1 %1036 }
 0x1fd   : > { %964 = vrot.lane.b32.xlu0 %v620_v8, %s4665_s21  ;;  %4505 = vmatmul.mubr.msk.f32.gmra.mrb[16].mxu0 %vm1624_vm12, %v1609_v14  ;;  %v1512_v11 = vsel %vm1492_vm8, %v1479_v20, %v1037_v29  ;;  %v1383_v8 = vsel %vm1364_vm4, %v4909_v47, %v9252_v63  ;;  %v9255_v29 = vld [vmem:[#allocation73_spill] sm:$0xff] }
 0x1fe   : > { %1058 = vrot.lane.b32.xlu1 %v623_v33, %s4666_s30  ;;  %v1414_v46 = vsel %vm1395_vm5, %v1383_v8, %v9253_v31  ;;  %v9254_v33 = vld [vmem:[#allocation107_spill] sm:$0xff]  ;;  %v1384_v47 = vsel %vm1364_vm4, %v4906_v45, %v9255_v29 }
 0x1ff   : > { %v1131_v26 = vpop.permute.xlu0 %1130  ;;  %v1447_v44 = vsel %vm1426_vm6, %v1414_v46, %v9254_v33 }
 0x200   : > { %v1133_v19 = vpop.permute.xlu1 %1132  ;;  %v1544_v38 = vsel %vm1525_vm9, %v1511_v12, %v1131_v26  ;;  %v9256_v26 = vld [vmem:[#allocation15_spill] sm:$0xff] }
 0x201   : > { %1332 = vrot.lane.b32.xlu0 %v625_v51, %s4669_s8  ;;  %v1545_v10 = vsel %vm1525_vm9, %v1512_v11, %v1133_v19  ;;  %v1415_v19 = vsel %vm1395_vm5, %v1384_v47, %v9256_v26  ;;  %v9261_v11 = vld [vmem:[#allocation75_spill] sm:$0xff] }
 0x202   : > { %1060 = vrot.lane.b32.xlu1 %v625_v51, %s4666_s30  ;;  %v1448_v42 = vsel %vm1426_vm6, %v1415_v19, %v9257_v39 }
 0x203   : > { %v1221_v2 = vpop.permute.xlu0 %1220 }
 0x204   : > { %v943_v21 = vpop.permute.xlu1 %942  ;;  %v1577_v24 = vsel %vm1558_vm10, %v1544_v38, %v1221_v2 }
 0x205   : > { %v1480_v22 = vsel %vm1459_vm7, %v1447_v44, %v943_v21 }
 0x207   : > { %v1223_v55 = vpop.permute.xlu0 %1222 }
 0x208   : > { %v1311_v62 = vpop.permute.xlu1 %1310  ;;  %v1578_v36 = vsel %vm1558_vm10, %v1545_v10, %v1223_v55  ;;  %v9258_v55 = vld [vmem:[#allocation74_spill] sm:$0xff] }
 0x209   : > { %v1610_v32 = vsel %vm1591_vm11, %v1577_v24, %v1311_v62  ;;  %v1385_v24 = vsel %vm1364_vm4, %v9177_v40, %v9258_v55  ;;  %v9259_v62 = vld [vmem:[#allocation16_spill] sm:$0xff]  ;;  %v1386_v40 = vsel %vm1364_vm4, %v9178_v27, %v9261_v11 }
 0x20a   : > { %4507 = vmatprep.mubr.msk.f32.mxu0 %vm1624_vm12, %v1610_v32  ;;  %v1416_v28 = vsel %vm1395_vm5, %v1385_v24, %v9259_v62 }
 0x20b   : > { %v945_v60 = vpop.permute.xlu0 %944  ;;  %v1449_v32 = vsel %vm1426_vm6, %v1416_v28, %v9260_v57 }
 0x20c   : > { %v1039_v35 = vpop.permute.xlu1 %1038  ;;  %v1481_v13 = vsel %vm1459_vm7, %v1448_v42, %v945_v60 }
 0x20d   : > { %v1513_v4 = vsel %vm1492_vm8, %v1480_v22, %v1039_v35  ;;  %v9264_v22 = vld [vmem:[#allocation76_spill] sm:$0xff] }
 0x20f   : > { %v1313_v52 = vpop.permute.xlu0 %1312 }
 0x210   : > { %v1611_v34 = vsel %vm1591_vm11, %v1578_v36, %v1313_v52  ;;  %v1041_v0 = vpop.permute.xlu1 %1040  ;;  %v9262_v36 = vld [vmem:[#allocation17_spill] sm:$0xff] }
 0x211   : > { %4508 = vmatmul.mubr.msk.f32.gmra.mrb[18].mxu0 %vm1624_vm12, %v1611_v34  ;;  %v1514_v2 = vsel %vm1492_vm8, %v1481_v13, %v1041_v0  ;;  %v1417_v52 = vsel %vm1395_vm5, %v1386_v40, %v9262_v36  ;;  %v9263_v34 = vld [vmem:[#allocation110_spill] sm:$0xff]  ;;  %v9267_v13 = vld [vmem:[#allocation77_spill] sm:$0xff] }
 0x212   : > { %v1450_v0 = vsel %vm1426_vm6, %v1417_v52, %v9263_v34  ;;  %v9271_v52 = vld [vmem:[#allocation95_spill] sm:$0xff] }
 0x213   : > { %v1135_v43 = vpop.permute.xlu0 %1134 }
 0x214   : > { %v1137_v18 = vpop.permute.xlu1 %1136  ;;  %v1546_v16 = vsel %vm1525_vm9, %v1513_v4, %v1135_v43  ;;  %v1387_v4 = vsel %vm1364_vm4, %v9187_v54, %v9264_v22  ;;  %v1388_v54 = vsel %vm1364_vm4, %v9188_v1, %v9267_v13 }
 0x215   : > { %v1547_v6 = vsel %vm1525_vm9, %v1514_v2, %v1137_v18  ;;  %v9268_v2 = vld [vmem:[#allocation94_spill] sm:$0xff] }
 0x217   : > { %v1225_v58 = vpop.permute.xlu0 %1224 }
 0x218   : > { %v947_v25 = vpop.permute.xlu1 %946  ;;  %v1579_v7 = vsel %vm1558_vm10, %v1546_v16, %v1225_v58  ;;  %v9265_v16 = vld [vmem:[#allocation18_spill] sm:$0xff] }
 0x219   : > { %v1482_v30 = vsel %vm1459_vm7, %v1449_v32, %v947_v25 }
 0x21b   : > { %v1227_v53 = vpop.permute.xlu0 %1226 }
 0x21c   : > { %v1315_v14 = vpop.permute.xlu1 %1314  ;;  %v1580_v45 = vsel %vm1558_vm10, %v1547_v6, %v1227_v53  ;;  %v1418_v53 = vsel %vm1395_vm5, %v1387_v4, %v9265_v16  ;;  %v1419_v6 = vsel %vm1395_vm5, %v1388_v54, %v9268_v2  ;;  %v9274_v4 = vld [vmem:[#allocation96_spill] sm:$0xff] }
 0x21d   : > { %v1612_v51 = vsel %vm1591_vm11, %v1579_v7, %v1315_v14  ;;  %v9266_v14 = vld [vmem:[#allocation42_spill] sm:$0xff] }
 0x21e   : > { %4510 = vmatprep.mubr.msk.f32.mxu0 %vm1624_vm12, %v1612_v51  ;;  %v1451_v29 = vsel %vm1426_vm6, %v1418_v53, %v9266_v14 }
 0x21f   : > { %v949_v15 = vpop.permute.xlu0 %948 }
 0x220   : > { %v1043_v17 = vpop.permute.xlu1 %1042  ;;  %v1483_v18 = vsel %vm1459_vm7, %v1450_v0, %v949_v15 }
 0x221   : > { %v1515_v48 = vsel %vm1492_vm8, %v1482_v30, %v1043_v17 }
 0x223   : > { %v1317_v23 = vpop.permute.xlu0 %1316 }
 0x224   : > { %v1613_v21 = vsel %vm1591_vm11, %v1580_v45, %v1317_v23  ;;  %v1045_v49 = vpop.permute.xlu1 %1044  ;;  %v9269_v45 = vld [vmem:[#allocation111_spill] sm:$0xff] }
 0x225   : > { %4511 = vmatmul.mubr.msk.f32.gmra.mrb[20].mxu0 %vm1624_vm12, %v1613_v21  ;;  %v1516_v8 = vsel %vm1492_vm8, %v1483_v18, %v1045_v49  ;;  %v1452_v23 = vsel %vm1426_vm6, %v1419_v6, %v9269_v45 }
 0x227   : > { %v1139_v12 = vpop.permute.xlu0 %1138 }
 0x228   : > { %v1141_v38 = vpop.permute.xlu1 %1140  ;;  %v1548_v3 = vsel %vm1525_vm9, %v1515_v48, %v1139_v12 }
 0x229   : > { %v1549_v31 = vsel %vm1525_vm9, %v1516_v8, %v1141_v38 }
 0x22b   : > { %v1229_v37 = vpop.permute.xlu0 %1228 }
 0x22c   : > { %v951_v59 = vpop.permute.xlu1 %950  ;;  %v1581_v20 = vsel %vm1558_vm10, %v1548_v3, %v1229_v37 }
 0x22d   : > { %v1484_v51 = vsel %vm1459_vm7, %v1451_v29, %v951_v59 }
 0x22f   : > { %v1231_v60 = vpop.permute.xlu0 %1230 }
 0x230   : > { %v1319_v35 = vpop.permute.xlu1 %1318  ;;  %v1582_v27 = vsel %vm1558_vm10, %v1549_v31, %v1231_v60 }
 0x231   : > { %v1614_v10 = vsel %vm1591_vm11, %v1581_v20, %v1319_v35 }
 0x232   : > { %4513 = vmatprep.mubr.msk.f32.mxu0 %vm1624_vm12, %v1614_v10  ;;  %v9270_v10 = vld [vmem:[#allocation78_spill] sm:$0xff] }
 0x233   : > { %v953_v43 = vpop.permute.xlu0 %952  ;;  %v1389_v36 = vsel %vm1364_vm4, %v9197_v5, %v9270_v10 }
 0x234   : > { %v1047_v63 = vpop.permute.xlu1 %1046  ;;  %v1485_v49 = vsel %vm1459_vm7, %v1452_v23, %v953_v43  ;;  %v1420_v34 = vsel %vm1395_vm5, %v1389_v36, %v9271_v52  ;;  %v9272_v43 = vld [vmem:[#allocation112_spill] sm:$0xff] }
 0x235   : > { %v1517_v26 = vsel %vm1492_vm8, %v1484_v51, %v1047_v63  ;;  %v1453_v18 = vsel %vm1426_vm6, %v1420_v34, %v9272_v43  ;;  %v9279_v43 = vld [vmem:[#allocation81_spill] sm:$0xff] }
 0x237   : > { %v1321_v46 = vpop.permute.xlu0 %1320 }
 0x238   : > { %v1615_v58 = vsel %vm1591_vm11, %v1582_v27, %v1321_v46  ;;  %v1049_v33 = vpop.permute.xlu1 %1048 }
 0x239   : > { %4514 = vmatmul.mubr.msk.f32.gmra.mrb[22].mxu0 %vm1624_vm12, %v1615_v58  ;;  %v1518_v38 = vsel %vm1492_vm8, %v1485_v49, %v1049_v33  ;;  %v9273_v33 = vld [vmem:[#allocation79_spill] sm:$0xff] }
 0x23b   : > { %v1143_v44 = vpop.permute.xlu0 %1142 }
 0x23c   : > { %v1145_v25 = vpop.permute.xlu1 %1144  ;;  %v1550_v19 = vsel %vm1525_vm9, %v1517_v26, %v1143_v44  ;;  %v1390_v44 = vsel %vm1364_vm4, %v9198_v9, %v9273_v33 }
 0x23d   : > { %v1551_v1 = vsel %vm1525_vm9, %v1518_v38, %v1145_v25  ;;  %v1421_v16 = vsel %vm1395_vm5, %v1390_v44, %v9274_v4  ;;  %v9281_v4 = vld [vmem:[#allocation98_spill] sm:$0xff] }
 0x23f   : > { %v1233_v7 = vpop.permute.xlu0 %1232 }
 0x240   : > { %v955_v47 = vpop.permute.xlu1 %954  ;;  %v1583_v42 = vsel %vm1558_vm10, %v1550_v19, %v1233_v7  ;;  %v9275_v7 = vld [vmem:[#allocation113_spill] sm:$0xff] }
 0x241   : > { %v1486_v8 = vsel %vm1459_vm7, %v1453_v18, %v955_v47  ;;  %v1454_v14 = vsel %vm1426_vm6, %v1421_v16, %v9275_v7  ;;  %v1392_v18 = vsel %vm1364_vm4, %v9209_v56, %v9279_v43  ;;  %v9282_v7 = vld [vmem:[#allocation99_spill] sm:$0xff] }
 0x242   : > { %v1423_v16 = vsel %vm1395_vm5, %v1392_v18, %v9281_v4 }
 0x243   : > { %v1235_v39 = vpop.permute.xlu0 %1234 }
 0x244   : > { %v1323_v15 = vpop.permute.xlu1 %1322  ;;  %v1584_v37 = vsel %vm1558_vm10, %v1551_v1, %v1235_v39 }
 0x245   : > { %v1616_v17 = vsel %vm1591_vm11, %v1583_v42, %v1323_v15 }
 0x246   : > { %4516 = vmatprep.mubr.msk.f32.mxu0 %vm1624_vm12, %v1616_v17 }
 0x247   : > { %v957_v21 = vpop.permute.xlu0 %956 }
 0x248   : > { %v1051_v12 = vpop.permute.xlu1 %1050  ;;  %v1487_v26 = vsel %vm1459_vm7, %v1454_v14, %v957_v21 }
 0x249   : > { %v6233_v55 = vpop.f32.mrb[0].mxu0  ;;  %v1519_v31 = vsel %vm1492_vm8, %v1486_v8, %v1051_v12 }
 0x24a   : > { %v1951_v24 = vsel %vm1364_vm4, %v6233_v55, 0.0  ;;  %v2021_v62 = vmul.f32 %v6233_v55, %v6233_v55  ;;  %v6240_v28 = vpop.f32.mrb[1].mxu0 }
 0x24b   : > { %v1950_v57 = vsel %vm1364_vm4, %v6240_v28, 0.0  ;;  %v2020_v32 = vmul.f32 %v6240_v28, %v6240_v28  ;;  %v1325_v59 = vpop.permute.xlu0 %1324 }
 0x24c   : > { %v2053_v30 = vsel %vm1364_vm4, %v2021_v62, 0.0  ;;  %v1952_v48 = vadd.f32 %v1951_v24, %v1950_v57  ;;  %v1617_v3 = vsel %vm1591_vm11, %v1584_v37, %v1325_v59  ;;  %v1053_v60 = vpop.permute.xlu1 %1052  ;;  %v9276_v24 = vld [vmem:[#allocation80_spill] sm:$0xff]  ;;  %v9277_v37 = vld [vmem:[#allocation97_spill] sm:$0xff]  ;;  %v9278_v59 = vld [vmem:[#allocation114_spill] sm:$0xff] }
 0x24d   : > { %v2052_v20 = vsel %vm1364_vm4, %v2020_v32, 0.0  ;;  %4517 = vmatmul.mubr.msk.f32.gmra.mrb[24].mxu0 %vm1624_vm12, %v1617_v3  ;;  %v1520_v42 = vsel %vm1492_vm8, %v1487_v26, %v1053_v60  ;;  %v1391_v62 = vsel %vm1364_vm4, %v9207_v50, %v9276_v24  ;;  %v9287_v24 = vld [vmem:[#allocation117_spill] sm:$0xff] }
 0x24e   : > { %v2054_v35 = vadd.f32 %v2053_v30, %v2052_v20  ;;  %v1422_v57 = vsel %vm1395_vm5, %v1391_v62, %v9277_v37 }
 0x24f   : > { %v6251_v11 = vpop.permute.xlu0 %1146  ;;  %v1455_v30 = vsel %vm1426_vm6, %v1422_v57, %v9278_v59 }
 0x250   : > { %v6253_v40 = vpop.permute.xlu1 %1148  ;;  %v1552_v27 = vsel %vm1525_vm9, %v1519_v31, %v6251_v11 }
 0x251   : > { %v1553_v54 = vsel %vm1525_vm9, %v1520_v42, %v6253_v40 }
 0x253   : > { %v6260_v0 = vpop.permute.xlu0 %1236 }
 0x254   : > { %v959_v63 = vpop.permute.xlu1 %958  ;;  %v1585_v5 = vsel %vm1558_vm10, %v1552_v27, %v6260_v0  ;;  %v9280_v27 = vld [vmem:[#allocation82_spill] sm:$0xff] }
 0x255   : > { %v1488_v3 = vsel %vm1459_vm7, %v1455_v30, %v959_v63 }
 0x257   : > { %v6268_v46 = vpop.permute.xlu0 %1238 }
 0x258   : > { %v6272_v58 = vpop.permute.xlu1 %1326  ;;  %v1586_v6 = vsel %vm1558_vm10, %v1553_v54, %v6268_v46 }
 0x259   : > { %v6277_v25 = vpop.f32.mrb[2].mxu0  ;;  %v1618_v22 = vsel %vm1591_vm11, %v1585_v5, %v6272_v58  ;;  %v1393_v5 = vsel %vm1364_vm4, %v9220_v61, %v9280_v27 }
 0x25a   : > { %v6283_v53 = vpop.f32.mrb[3].mxu0  ;;  %4519 = vmatprep.mubr.msk.f32.mxu0 %vm1624_vm12, %v1618_v22  ;;  %v2023_v29 = vmul.f32 %v6277_v25, %v6277_v25  ;;  %v1955_v15 = vsel %vm1364_vm4, %v6277_v25, 0.0  ;;  %v1424_v56 = vsel %vm1395_vm5, %v1393_v5, %v9282_v7 }
 0x25b   : > { %v1953_v9 = vsel %vm1364_vm4, %v6283_v53, 0.0  ;;  %v2022_v47 = vmul.f32 %v6283_v53, %v6283_v53  ;;  %v961_v51 = vpop.permute.xlu0 %960 }
 0x25c   : > { %v1954_v19 = vadd.f32 %v1953_v9, %v1952_v48  ;;  %v1055_v39 = vpop.permute.xlu1 %1054  ;;  %v2057_v45 = vsel %vm1364_vm4, %v2023_v29, 0.0  ;;  %v9283_v9 = vld [vmem:[#allocation115_spill] sm:$0xff] }
 0x25d   : > { %v2055_v13 = vsel %vm1364_vm4, %v2022_v47, 0.0  ;;  %v1521_v20 = vsel %vm1492_vm8, %v1488_v3, %v1055_v39  ;;  %v1456_v61 = vsel %vm1426_vm6, %v1423_v16, %v9283_v9  ;;  %v9284_v47 = vld [vmem:[#allocation116_spill] sm:$0xff] }
 0x25e   : > { %v2056_v17 = vadd.f32 %v2055_v13, %v2054_v35  ;;  %v1956_v2 = vadd.f32 %v1955_v15, %v1954_v19  ;;  %v1457_v26 = vsel %vm1426_vm6, %v1424_v56, %v9284_v47  ;;  %v1489_v42 = vsel %vm1459_vm7, %v1456_v61, %v961_v51 }
 0x25f   : > { %v1329_v23 = vpop.permute.xlu0 %1328 }
 0x260   : > { %v1057_v21 = vpop.permute.xlu1 %1056  ;;  %v1619_v49 = vsel %vm1591_vm11, %v1586_v6, %v1329_v23  ;;  %v2058_v12 = vadd.f32 %v2057_v45, %v2056_v17  ;;  %v9285_v17 = vld [vmem:[#allocation83_spill] sm:$0xff] }
 0x261   : > { %4520 = vmatmul.mubr.msk.f32.gmra.mrb[26].mxu0 %vm1624_vm12, %v1619_v49  ;;  %v1522_v6 = vsel %vm1492_vm8, %v1489_v42, %v1057_v21  ;;  %v9286_v49 = vld [vmem:[#allocation100_spill] sm:$0xff] }
 0x263   : > { %v1151_v38 = vpop.permute.xlu0 %1150 }
 0x264   : > { %v1153_v1 = vpop.permute.xlu1 %1152  ;;  %v1554_v10 = vsel %vm1525_vm9, %v1521_v20, %v1151_v38 }
 0x265   : > { %v1555_v38 = vsel %vm1525_vm9, %v1522_v6, %v1153_v1 }
 0x267   : > { %v1241_v32 = vpop.permute.xlu0 %1240 }
 0x268   : > { %v963_v48 = vpop.permute.xlu1 %962  ;;  %v1587_v63 = vsel %vm1558_vm10, %v1554_v10, %v1241_v32 }
 0x269   : > { %v6314_v60 = vpop.f32.mrb[4].mxu0  ;;  %v1490_v15 = vsel %vm1459_vm7, %v1457_v26, %v963_v48 }
 0x26a   : > { %v6317_v35 = vpop.f32.mrb[5].mxu0  ;;  %v2025_v50 = vmul.f32 %v6314_v60, %v6314_v60  ;;  %v1959_v33 = vsel %vm1364_vm4, %v6314_v60, 0.0 }
 0x26b   : > { %v1957_v36 = vsel %vm1364_vm4, %v6317_v35, 0.0  ;;  %v2024_v52 = vmul.f32 %v6317_v35, %v6317_v35  ;;  %v1243_v34 = vpop.permute.xlu0 %1242 }
 0x26c   : > { %v1958_v8 = vadd.f32 %v1957_v36, %v1956_v2  ;;  %v1331_v31 = vpop.permute.xlu1 %1330  ;;  %v2061_v19 = vsel %vm1364_vm4, %v2025_v50, 0.0  ;;  %v1394_v2 = vsel %vm1364_vm4, %v9221_v41, %v9285_v17  ;;  %v1588_v37 = vsel %vm1558_vm10, %v1555_v38, %v1243_v34 }
 0x26d   : > { %v2059_v44 = vsel %vm1364_vm4, %v2024_v52, 0.0  ;;  %v1620_v22 = vsel %vm1591_vm11, %v1587_v63, %v1331_v31 }
 0x26e   : > { %v2060_v14 = vadd.f32 %v2059_v44, %v2058_v12  ;;  %4522 = vmatprep.mubr.msk.f32.mxu0 %vm1624_vm12, %v1620_v22  ;;  %v1960_v29 = vadd.f32 %v1959_v33, %v1958_v8  ;;  %v1425_v12 = vsel %vm1395_vm5, %v1394_v2, %v9286_v49 }
 0x26f   : > { %v965_v39 = vpop.permute.xlu0 %964  ;;  %v1458_v62 = vsel %vm1426_vm6, %v1425_v12, %v9287_v24 }
 0x270   : > { %v1059_v13 = vpop.permute.xlu1 %1058  ;;  %v2062_v54 = vadd.f32 %v2061_v19, %v2060_v14  ;;  %v1491_v21 = vsel %vm1459_vm7, %v1458_v62, %v965_v39 }
 0x271   : > { %v1523_v45 = vsel %vm1492_vm8, %v1490_v15, %v1059_v13 }
 0x272   : > { %v1556_v51 = vsel %vm1525_vm9, %v1523_v45, %v6251_v11 }
 0x273   : > { %v1333_v57 = vpop.permute.xlu0 %1332  ;;  %v1589_v41 = vsel %vm1558_vm10, %v1556_v51, %v6260_v0 }
 0x274   : > { %v1621_v32 = vsel %vm1591_vm11, %v1588_v37, %v1333_v57  ;;  %v1061_v59 = vpop.permute.xlu1 %1060  ;;  %v1622_v11 = vsel %vm1591_vm11, %v1589_v41, %v6272_v58 }
 0x275   : > { %v1524_v30 = vsel %vm1492_vm8, %v1491_v21, %v1061_v59  ;;  %4523 = vmatmul.mubr.msk.f32.gmra.mrb[28].mxu0 %vm1624_vm12, %v1621_v32 }
 0x276   : > { %v1557_v1 = vsel %vm1525_vm9, %v1524_v30, %v6253_v40  ;;  %4525 = vmatprep.mubr.msk.f32.mxu0 %vm1624_vm12, %v1622_v11 }
 0x277   : > { %v1590_v0 = vsel %vm1558_vm10, %v1557_v1, %v6268_v46 }
 0x278   : > { %v1623_v48 = vsel %vm1591_vm11, %v1590_v0, %v1329_v23 }
 0x279   : > { %v6376_v3 = vpop.f32.mrb[6].mxu0  ;;  %4526 = vmatmul.mubr.msk.f32.gmra.mrb[30].mxu0 %vm1624_vm12, %v1623_v48 }
 0x27a   : > { %v6379_v20 = vpop.f32.mrb[7].mxu0  ;;  %v2027_v10 = vmul.f32 %v6376_v3, %v6376_v3  ;;  %v1963_v46 = vsel %vm1364_vm4, %v6376_v3, 0.0 }
 0x27b   : > { %v1961_v58 = vsel %vm1364_vm4, %v6379_v20, 0.0  ;;  %v2026_v40 = vmul.f32 %v6379_v20, %v6379_v20 }
 0x27c   : > { %v1962_v50 = vadd.f32 %v1961_v58, %v1960_v29  ;;  %v2065_v34 = vsel %vm1364_vm4, %v2027_v10, 0.0 }
 0x27d   : > { %v2063_v23 = vsel %vm1364_vm4, %v2026_v40, 0.0 }
 0x27e   : > { %v2064_v36 = vadd.f32 %v2063_v23, %v2062_v54  ;;  %v1964_v52 = vadd.f32 %v1963_v46, %v1962_v50 }
 0x280   : > { %v2066_v43 = vadd.f32 %v2065_v34, %v2064_v36 }
 0x289   : > { %v6391_v18 = vpop.f32.mrb[8].mxu0 }
 0x28a   : > { %v6393_v63 = vpop.f32.mrb[9].mxu0  ;;  %v2029_v8 = vmul.f32 %v6391_v18, %v6391_v18  ;;  %v1967_v33 = vsel %vm1364_vm4, %v6391_v18, 0.0 }
 0x28b   : > { %v1965_v31 = vsel %vm1364_vm4, %v6393_v63, 0.0  ;;  %v2028_v27 = vmul.f32 %v6393_v63, %v6393_v63 }
 0x28c   : > { %v1966_v5 = vadd.f32 %v1965_v31, %v1964_v52  ;;  %v2069_v16 = vsel %vm1364_vm4, %v2029_v8, 0.0 }
 0x28d   : > { %v2067_v44 = vsel %vm1364_vm4, %v2028_v27, 0.0 }
 0x28e   : > { %v2068_v22 = vadd.f32 %v2067_v44, %v2066_v43  ;;  %v1968_v4 = vadd.f32 %v1967_v33, %v1966_v5 }
 0x290   : > { %v2070_v7 = vadd.f32 %v2069_v16, %v2068_v22 }
 0x299   : > { %v6405_v56 = vpop.f32.mrb[10].mxu0 }
 0x29a   : > { %v6407_v14 = vpop.f32.mrb[11].mxu0  ;;  %v2031_v29 = vmul.f32 %v6405_v56, %v6405_v56  ;;  %v1971_v26 = vsel %vm1364_vm4, %v6405_v56, 0.0 }
 0x29b   : > { %v1969_v9 = vsel %vm1364_vm4, %v6407_v14, 0.0  ;;  %v2030_v61 = vmul.f32 %v6407_v14, %v6407_v14 }
 0x29c   : > { %v1970_v47 = vadd.f32 %v1969_v9, %v1968_v4  ;;  %v2073_v15 = vsel %vm1364_vm4, %v2031_v29, 0.0 }
 0x29d   : > { %v2071_v19 = vsel %vm1364_vm4, %v2030_v61, 0.0 }
 0x29e   : > { %v2072_v39 = vadd.f32 %v2071_v19, %v2070_v7  ;;  %v1972_v42 = vadd.f32 %v1971_v26, %v1970_v47 }
 0x2a0   : > { %v2074_v13 = vadd.f32 %v2073_v15, %v2072_v39 }
 0x2a9   : > { %v6419_v54 = vpop.f32.mrb[12].mxu0 }
 0x2aa   : > { %v6421_v17 = vpop.f32.mrb[13].mxu0  ;;  %v2033_v2 = vmul.f32 %v6419_v54, %v6419_v54  ;;  %v1975_v12 = vsel %vm1364_vm4, %v6419_v54, 0.0 }
 0x2ab   : > { %v1973_v6 = vsel %vm1364_vm4, %v6421_v17, 0.0  ;;  %v2032_v45 = vmul.f32 %v6421_v17, %v6421_v17 }
 0x2ac   : > { %v1974_v49 = vadd.f32 %v1973_v6, %v1972_v42  ;;  %v2077_v62 = vsel %vm1364_vm4, %v2033_v2, 0.0 }
 0x2ad   : > { %v2075_v38 = vsel %vm1364_vm4, %v2032_v45, 0.0 }
 0x2ae   : > { %v2076_v51 = vadd.f32 %v2075_v38, %v2074_v13  ;;  %v1976_v24 = vadd.f32 %v1975_v12, %v1974_v49 }
 0x2b0   : > { %v2078_v37 = vadd.f32 %v2077_v62, %v2076_v51 }
 0x2bc   : > { %v6433_v57 = vpop.f32.mrb[14].mxu0 }
 0x2bd   : > { %v6435_v41 = vpop.f32.mrb[15].mxu0  ;;  %v2035_v21 = vmul.f32 %v6433_v57, %v6433_v57  ;;  %v1979_v11 = vsel %vm1364_vm4, %v6433_v57, 0.0 }
 0x2be   : > { %v1977_v32 = vsel %vm1364_vm4, %v6435_v41, 0.0  ;;  %v2034_v59 = vmul.f32 %v6435_v41, %v6435_v41 }
 0x2bf   : > { %v1978_v30 = vadd.f32 %v1977_v32, %v1976_v24  ;;  %v2081_v10 = vsel %vm1364_vm4, %v2035_v21, 0.0 }
 0x2c0   : > { %v2079_v1 = vsel %vm1364_vm4, %v2034_v59, 0.0 }
 0x2c1   : > { %v2080_v0 = vadd.f32 %v2079_v1, %v2078_v37  ;;  %v1980_v48 = vadd.f32 %v1979_v11, %v1978_v30 }
 0x2c3   : > { %v2082_v58 = vadd.f32 %v2081_v10, %v2080_v0 }
 0x2d0   : > { %v6447_v40 = vpop.f32.mrb[16].mxu0 }
 0x2d1   : > { %v6449_v50 = vpop.f32.mrb[17].mxu0  ;;  %v2037_v46 = vmul.f32 %v6447_v40, %v6447_v40  ;;  %v1983_v34 = vsel %vm1364_vm4, %v6447_v40, 0.0 }
 0x2d2   : > { %v1981_v23 = vsel %vm1364_vm4, %v6449_v50, 0.0  ;;  %v2036_v36 = vmul.f32 %v6449_v50, %v6449_v50 }
 0x2d3   : > { %v1982_v52 = vadd.f32 %v1981_v23, %v1980_v48  ;;  %v2085_v27 = vsel %vm1364_vm4, %v2037_v46, 0.0 }
 0x2d4   : > { %v2083_v43 = vsel %vm1364_vm4, %v2036_v36, 0.0 }
 0x2d5   : > { %v2084_v8 = vadd.f32 %v2083_v43, %v2082_v58  ;;  %v1984_v31 = vadd.f32 %v1983_v34, %v1982_v52 }
 0x2d7   : > { %v2086_v5 = vadd.f32 %v2085_v27, %v2084_v8 }
 0x2e4   : > { %v6461_v33 = vpop.f32.mrb[18].mxu0 }
 0x2e5   : > { %v6463_v44 = vpop.f32.mrb[19].mxu0  ;;  %v2039_v22 = vmul.f32 %v6461_v33, %v6461_v33  ;;  %v1987_v29 = vsel %vm1364_vm4, %v6461_v33, 0.0 }
 0x2e6   : > { %v1985_v4 = vsel %vm1364_vm4, %v6463_v44, 0.0  ;;  %v2038_v16 = vmul.f32 %v6463_v44, %v6463_v44 }
 0x2e7   : > { %v1986_v7 = vadd.f32 %v1985_v4, %v1984_v31  ;;  %v2089_v26 = vsel %vm1364_vm4, %v2039_v22, 0.0 }
 0x2e8   : > { %v2087_v9 = vsel %vm1364_vm4, %v2038_v16, 0.0 }
 0x2e9   : > { %v2088_v61 = vadd.f32 %v2087_v9, %v2086_v5  ;;  %v1988_v47 = vadd.f32 %v1987_v29, %v1986_v7 }
 0x2eb   : > { %v2090_v19 = vadd.f32 %v2089_v26, %v2088_v61 }
 0x2f8   : > { %v6475_v39 = vpop.f32.mrb[20].mxu0 }
 0x2f9   : > { %v6477_v42 = vpop.f32.mrb[21].mxu0  ;;  %v2041_v15 = vmul.f32 %v6475_v39, %v6475_v39  ;;  %v1991_v45 = vsel %vm1364_vm4, %v6475_v39, 0.0 }
 0x2fa   : > { %v1989_v13 = vsel %vm1364_vm4, %v6477_v42, 0.0  ;;  %v2040_v2 = vmul.f32 %v6477_v42, %v6477_v42 }
 0x2fb   : > { %v1990_v6 = vadd.f32 %v1989_v13, %v1988_v47  ;;  %v2093_v51 = vsel %vm1364_vm4, %v2041_v15, 0.0 }
 0x2fc   : > { %v2091_v49 = vsel %vm1364_vm4, %v2040_v2, 0.0 }
 0x2fd   : > { %v2092_v12 = vadd.f32 %v2091_v49, %v2090_v19  ;;  %v1992_v38 = vadd.f32 %v1991_v45, %v1990_v6 }
 0x2ff   : > { %v2094_v24 = vadd.f32 %v2093_v51, %v2092_v12 }
 0x30c   : > { %v6489_v62 = vpop.f32.mrb[22].mxu0 }
 0x30d   : > { %v6491_v37 = vpop.f32.mrb[23].mxu0  ;;  %v2043_v21 = vmul.f32 %v6489_v62, %v6489_v62  ;;  %v1995_v11 = vsel %vm1364_vm4, %v6489_v62, 0.0 }
 0x30e   : > { %v1993_v32 = vsel %vm1364_vm4, %v6491_v37, 0.0  ;;  %v2042_v59 = vmul.f32 %v6491_v37, %v6491_v37 }
 0x30f   : > { %v1994_v30 = vadd.f32 %v1993_v32, %v1992_v38  ;;  %v2097_v10 = vsel %vm1364_vm4, %v2043_v21, 0.0 }
 0x310   : > { %v2095_v1 = vsel %vm1364_vm4, %v2042_v59, 0.0 }
 0x311   : > { %v2096_v0 = vadd.f32 %v2095_v1, %v2094_v24  ;;  %v1996_v48 = vadd.f32 %v1995_v11, %v1994_v30 }
 0x313   : > { %v2098_v58 = vadd.f32 %v2097_v10, %v2096_v0 }
 0x320   : > { %v6503_v46 = vpop.f32.mrb[24].mxu0 }
 0x321   : > { %v6505_v23 = vpop.f32.mrb[25].mxu0  ;;  %v2045_v36 = vmul.f32 %v6503_v46, %v6503_v46  ;;  %v1999_v8 = vsel %vm1364_vm4, %v6503_v46, 0.0 }
 0x322   : > { %v1997_v52 = vsel %vm1364_vm4, %v6505_v23, 0.0  ;;  %v2044_v34 = vmul.f32 %v6505_v23, %v6505_v23 }
 0x323   : > { %v1998_v43 = vadd.f32 %v1997_v52, %v1996_v48  ;;  %v2101_v22 = vsel %vm1364_vm4, %v2045_v36, 0.0 }
 0x324   : > { %v2099_v31 = vsel %vm1364_vm4, %v2044_v34, 0.0 }
 0x325   : > { %v2100_v27 = vadd.f32 %v2099_v31, %v2098_v58  ;;  %v2000_v5 = vadd.f32 %v1999_v8, %v1998_v43 }
 0x327   : > { %v2102_v4 = vadd.f32 %v2101_v22, %v2100_v27 }
 0x334   : > { %v6517_v16 = vpop.f32.mrb[26].mxu0 }
 0x335   : > { %v6519_v7 = vpop.f32.mrb[27].mxu0  ;;  %v2047_v29 = vmul.f32 %v6517_v16, %v6517_v16  ;;  %v2003_v26 = vsel %vm1364_vm4, %v6517_v16, 0.0 }
 0x336   : > { %v2001_v9 = vsel %vm1364_vm4, %v6519_v7, 0.0  ;;  %v2046_v61 = vmul.f32 %v6519_v7, %v6519_v7 }
 0x337   : > { %v2002_v47 = vadd.f32 %v2001_v9, %v2000_v5  ;;  %v2105_v2 = vsel %vm1364_vm4, %v2047_v29, 0.0 }
 0x338   : > { %v2103_v19 = vsel %vm1364_vm4, %v2046_v61, 0.0 }
 0x339   : > { %v2104_v15 = vadd.f32 %v2103_v19, %v2102_v4  ;;  %v2004_v13 = vadd.f32 %v2003_v26, %v2002_v47 }
 0x33b   : > { %v2106_v6 = vadd.f32 %v2105_v2, %v2104_v15 }
 0x348   : > { %v6531_v45 = vpop.f32.mrb[28].mxu0 }
 0x349   : > { %v6533_v49 = vpop.f32.mrb[29].mxu0  ;;  %v2049_v12 = vmul.f32 %v6531_v45, %v6531_v45  ;;  %v2007_v21 = vsel %vm1364_vm4, %v6531_v45, 0.0 }
 0x34a   : > { %v2005_v38 = vsel %vm1364_vm4, %v6533_v49, 0.0  ;;  %v2048_v51 = vmul.f32 %v6533_v49, %v6533_v49 }
 0x34b   : > { %v2006_v24 = vadd.f32 %v2005_v38, %v2004_v13  ;;  %v2109_v0 = vsel %vm1364_vm4, %v2049_v12, 0.0 }
 0x34c   : > { %v2107_v32 = vsel %vm1364_vm4, %v2048_v51, 0.0  ;;  %v6544_v59 = vpop.f32.mrb[30].mxu0 }
 0x34d   : > { %v2108_v30 = vadd.f32 %v2107_v32, %v2106_v6  ;;  %v6546_v11 = vpop.f32.mrb[31].mxu0  ;;  %v2008_v1 = vadd.f32 %v2007_v21, %v2006_v24  ;;  %v2051_v48 = vmul.f32 %v6544_v59, %v6544_v59  ;;  %v2011_v34 = vsel %vm1364_vm4, %v6544_v59, 0.0 }
 0x34e   : > { %v2009_v10 = vsel %vm1364_vm4, %v6546_v11, 0.0  ;;  %v2050_v58 = vmul.f32 %v6546_v11, %v6546_v11 }
 0x34f   : > { %v2010_v36 = vadd.f32 %v2009_v10, %v2008_v1  ;;  %v2110_v52 = vadd.f32 %v2109_v0, %v2108_v30  ;;  %v2113_v27 = vsel %vm1364_vm4, %v2051_v48, 0.0 }
 0x350   : > { %v2111_v43 = vsel %vm1364_vm4, %v2050_v58, 0.0 }
 0x351   : > { %v2012_v8 = vadd.f32 %v2011_v34, %v2010_v36  ;;  %v2112_v31 = vadd.f32 %v2111_v43, %v2110_v52 }
 0x353   : > { %v2013_v5 = vrot.slane %v2012_v8, 4  ;;  %v2114_v22 = vadd.f32 %v2113_v27, %v2112_v31 }
 0x355   : > { %v2014_v4 = vadd.f32 %v2013_v5, %v2012_v8  ;;  %v2115_v29 = vrot.slane %v2114_v22, 4 }
 0x357   : > { %v2015_v9 = vrot.slane %v2014_v4, 2  ;;  %v2116_v61 = vadd.f32 %v2115_v29, %v2114_v22 }
 0x359   : > { %v2016_v47 = vadd.f32 %v2015_v9, %v2014_v4  ;;  %v2117_v26 = vrot.slane %v2116_v61, 2 }
 0x35b   : > { %v2017_v19 = vrot.slane %v2016_v47, 1  ;;  %v2118_v15 = vadd.f32 %v2117_v26, %v2116_v61 }
 0x35d   : > { %v2018_v13 = vadd.f32 %v2017_v19, %v2016_v47  ;;  %v2119_v2 = vrot.slane %v2118_v15, 1 }
 0x35f   : > { %v6559_v6 = vmul.f32 0.00390625, %v2018_v13  ;;  %v2120_v12 = vadd.f32 %v2119_v2, %v2118_v15 }
 0x361   : > { %v2121_v38 = vmul.f32 0.00390625, %v2120_v12  ;;  %v2122_v51 = vmul.f32 %v6559_v6, %v6559_v6  ;;  %v2155_v24 = vsub.f32 %v6546_v11, %v6559_v6  ;;  %v2156_v21 = vsub.f32 %v6544_v59, %v6559_v6 }
 0x362   : > { %v2125_v32 = vsub.f32 %v6240_v28, %v6559_v6  ;;  %v2126_v30 = vsub.f32 %v6233_v55, %v6559_v6  ;;  %v2127_v1 = vsub.f32 %v6283_v53, %v6559_v6  ;;  %v2128_v0 = vsub.f32 %v6277_v25, %v6559_v6 }
 0x363   : > { %v2123_v48 = vsub.f32 %v2121_v38, %v2122_v51  ;;  %v2129_v10 = vsub.f32 %v6317_v35, %v6559_v6  ;;  %v2130_v11 = vsub.f32 %v6314_v60, %v6559_v6  ;;  %v2131_v59 = vsub.f32 %v6379_v20, %v6559_v6 }
 0x364   : > { %v2132_v28 = vsub.f32 %v6376_v3, %v6559_v6  ;;  %v2133_v55 = vsub.f32 %v6393_v63, %v6559_v6  ;;  %v2134_v53 = vsub.f32 %v6391_v18, %v6559_v6  ;;  %v2135_v25 = vsub.f32 %v6407_v14, %v6559_v6 }
 0x365   : > { %v2124_v58 = vmax.f32 %v2123_v48, 0.0  ;;  %v2136_v35 = vsub.f32 %v6405_v56, %v6559_v6  ;;  %v2137_v60 = vsub.f32 %v6421_v17, %v6559_v6  ;;  %v2138_v20 = vsub.f32 %v6419_v54, %v6559_v6 }
 0x366   : > { %v2139_v3 = vsub.f32 %v6435_v41, %v6559_v6  ;;  %v2140_v63 = vsub.f32 %v6433_v57, %v6559_v6  ;;  %v2141_v18 = vsub.f32 %v6449_v50, %v6559_v6  ;;  %v2142_v14 = vsub.f32 %v6447_v40, %v6559_v6 }
 0x367   : > { %v2157_v36 = vadd.f32 1e-05, %v2124_v58  ;;  %v2143_v56 = vsub.f32 %v6463_v44, %v6559_v6  ;;  %v2144_v17 = vsub.f32 %v6461_v33, %v6559_v6  ;;  %v2145_v54 = vsub.f32 %v6477_v42, %v6559_v6 }
 0x368   : > { %v2146_v41 = vsub.f32 %v6475_v39, %v6559_v6  ;;  %v2147_v57 = vsub.f32 %v6491_v37, %v6559_v6  ;;  %v2148_v50 = vsub.f32 %v6489_v62, %v6559_v6  ;;  %v2149_v40 = vsub.f32 %v6505_v23, %v6559_v6 }
 0x369   : > { %4618 = vrsqrt.f32 %v2157_v36  ;;  %v2150_v44 = vsub.f32 %v6503_v46, %v6559_v6  ;;  %v2151_v33 = vsub.f32 %v6519_v7, %v6559_v6  ;;  %v2152_v42 = vsub.f32 %v6517_v16, %v6559_v6 }
 0x36a   : > { %v2153_v39 = vsub.f32 %v6533_v49, %v6559_v6  ;;  %v2154_v37 = vsub.f32 %v6531_v45, %v6559_v6 }
 0x373   : > { %v4619_v62 = vpop.eup %4618 }
 0x374   : > { %v6627_v52 = vmul.f32 %v4619_v62, %v2155_v24  ;;  %v6629_v23 = vmul.f32 %v4619_v62, %v2156_v21  ;;  %v2161_v34 = vmul.f32 %v4619_v62, %v2127_v1  ;;  %v2162_v43 = vmul.f32 %v4619_v62, %v2128_v0 }
 0x375   : > { %v6631_v46 = vmul.f32 %v4619_v62, %v2125_v32  ;;  %v2160_v8 = vmul.f32 %v4619_v62, %v2126_v30  ;;  %v6633_v7 = vmul.f32 %v4619_v62, %v2129_v10  ;;  %v6635_v31 = vmul.f32 %v4619_v62, %v2130_v11 }
 0x376   : > { %9288 = vst [vmem:[#allocation45_spill] sm:$0xff] %v6627_v52  ;;  %9289 = vst [vmem:[#allocation21_spill] sm:$0xff] %v6629_v23  ;;  %v8911_v16 = vmax.f32 %v6627_v52, 0.0  ;;  %v8910_v49 = vmax.f32 %v6629_v23, 0.0  ;;  %v2193_v27 = vmax.f32 %v2161_v34, 0.0  ;;  %v2194_v45 = vmax.f32 %v2162_v43, 0.0 }
 0x377   : > { %v6639_v5 = vmul.f32 %v4619_v62, %v2131_v59  ;;  %v6641_v22 = vmul.f32 %v4619_v62, %v2132_v28  ;;  %v6643_v4 = vmul.f32 %v4619_v62, %v2133_v55  ;;  %v6645_v29 = vmul.f32 %v4619_v62, %v2134_v53 }
 0x378   : > { %v6649_v9 = vrot.slane %v8911_v16, 7  ;;  %v6653_v61 = vrot.slane %v8910_v49, 7  ;;  %v2292_v47 = vrot.slane %v2193_v27, 7  ;;  %v2293_v26 = vrot.slane %v2194_v45, 7 }
 0x379   : > { %v2387_v19 = vrot.slane %v2194_v45, 5  ;;  %v6655_v15 = vmul.f32 %v4619_v62, %v2135_v25  ;;  %v6662_v2 = vmul.f32 %v4619_v62, %v2136_v35  ;;  %v6664_v6 = vmul.f32 %v4619_v62, %v2137_v60 }
 0x37a   : > { %9290 = vst [vmem:[#allocation46_spill] sm:$0xff] %v6649_v9  ;;  %9291 = vst [vmem:[#allocation22_spill] sm:$0xff] %v6653_v61  ;;  %v6660_v13 = vsel %vm272_vm0, %v6649_v9, %v6653_v61  ;;  %v6666_v12 = vmul.f32 %v4619_v62, %v2138_v20  ;;  %v6669_v38 = vsel %vm272_vm0, %v2292_v47, %v2293_v26  ;;  %v2191_v36 = vmax.f32 %v6631_v46, 0.0 }
 0x37b   : > { %9292 = vst [vmem:[#allocation25_spill] sm:$0xff] %v6660_v13  ;;  %9293 = vst [vmem:[#allocation47_spill] sm:$0xff] %v6669_v38  ;;  %v6672_v51 = vsel %vm272_vm0, %v2293_v26, %v2387_v19  ;;  %v6674_v24 = vmul.f32 %v4619_v62, %v2139_v3  ;;  %v6676_v21 = vmul.f32 %v4619_v62, %v2140_v63  ;;  %v2482_v32 = vrot.slane %v6669_v38, 1 }
 0x37c   : > { %9294 = vst [vmem:[#allocation20_spill] sm:$0xff] %v6672_v51  ;;  %v2484_v30 = vrot.slane %v6672_v51, 1  ;;  %v6680_v1 = vmul.f32 %v4619_v62, %v2141_v18  ;;  %v6682_v0 = vmul.f32 %v4619_v62, %v2142_v14  ;;  %v6684_v48 = vmul.f32 %v4619_v62, %v2143_v56 }
 0x37d   : > { %v6686_v10 = vmul.f32 %v4619_v62, %v2144_v17  ;;  %v6688_v11 = vmul.f32 %v4619_v62, %v2145_v54  ;;  %v6690_v59 = vmul.f32 %v4619_v62, %v2146_v41  ;;  %v6695_v55 = vmul.f32 %v4619_v62, %v2147_v57 }
 0x37e   : > { %v6693_v28 = vsel %vm462_vm1, %v2482_v32, %v2484_v30  ;;  %v6697_v53 = vmul.f32 %v4619_v62, %v2148_v50  ;;  %v6699_v25 = vmul.f32 %v4619_v62, %v2149_v40  ;;  %v6703_v58 = vmul.f32 %v4619_v62, %v2150_v44 }
 0x37f   : > { %9295 = vst [vmem:[#allocation19_spill] sm:$0xff] %v6693_v28  ;;  %2645 = vrot.lane.b32.xlu1 %v6693_v28, %s4662_s18  ;;  %v6705_v35 = vmul.f32 %v4619_v62, %v2151_v33  ;;  %v6707_v60 = vmul.f32 %v4619_v62, %v2152_v42  ;;  %v6709_v20 = vmul.f32 %v4619_v62, %v2153_v39  ;;  %v2244_v63 = vrot.slane %v2193_v27, 1 }
 0x380   : > { %v6711_v3 = vmul.f32 %v4619_v62, %v2154_v37  ;;  %v2192_v56 = vmax.f32 %v2160_v8, 0.0  ;;  %v2195_v54 = vmax.f32 %v6633_v7, 0.0  ;;  %v2196_v41 = vmax.f32 %v6635_v31, 0.0 }
 0x381   : > { %9296 = vst [vmem:[#allocation26_spill] sm:$0xff] %v6705_v35  ;;  %9297 = vst [vmem:[#allocation27_spill] sm:$0xff] %v6707_v60  ;;  %v6714_v18 = vsel %vm272_vm0, %v2244_v63, %v2292_v47  ;;  %v2197_v57 = vmax.f32 %v6639_v5, 0.0  ;;  %v6726_v50 = vrot.slane %v2191_v36, 7  ;;  %v8917_v33 = vmax.f32 %v6641_v22, 0.0 }
 0x382   : > { %9298 = vst [vmem:[#allocation48_spill] sm:$0xff] %v6709_v20  ;;  %9299 = vst [vmem:[#allocation58_spill] sm:$0xff] %v6711_v3  ;;  %v2481_v14 = vrot.slane %v6714_v18, 1  ;;  %v2296_v40 = vrot.slane %v2192_v56, 7  ;;  %v2388_v44 = vrot.slane %v2192_v56, 5  ;;  %v8912_v42 = vmax.f32 %v6643_v4, 0.0 }
 0x383   : > { %9300 = vst [vmem:[#allocation87_spill] sm:$0xff] %v6714_v18  ;;  %v8915_v39 = vmax.f32 %v6645_v29, 0.0  ;;  %v8913_v37 = vmax.f32 %v6655_v15, 0.0  ;;  %v8914_v62 = vmax.f32 %v6662_v2, 0.0  ;;  %v8916_v34 = vmax.f32 %v6664_v6, 0.0 }
 0x384   : > { %v6719_v17 = vsel %vm462_vm1, %v2481_v14, %v2482_v32  ;;  %v6736_v43 = vsel %vm272_vm0, %v6726_v50, %v2296_v40  ;;  %v6739_v46 = vsel %vm272_vm0, %v2296_v40, %v2388_v44  ;;  %v8918_v8 = vmax.f32 %v6666_v12, 0.0 }
 0x385   : > { %9301 = vst [vmem:[#allocation49_spill] sm:$0xff] %v6719_v17  ;;  %2643 = vrot.lane.b32.xlu0 %v6719_v17, %s4662_s18  ;;  %9302 = vst [vmem:[#allocation59_spill] sm:$0xff] %v6736_v43  ;;  %v8919_v7 = vmax.f32 %v6674_v24, 0.0  ;;  %v2487_v31 = vrot.slane %v6736_v43, 1  ;;  %v2489_v27 = vrot.slane %v6739_v46, 1  ;;  %v8920_v45 = vmax.f32 %v6676_v21, 0.0 }
 0x386   : > { %9303 = vst [vmem:[#allocation88_spill] sm:$0xff] %v6739_v46  ;;  %v8923_v5 = vmax.f32 %v6680_v1, 0.0  ;;  %v2245_v32 = vrot.slane %v2191_v36, 1  ;;  %v2246_v19 = vrot.slane %v2195_v54, 1  ;;  %v2247_v14 = vrot.slane %v2197_v57, 1 }
 0x387   : > { %v6753_v63 = vsel %vm462_vm1, %v2487_v31, %v2489_v27  ;;  %v2298_v26 = vrot.slane %v2195_v54, 7  ;;  %v2299_v56 = vrot.slane %v2196_v41, 7  ;;  %v2301_v47 = vrot.slane %v2197_v57, 7 }
 0x388   : > { %9304 = vst [vmem:[#allocation24_spill] sm:$0xff] %v6753_v63  ;;  %2649 = vrot.lane.b32.xlu1 %v6753_v63, %s4662_s18  ;;  %v2302_v44 = vrot.slane %v8917_v33, 7  ;;  %v2304_v40 = vrot.slane %v8912_v42, 7  ;;  %v2305_v49 = vrot.slane %v8915_v39, 7  ;;  %v6773_v30 = vrot.slane %v8913_v37, 7 }
 0x389   : > { %v6777_v36 = vrot.slane %v8914_v62, 7  ;;  %v6781_v54 = vrot.slane %v8916_v34, 7  ;;  %v6785_v57 = vrot.slane %v8918_v8, 7  ;;  %v6789_v42 = vrot.slane %v8919_v7, 7 }
 0x38a   : > { %v6793_v37 = vrot.slane %v8920_v45, 7  ;;  %v6797_v62 = vrot.slane %v8923_v5, 7  ;;  %v9305_v39 = vmax.f32 %v6682_v0, 0.0  ;;  %v9306_v33 = vmax.f32 %v6684_v48, 0.0 }
 0x38b   : > { %v9307_v27 = vmax.f32 %v6686_v10, 0.0  ;;  %v9308_v16 = vmax.f32 %v6688_v11, 0.0  ;;  %v9309_v28 = vmax.f32 %v6690_v59, 0.0  ;;  %v9310_v17 = vmax.f32 %v6695_v55, 0.0 }
 0x38c   : > { %v6801_v34 = vrot.slane %v9305_v39, 7  ;;  %v6805_v8 = vrot.slane %v9306_v33, 7  ;;  %v9311_v63 = vmax.f32 %v6697_v53, 0.0  ;;  %v9312_v46 = vmax.f32 %v6699_v25, 0.0 }
 0x38d   : > { %v6809_v7 = vrot.slane %v9307_v27, 7  ;;  %v6813_v45 = vrot.slane %v9308_v16, 7  ;;  %v6817_v5 = vrot.slane %v9309_v28, 7  ;;  %v6821_v39 = vrot.slane %v9310_v17, 7 }
 0x38e   : > { %v6825_v33 = vrot.slane %v9311_v63, 7  ;;  %v6829_v27 = vrot.slane %v9312_v46, 7  ;;  %v9313_v43 = vmax.f32 %v6703_v58, 0.0  ;;  %v9315_v18 = vmax.f32 %v6705_v35, 0.0 }
 0x38f   : > { %v9317_v51 = vmax.f32 %v6707_v60, 0.0  ;;  %v9318_v38 = vmax.f32 %v6709_v20, 0.0  ;;  %v9319_v61 = vmax.f32 %v6711_v3, 0.0  ;;  %v2389_v13 = vrot.slane %v2196_v41, 5 }
 0x390   : > { %v6833_v16 = vrot.slane %v9313_v43, 7  ;;  %v6837_v28 = vrot.slane %v9315_v18, 7  ;;  %v6853_v43 = vsel %vm272_vm0, %v2245_v32, %v6726_v50  ;;  %v6856_v18 = vsel %vm272_vm0, %v2298_v26, %v2299_v56 }
 0x391   : > { %v6841_v17 = vrot.slane %v9317_v51, 7  ;;  %v6845_v63 = vrot.slane %v9318_v38, 7  ;;  %v6849_v46 = vrot.slane %v9319_v61, 7  ;;  %9321 = vst [vmem:[#allocation60_spill] sm:$0xff] %v6853_v43  ;;  %v2486_v9 = vrot.slane %v6853_v43, 1 }
 0x392   : > { %9314 = vst [vmem:[#allocation23_spill] sm:$0xff] %v6833_v16  ;;  %9316 = vst [vmem:[#allocation30_spill] sm:$0xff] %v6837_v28  ;;  %v6860_v51 = vsel %vm272_vm0, %v2301_v47, %v2302_v44  ;;  %v6863_v38 = vsel %vm272_vm0, %v2304_v40, %v2305_v49  ;;  %v6868_v61 = vsel %vm272_vm0, %v6773_v30, %v6777_v36  ;;  %v9327_v60 = vmax.f32 %v6641_v22, 0.0 }
 0x393   : > { %9320 = vst [vmem:[#allocation31_spill] sm:$0xff] %v6849_v46  ;;  %9322 = vst [vmem:[#allocation50_spill] sm:$0xff] %v6863_v38  ;;  %v6873_v41 = vsel %vm272_vm0, %v6781_v54, %v6785_v57  ;;  %v6878_v50 = vsel %vm272_vm0, %v6789_v42, %v6793_v37  ;;  %v6883_v32 = vsel %vm272_vm0, %v6797_v62, %v6801_v34 }
 0x394   : > { %9323 = vst [vmem:[#allocation89_spill] sm:$0xff] %v6868_v61  ;;  %v6888_v43 = vsel %vm272_vm0, %v6805_v8, %v6809_v7  ;;  %v6891_v3 = vsel %vm462_vm1, %v2486_v9, %v2487_v31  ;;  %v6896_v20 = vsel %vm272_vm0, %v6813_v45, %v6817_v5  ;;  %v6901_v35 = vsel %vm272_vm0, %v6821_v39, %v6825_v33 }
 0x395   : > { %9324 = vst [vmem:[#allocation61_spill] sm:$0xff] %v6891_v3  ;;  %9325 = vst [vmem:[#allocation90_spill] sm:$0xff] %v6901_v35  ;;  %v6906_v23 = vsel %vm272_vm0, %v6829_v27, %v6833_v16  ;;  %v2390_v52 = vrot.slane %v9327_v60, 5  ;;  %2647 = vrot.lane.b32.xlu0 %v6891_v3, %s4662_s18  ;;  %v6915_v9 = vsel %vm272_vm0, %v6837_v28, %v6841_v17  ;;  %v9331_v60 = vmax.f32 %v6643_v4, 0.0 }
 0x396   : > { %9326 = vst [vmem:[#allocation51_spill] sm:$0xff] %v6906_v23  ;;  %9328 = vst [vmem:[#allocation29_spill] sm:$0xff] %v6915_v9  ;;  %v6920_v31 = vsel %vm272_vm0, %v6845_v63, %v6849_v46  ;;  %v6923_v35 = vsel %vm272_vm0, %v2246_v19, %v2298_v26  ;;  %v9330_v23 = vmax.f32 %v6645_v29, 0.0  ;;  %v6930_v3 = vsel %vm272_vm0, %v2247_v14, %v2301_v47 }
 0x397   : > { %9329 = vst [vmem:[#allocation28_spill] sm:$0xff] %v6920_v31  ;;  %v2248_v16 = vrot.slane %v9331_v60, 1  ;;  %v6933_v28 = vsel %vm272_vm0, %v2299_v56, %v2389_v13  ;;  %v2492_v9 = vrot.slane %v6856_v18, 1  ;;  %v2491_v31 = vrot.slane %v6923_v35, 1 }
 0x398   : > { %v2391_v22 = vrot.slane %v9330_v23, 5  ;;  %v2494_v46 = vrot.slane %v6933_v28, 1  ;;  %v6939_v26 = vsel %vm272_vm0, %v2302_v44, %v2390_v52  ;;  %v2497_v23 = vrot.slane %v6860_v51, 1 }
 0x399   : > { %v2499_v4 = vrot.slane %v6939_v26, 1  ;;  %v6947_v47 = vsel %vm462_vm1, %v2491_v31, %v2492_v9  ;;  %v2496_v13 = vrot.slane %v6930_v3, 1  ;;  %v9332_v14 = vmax.f32 %v6655_v15, 0.0 }
 0x39a   : > { %v6944_v29 = vsel %vm462_vm1, %v2492_v9, %v2494_v46  ;;  %v6951_v19 = vsel %vm272_vm0, %v2305_v49, %v2391_v22  ;;  %v9333_v52 = vmax.f32 %v6662_v2, 0.0  ;;  %v6958_v60 = vsel %vm272_vm0, %v2248_v16, %v2304_v40  ;;  %2651 = vrot.lane.b32.xlu0 %v6947_v47, %s4662_s18 }
 0x39b   : > { %v2249_v56 = vrot.slane %v9332_v14, 1  ;;  %2653 = vrot.lane.b32.xlu1 %v6944_v29, %s4662_s18  ;;  %v9334_v46 = vmax.f32 %v6664_v6, 0.0  ;;  %v2502_v49 = vrot.slane %v6863_v38, 1  ;;  %v2504_v15 = vrot.slane %v6951_v19, 1 }
 0x39c   : > { %v2392_v44 = vrot.slane %v9333_v52, 5  ;;  %v6969_v31 = vsel %vm462_vm1, %v2497_v23, %v2499_v4  ;;  %v6972_v2 = vsel %vm462_vm1, %v2496_v13, %v2497_v23  ;;  %v2501_v40 = vrot.slane %v6958_v60, 1 }
 0x39d   : > { %v2250_v9 = vrot.slane %v9334_v46, 1  ;;  %v9335_v16 = vmax.f32 %v6666_v12, 0.0  ;;  %v6979_v14 = vsel %vm272_vm0, %v2249_v56, %v6773_v30  ;;  %v6994_v12 = vsel %vm462_vm1, %v2502_v49, %v2504_v15 }
 0x39e   : > { %9336 = vst [vmem:[#allocation34_spill] sm:$0xff] %v6979_v14  ;;  %2655 = vrot.lane.b32.xlu0 %v6972_v2, %s4662_s18  ;;  %v6987_v6 = vsel %vm272_vm0, %v6777_v36, %v2392_v44  ;;  %v6997_v30 = vsel %vm462_vm1, %v2501_v40, %v2502_v49  ;;  %v2507_v4 = vrot.slane %v6868_v61, 1  ;;  %v2506_v56 = vrot.slane %v6979_v14, 1 }
 0x39f   : > { %v2393_v22 = vrot.slane %v9335_v16, 5  ;;  %2657 = vrot.lane.b32.xlu1 %v6969_v31, %s4662_s18  ;;  %v6991_v23 = vsel %vm272_vm0, %v2250_v9, %v6781_v54  ;;  %v2509_v13 = vrot.slane %v6987_v6, 1  ;;  %v9338_v52 = vmax.f32 %v6674_v24, 0.0 }
 0x3a0   : > { %9337 = vst [vmem:[#allocation62_spill] sm:$0xff] %v6991_v23  ;;  %v9339_v44 = vmax.f32 %v6676_v21, 0.0  ;;  %v9340_v9 = vmax.f32 %v6680_v1, 0.0  ;;  %v2512_v15 = vrot.slane %v6873_v41, 1  ;;  %v2511_v24 = vrot.slane %v6991_v23, 1 }
 0x3a1   : > { %v2251_v36 = vrot.slane %v9338_v52, 1  ;;  %v7012_v54 = vsel %vm272_vm0, %v6785_v57, %v2393_v22  ;;  %v7019_v21 = vsel %vm462_vm1, %v2507_v4, %v2509_v13  ;;  %v7022_v40 = vsel %vm462_vm1, %v2506_v56, %v2507_v4 }
 0x3a2   : > { %v2394_v46 = vrot.slane %v9339_v44, 5  ;;  %2659 = vrot.lane.b32.xlu0 %v6997_v30, %s4662_s18  ;;  %v2252_v49 = vrot.slane %v9340_v9, 1  ;;  %9341 = vst [vmem:[#allocation91_spill] sm:$0xff] %v7019_v21  ;;  %9342 = vst [vmem:[#allocation35_spill] sm:$0xff] %v7022_v40  ;;  %v2514_v16 = vrot.slane %v7012_v54, 1  ;;  %v9343_v52 = vmax.f32 %v6682_v0, 0.0 }
 0x3a3   : > { %2661 = vrot.lane.b32.xlu1 %v6994_v12, %s4662_s18  ;;  %v7029_v57 = vsel %vm272_vm0, %v2251_v36, %v6789_v42  ;;  %v7044_v0 = vsel %vm462_vm1, %v2511_v24, %v2512_v15  ;;  %v2517_v4 = vrot.slane %v6878_v50, 1  ;;  %v9346_v36 = vmax.f32 %v6684_v48, 0.0 }
 0x3a4   : > { %v2395_v44 = vrot.slane %v9343_v52, 5  ;;  %v7037_v1 = vsel %vm272_vm0, %v6793_v37, %v2394_v46  ;;  %v7041_v22 = vsel %vm272_vm0, %v2252_v49, %v6797_v62  ;;  %9344 = vst [vmem:[#allocation63_spill] sm:$0xff] %v7044_v0  ;;  %v7047_v42 = vsel %vm462_vm1, %v2512_v15, %v2514_v16 }
 0x3a5   : > { %9345 = vst [vmem:[#allocation52_spill] sm:$0xff] %v7047_v42  ;;  %v2519_v13 = vrot.slane %v7037_v1, 1  ;;  %v2516_v56 = vrot.slane %v7029_v57, 1  ;;  %v2253_v37 = vrot.slane %v9346_v36, 1  ;;  %v9347_v46 = vmax.f32 %v6686_v10, 0.0 }
 0x3a6   : > { %2663 = vrot.lane.b32.xlu0 %v7022_v40, %s4662_s18  ;;  %v7062_v62 = vsel %vm272_vm0, %v6801_v34, %v2395_v44  ;;  %v9348_v49 = vmax.f32 %v6688_v11, 0.0  ;;  %v2522_v24 = vrot.slane %v6883_v32, 1  ;;  %v2521_v48 = vrot.slane %v7041_v22, 1 }
 0x3a7   : > { %2665 = vrot.lane.b32.xlu1 %v7019_v21, %s4662_s18  ;;  %v2396_v9 = vrot.slane %v9347_v46, 5  ;;  %v7069_v10 = vsel %vm462_vm1, %v2517_v4, %v2519_v13  ;;  %v7072_v16 = vsel %vm462_vm1, %v2516_v56, %v2517_v4  ;;  %v2524_v52 = vrot.slane %v7062_v62, 1 }
 0x3a8   : > { %v2254_v15 = vrot.slane %v9348_v49, 1  ;;  %9349 = vst [vmem:[#allocation92_spill] sm:$0xff] %v7069_v10  ;;  %9350 = vst [vmem:[#allocation53_spill] sm:$0xff] %v7072_v16  ;;  %v9351_v36 = vmax.f32 %v6690_v59, 0.0  ;;  %v7079_v34 = vsel %vm272_vm0, %v2253_v37, %v6805_v8  ;;  %v9352_v44 = vmax.f32 %v6695_v55, 0.0 }
 0x3a9   : > { %v7087_v11 = vsel %vm272_vm0, %v6809_v7, %v2396_v9  ;;  %v9353_v59 = vmax.f32 %v6697_v53, 0.0  ;;  %v7098_v56 = vsel %vm462_vm1, %v2521_v48, %v2522_v24  ;;  %v7101_v37 = vsel %vm462_vm1, %v2522_v24, %v2524_v52 }
 0x3aa   : > { %2667 = vrot.lane.b32.xlu0 %v7044_v0, %s4662_s18  ;;  %v2397_v46 = vrot.slane %v9351_v36, 5  ;;  %v2255_v4 = vrot.slane %v9352_v44, 1  ;;  %v7095_v8 = vsel %vm272_vm0, %v2254_v15, %v6813_v45  ;;  %9354 = vst [vmem:[#allocation33_spill] sm:$0xff] %v7098_v56  ;;  %9355 = vst [vmem:[#allocation64_spill] sm:$0xff] %v7101_v37  ;;  %v2527_v49 = vrot.slane %v6888_v43, 1  ;;  %v9361_v44 = vld [vmem:[#allocation45_spill] sm:$0xff] }
 0x3ab   : > { %2669 = vrot.lane.b32.xlu1 %v7047_v42, %s4662_s18  ;;  %v2398_v13 = vrot.slane %v9353_v59, 5  ;;  %v2529_v7 = vrot.slane %v7087_v11, 1  ;;  %v2526_v55 = vrot.slane %v7079_v34, 1  ;;  %v9356_v45 = vmax.f32 %v6699_v25, 0.0  ;;  %v9383_v42 = vld [vmem:[#allocation58_spill] sm:$0xff] }
 0x3ac   : > { %v7112_v53 = vsel %vm272_vm0, %v6817_v5, %v2397_v46  ;;  %v7118_v15 = vsel %vm272_vm0, %v2255_v4, %v6821_v39  ;;  %v2532_v24 = vrot.slane %v6896_v20, 1  ;;  %v2531_v48 = vrot.slane %v7095_v8, 1 }
 0x3ad   : > { %v2256_v9 = vrot.slane %v9356_v45, 1  ;;  %9357 = vst [vmem:[#allocation32_spill] sm:$0xff] %v7118_v15  ;;  %v7123_v52 = vsel %vm462_vm1, %v2527_v49, %v2529_v7  ;;  %v7126_v36 = vsel %vm462_vm1, %v2526_v55, %v2527_v49  ;;  %v2534_v5 = vrot.slane %v7112_v53, 1  ;;  %v9364_v7 = vld [vmem:[#allocation90_spill] sm:$0xff] }
 0x3ae   : > { %2671 = vrot.lane.b32.xlu0 %v7072_v16, %s4662_s18  ;;  %9358 = vst [vmem:[#allocation2_spill] sm:$0xff] %v7123_v52  ;;  %9359 = vst [vmem:[#allocation38_spill] sm:$0xff] %v7126_v36  ;;  %v7131_v25 = vsel %vm272_vm0, %v6825_v33, %v2398_v13  ;;  %v9360_v46 = vmax.f32 %v6703_v58, 0.0  ;;  %v9362_v4 = vmax.f32 %v9361_v44, 0.0  ;;  %v2537_v55 = vrot.slane %v9364_v7, 1  ;;  %v9365_v13 = vld [vmem:[#allocation27_spill] sm:$0xff] }
 0x3af   : > { %2673 = vrot.lane.b32.xlu1 %v7069_v10, %s4662_s18  ;;  %v7143_v49 = vsel %vm272_vm0, %v2256_v9, %v6829_v27  ;;  %v2539_v33 = vrot.slane %v7131_v25, 1  ;;  %v2536_v58 = vrot.slane %v7118_v15, 1  ;;  %v9366_v45 = vmax.f32 %v9365_v13, 0.0  ;;  %v9369_v44 = vld [vmem:[#allocation21_spill] sm:$0xff]  ;;  %v9371_v27 = vld [vmem:[#allocation26_spill] sm:$0xff]  ;;  %v9373_v13 = vld [vmem:[#allocation23_spill] sm:$0xff] }
 0x3b0   : > { %v2399_v39 = vrot.slane %v9360_v46, 5  ;;  %v2259_v59 = vrot.slane %v9362_v4, 1  ;;  %9363 = vst [vmem:[#allocation65_spill] sm:$0xff] %v7143_v49  ;;  %v9370_v4 = vmax.f32 %v9369_v44, 0.0  ;;  %v9372_v9 = vmax.f32 %v9371_v27, 0.0 }
 0x3b1   : > { %v2400_v46 = vrot.slane %v9366_v45, 5  ;;  %v2541_v44 = vrot.slane %v7143_v49, 1  ;;  %v7176_v27 = vsel %vm462_vm1, %v2536_v58, %v2537_v55  ;;  %v9384_v0 = vmax.f32 %v9383_v42, 0.0  ;;  %v9385_v58 = vld [vmem:[#allocation30_spill] sm:$0xff] }
 0x3b2   : > { %2675 = vrot.lane.b32.xlu0 %v7098_v56, %s4662_s18  ;;  %v2257_v56 = vrot.slane %v9372_v9, 1  ;;  %v7166_v45 = vsel %vm272_vm0, %v9373_v13, %v2399_v39  ;;  %9378 = vst [vmem:[#allocation55_spill] sm:$0xff] %v7176_v27  ;;  %v9379_v9 = vld [vmem:[#allocation46_spill] sm:$0xff] }
 0x3b3   : > { %2677 = vrot.lane.b32.xlu1 %v7101_v37, %s4662_s18  ;;  %v2402_v37 = vrot.slane %v9370_v4, 5  ;;  %v7173_v4 = vsel %vm462_vm1, %v2537_v55, %v2539_v33  ;;  %v2544_v13 = vrot.slane %v7166_v45, 1  ;;  %v2401_v55 = vrot.slane %v9384_v0, 5 }
 0x3b4   : > { %9377 = vst [vmem:[#allocation54_spill] sm:$0xff] %v7173_v4  ;;  %v7194_v21 = vsel %vm272_vm0, %v2257_v56, %v9385_v58  ;;  %v9390_v56 = vld [vmem:[#allocation29_spill] sm:$0xff] }
 0x3b5   : > { %9386 = vst [vmem:[#allocation101_spill] sm:$0xff] %v7194_v21  ;;  %v2547_v58 = vrot.slane %v9390_v56, 1 }
 0x3b6   : > { %2679 = vrot.lane.b32.xlu0 %v7126_v36, %s4662_s18  ;;  %v7154_v36 = vsel %vm462_vm1, %v2531_v48, %v2532_v24  ;;  %v9376_v48 = vld [vmem:[#allocation51_spill] sm:$0xff] }
 0x3b7   : > { %2681 = vrot.lane.b32.xlu1 %v7123_v52, %s4662_s18  ;;  %v7151_v52 = vsel %vm462_vm1, %v2532_v24, %v2534_v5  ;;  %9368 = vst [vmem:[#allocation39_spill] sm:$0xff] %v7154_v36  ;;  %v9374_v5 = vld [vmem:[#allocation48_spill] sm:$0xff]  ;;  %v2542_v16 = vrot.slane %v9376_v48, 1 }
 0x3b8   : > { %9367 = vst [vmem:[#allocation93_spill] sm:$0xff] %v7151_v52  ;;  %v9375_v10 = vmax.f32 %v9374_v5, 0.0 }
 0x3ba   : > { %2683 = vrot.lane.b32.xlu0 %v7154_v36, %s4662_s18  ;;  %v2258_v24 = vrot.slane %v9375_v10, 1  ;;  %v9381_v36 = vld [vmem:[#allocation25_spill] sm:$0xff]  ;;  %v7186_v10 = vsel %vm272_vm0, %v6841_v17, %v2400_v46 }
 0x3bb   : > { %2685 = vrot.lane.b32.xlu1 %v7151_v52, %s4662_s18  ;;  %v7180_v52 = vsel %vm272_vm0, %v2259_v59, %v9379_v9  ;;  %v2634_v39 = vrot.slane %v9381_v36, 1  ;;  %9382 = vst [vmem:[#allocation3_spill] sm:$0xff] %v7186_v10  ;;  %v2639_v17 = vrot.slane %v9381_v36, 2  ;;  %v9387_v59 = vld [vmem:[#allocation22_spill] sm:$0xff]  ;;  %v7215_v36 = vsel %vm462_vm1, %v2542_v16, %v2544_v13 }
 0x3bc   : > { %9380 = vst [vmem:[#allocation66_spill] sm:$0xff] %v7180_v52  ;;  %v2633_v5 = vrot.slane %v7180_v52, 1  ;;  %v2638_v33 = vrot.slane %v7180_v52, 2  ;;  %v2450_v46 = vsel %vm272_vm0, %v9387_v59, %v2402_v37  ;;  %v7207_v52 = vsel %vm462_vm1, %v2541_v44, %v2542_v16  ;;  %9392 = vst [vmem:[#allocation7_spill] sm:$0xff] %v7215_v36  ;;  %v9396_v16 = vld [vmem:[#allocation31_spill] sm:$0xff] }
 0x3bd   : > { %v2636_v42 = vrot.slane %v2450_v46, 1  ;;  %v2641_v0 = vrot.slane %v2450_v46, 2  ;;  %9389 = vst [vmem:[#allocation36_spill] sm:$0xff] %v7207_v52  ;;  %v2546_v37 = vrot.slane %v7194_v21, 1  ;;  %v7226_v44 = vsel %vm272_vm0, %v2258_v24, %v6845_v63 }
 0x3be   : > { %2687 = vrot.lane.b32.xlu0 %v7176_v27, %s4662_s18  ;;  %v7204_v9 = vsel %vm462_vm1, %v2633_v5, %v2634_v39  ;;  %v7212_v40 = vsel %vm538_vm2, %v2638_v33, %v2639_v17  ;;  %9395 = vst [vmem:[#allocation102_spill] sm:$0xff] %v7226_v44  ;;  %v7234_v13 = vsel %vm272_vm0, %v9396_v16, %v2401_v55  ;;  %v9398_v33 = vld [vmem:[#allocation28_spill] sm:$0xff]  ;;  %v2551_v24 = vrot.slane %v7226_v44, 1  ;;  %v9401_v55 = vld [vmem:[#allocation47_spill] sm:$0xff] }
 0x3bf   : > { %2689 = vrot.lane.b32.xlu1 %v7173_v4, %s4662_s18  ;;  %9388 = vst [vmem:[#allocation37_spill] sm:$0xff] %v7204_v9  ;;  %v2549_v4 = vrot.slane %v7186_v10, 1  ;;  %9391 = vst [vmem:[#allocation67_spill] sm:$0xff] %v7212_v40  ;;  %v7219_v5 = vsel %vm462_vm1, %v2634_v39, %v2636_v42  ;;  %v7222_v59 = vsel %vm538_vm2, %v2639_v17, %v2641_v0  ;;  %v2552_v39 = vrot.slane %v9398_v33, 1  ;;  %v9405_v16 = vld [vmem:[#allocation87_spill] sm:$0xff] }
 0x3c0   : > { %9393 = vst [vmem:[#allocation40_spill] sm:$0xff] %v7219_v5  ;;  %9394 = vst [vmem:[#allocation4_spill] sm:$0xff] %v7222_v59  ;;  %v7241_v17 = vsel %vm462_vm1, %v2546_v37, %v2547_v58  ;;  %v2554_v63 = vrot.slane %v7234_v13, 1  ;;  %v2557_v42 = vrot.slane %v9401_v55, 2  ;;  %v2556_v59 = vrot.slane %v9405_v16, 2  ;;  %v9406_v5 = vld [vmem:[#allocation59_spill] sm:$0xff] }
 0x3c1   : > { %9397 = vst [vmem:[#allocation43_spill] sm:$0xff] %v7234_v13  ;;  %v7238_v46 = vsel %vm462_vm1, %v2547_v58, %v2549_v4  ;;  %9400 = vst [vmem:[#allocation56_spill] sm:$0xff] %v7241_v17  ;;  %v7254_v4 = vsel %vm462_vm1, %v2551_v24, %v2552_v39  ;;  %v9404_v58 = vld [vmem:[#allocation20_spill] sm:$0xff]  ;;  %v2562_v40 = vrot.slane %v9406_v5, 2 }
 0x3c2   : > { %2691 = vrot.lane.b32.xlu0 %v7207_v52, %s4662_s18  ;;  %9399 = vst [vmem:[#allocation41_spill] sm:$0xff] %v7238_v46  ;;  %v7251_v0 = vsel %vm462_vm1, %v2552_v39, %v2554_v63  ;;  %9403 = vst [vmem:[#allocation57_spill] sm:$0xff] %v7254_v4  ;;  %v2559_v37 = vrot.slane %v9404_v58, 2  ;;  %v7267_v63 = vsel %vm538_vm2, %v2556_v59, %v2557_v42  ;;  %v9407_v39 = vld [vmem:[#allocation88_spill] sm:$0xff]  ;;  %v2569_v59 = vrot.slane %v6933_v28, 2 }
 0x3c3   : > { %2693 = vrot.lane.b32.xlu1 %v7215_v36, %s4662_s18  ;;  %9402 = vst [vmem:[#allocation84_spill] sm:$0xff] %v7251_v0  ;;  %v2564_v24 = vrot.slane %v9407_v39, 2  ;;  %v9408_v13 = vld [vmem:[#allocation60_spill] sm:$0xff]  ;;  %v2572_v39 = vrot.slane %v6860_v51, 2  ;;  %v2571_v28 = vrot.slane %v6930_v3, 2 }
 0x3c4   : > { %v7264_v9 = vsel %vm538_vm2, %v2557_v42, %v2559_v37  ;;  %v2561_v58 = vrot.slane %v9408_v13, 2  ;;  %v2566_v42 = vrot.slane %v6923_v35, 2 }
 0x3c5   : > { %v7277_v33 = vsel %vm538_vm2, %v2562_v40, %v2564_v24 }
 0x3c6   : > { %2695 = vrot.lane.b32.xlu0 %v7241_v17, %s4662_s18  ;;  %v7280_v37 = vsel %vm538_vm2, %v2561_v58, %v2562_v40  ;;  %v2574_v40 = vrot.slane %v6939_v26, 2  ;;  %v2577_v58 = vrot.slane %v6863_v38, 2  ;;  %v2576_v26 = vrot.slane %v6958_v60, 2 }
 0x3c7   : > { %2697 = vrot.lane.b32.xlu1 %v7238_v46, %s4662_s18 }
 0x3c8   : > { %v7303_v44 = vsel %vm538_vm2, %v2572_v39, %v2574_v40  ;;  %v7319_v40 = vsel %vm538_vm2, %v2576_v26, %v2577_v58  ;;  %v2592_v26 = vrot.slane %v6878_v50, 2 }
 0x3ca   : > { %2699 = vrot.lane.b32.xlu0 %v7254_v4, %s4662_s18 }
 0x3cb   : > { %2701 = vrot.lane.b32.xlu1 %v7251_v0, %s4662_s18  ;;  %v2567_v0 = vrot.slane %v6856_v18, 2 }
 0x3cd   : > { %v7290_v4 = vsel %vm538_vm2, %v2567_v0, %v2569_v59  ;;  %v7293_v24 = vsel %vm538_vm2, %v2566_v42, %v2567_v0  ;;  %v7306_v59 = vsel %vm538_vm2, %v2571_v28, %v2572_v39  ;;  %v2579_v0 = vrot.slane %v6951_v19, 2 }
 0x3ce   : > { %2733 = vrot.lane.b32.xlu0 %v7267_v63, %s4663_s19  ;;  %v2582_v42 = vrot.slane %v6868_v61, 2  ;;  %v2584_v39 = vrot.slane %v6987_v6, 2  ;;  %v2581_v19 = vrot.slane %v6979_v14, 2  ;;  %v2587_v28 = vrot.slane %v6873_v41, 2 }
 0x3cf   : > { %2735 = vrot.lane.b32.xlu1 %v7264_v9, %s4663_s19  ;;  %v7316_v10 = vsel %vm538_vm2, %v2577_v58, %v2579_v0  ;;  %v2589_v58 = vrot.slane %v7012_v54, 2  ;;  %v2586_v6 = vrot.slane %v6991_v23, 2  ;;  %v2591_v54 = vrot.slane %v7029_v57, 2 }
 0x3d0   : > { %v7329_v46 = vsel %vm538_vm2, %v2582_v42, %v2584_v39  ;;  %v7332_v0 = vsel %vm538_vm2, %v2581_v19, %v2582_v42  ;;  %v2594_v42 = vrot.slane %v7037_v1, 2  ;;  %v2597_v19 = vrot.slane %v6883_v32, 2 }
 0x3d1   : > { %v7342_v56 = vsel %vm538_vm2, %v2587_v28, %v2589_v58  ;;  %v7345_v39 = vsel %vm538_vm2, %v2586_v6, %v2587_v28  ;;  %v7358_v58 = vsel %vm538_vm2, %v2591_v54, %v2592_v26  ;;  %v2599_v28 = vrot.slane %v7062_v62, 2 }
 0x3d2   : > { %2737 = vrot.lane.b32.xlu0 %v7280_v37, %s4663_s19  ;;  %v7355_v17 = vsel %vm538_vm2, %v2592_v26, %v2594_v42  ;;  %v2596_v1 = vrot.slane %v7041_v22, 2  ;;  %v2602_v6 = vrot.slane %v6888_v43, 2  ;;  %v2604_v26 = vrot.slane %v7087_v11, 2 }
 0x3d3   : > { %2739 = vrot.lane.b32.xlu1 %v7277_v33, %s4663_s19  ;;  %v7368_v21 = vsel %vm538_vm2, %v2597_v19, %v2599_v28  ;;  %v2601_v62 = vrot.slane %v7079_v34, 2  ;;  %v2607_v54 = vrot.slane %v6896_v20, 2  ;;  %v2606_v11 = vrot.slane %v7095_v8, 2 }
 0x3d4   : > { %v7371_v42 = vsel %vm538_vm2, %v2596_v1, %v2597_v19  ;;  %v7381_v36 = vsel %vm538_vm2, %v2602_v6, %v2604_v26  ;;  %v2609_v19 = vrot.slane %v7112_v53, 2  ;;  %v2612_v1 = vrot.slane %v9364_v7, 2 }
 0x3d5   : > { %v7384_v28 = vsel %vm538_vm2, %v2601_v62, %v2602_v6  ;;  %v7397_v26 = vsel %vm538_vm2, %v2606_v11, %v2607_v54  ;;  %v2614_v6 = vrot.slane %v7131_v25, 2  ;;  %v2611_v53 = vrot.slane %v7118_v15, 2 }
 0x3d6   : > { %2741 = vrot.lane.b32.xlu0 %v7293_v24, %s4663_s19  ;;  %v7394_v52 = vsel %vm538_vm2, %v2607_v54, %v2609_v19  ;;  %v2617_v62 = vrot.slane %v9376_v48, 2  ;;  %v2619_v54 = vrot.slane %v7166_v45, 2  ;;  %v2616_v25 = vrot.slane %v7143_v49, 2 }
 0x3d7   : > { %2743 = vrot.lane.b32.xlu1 %v7290_v4, %s4663_s19  ;;  %v7407_v7 = vsel %vm538_vm2, %v2612_v1, %v2614_v6  ;;  %v7410_v19 = vsel %vm538_vm2, %v2611_v53, %v2612_v1  ;;  %v9413_v6 = vld [vmem:[#allocation24_spill] sm:$0xff]  ;;  %v9414_v53 = vld [vmem:[#allocation61_spill] sm:$0xff] }
 0x3d8   : > { %9409 = vst [vmem:[#allocation68_spill] sm:$0xff] %v7407_v7  ;;  %9410 = vst [vmem:[#allocation11_spill] sm:$0xff] %v7410_v19  ;;  %v7419_v11 = vsel %vm538_vm2, %v2617_v62, %v2619_v54  ;;  %v7422_v48 = vsel %vm538_vm2, %v2616_v25, %v2617_v62  ;;  %v2223_v25 = vld [vmem:[%s8794_s2] sm:$0xff] }
 0x3d9   : > { %9411 = vst [vmem:[#allocation85_spill] sm:$0xff] %v7419_v11  ;;  %9412 = vst [vmem:[#allocation86_spill] sm:$0xff] %v7422_v48 }
 0x3da   : > { %2745 = vrot.lane.b32.xlu0 %v7306_v59, %s4663_s19 }
 0x3db   : > { %2747 = vrot.lane.b32.xlu1 %v7303_v44, %s4663_s19 }
 0x3de   : > { %2749 = vrot.lane.b32.xlu0 %v7319_v40, %s4663_s19 }
 0x3df   : > { %2751 = vrot.lane.b32.xlu1 %v7316_v10, %s4663_s19 }
 0x3e2   : > { %2753 = vrot.lane.b32.xlu0 %v7332_v0, %s4663_s19 }
 0x3e3   : > { %2755 = vrot.lane.b32.xlu1 %v7329_v46, %s4663_s19 }
 0x3e6   : > { %2757 = vrot.lane.b32.xlu0 %v7345_v39, %s4663_s19 }
 0x3e7   : > { %2759 = vrot.lane.b32.xlu1 %v7342_v56, %s4663_s19 }
 0x3ea   : > { %2761 = vrot.lane.b32.xlu0 %v7358_v58, %s4663_s19 }
 0x3eb   : > { %2763 = vrot.lane.b32.xlu1 %v7355_v17, %s4663_s19 }
 0x3ee   : > { %2765 = vrot.lane.b32.xlu0 %v7371_v42, %s4663_s19 }
 0x3ef   : > { %2767 = vrot.lane.b32.xlu1 %v7368_v21, %s4663_s19 }
 0x3f1   : > { %v7428_v45 = vpop.permute.xlu1 %2645 }
 0x3f2   : > { %2769 = vrot.lane.b32.xlu0 %v7384_v28, %s4663_s19 }
 0x3f3   : > { %2771 = vrot.lane.b32.xlu1 %v7381_v36, %s4663_s19 }
 0x3f6   : > { %2773 = vrot.lane.b32.xlu0 %v7397_v26, %s4663_s19 }
 0x3f7   : > { %2775 = vrot.lane.b32.xlu1 %v7394_v52, %s4663_s19  ;;  %v7430_v1 = vpop.permute.xlu0 %2643 }
 0x3fa   : > { %2777 = vrot.lane.b32.xlu0 %v7410_v19, %s4663_s19  ;;  %v7440_v62 = vpop.permute.xlu1 %2649 }
 0x3fb   : > { %2779 = vrot.lane.b32.xlu1 %v7407_v7, %s4663_s19  ;;  %v9415_v7 = vld [vmem:[#allocation49_spill] sm:$0xff] }
 0x3fe   : > { %2781 = vrot.lane.b32.xlu0 %v7422_v48, %s4663_s19 }
 0x3ff   : > { %2783 = vrot.lane.b32.xlu1 %v7419_v11, %s4663_s19 }
 0x402   : > { %2823 = vrot.lane.b32.xlu0 %v9408_v13, %s4664_s20 }
 0x403   : > { %2825 = vrot.lane.b32.xlu1 %v9406_v5, %s4664_s20 }
 0x406   : > { %2919 = vrot.lane.b32.xlu0 %v9414_v53, %s4665_s21 }
 0x407   : > { %2921 = vrot.lane.b32.xlu1 %v9413_v6, %s4665_s21  ;;  %v7442_v54 = vpop.permute.xlu0 %2647  ;;  %v2224_v6 = vld [vmem:[%s8794_s2 + $0x8] sm:$0xff] }
 0x408   : > { %v4594_v11 = vpack.c.bf16 %v2224_v6, %v2223_v25 }
 0x40a   : > { %3015 = vrot.lane.b32.xlu0 %v7280_v37, %s4666_s30  ;;  %4595 = vmatprep.subr.bf16.mxu1 %v4594_v11  ;;  %v2226_v37 = vld [vmem:[%s8794_s2 + $0x18] sm:$0xff] }
 0x40b   : > { %3017 = vrot.lane.b32.xlu1 %v7277_v33, %s4666_s30  ;;  %4597 = vmatpush3.bf16.msra.mxu1 %v4594_v11  ;;  %v2225_v33 = vld [vmem:[%s8794_s2 + $0x10] sm:$0xff]  ;;  %v2227_v11 = vld [vmem:[%s8794_s2 + $0x20] sm:$0xf] }
 0x40c   : > { %v7456_v48 = vpop.permute.xlu0 %2651  ;;  %v4598_v49 = vpack.c.bf16 %v2226_v37, %v2225_v33 }
 0x40d   : > { %v7454_v53 = vpop.permute.xlu1 %2653 }
 0x40e   : > { %3111 = vrot.lane.b32.xlu0 %v9405_v16, %s4667_s6  ;;  %4599 = vmatprep.subr.bf16.mxu1 %v4598_v49 }
 0x40f   : > { %2827 = vrot.lane.b32.xlu1 %v9405_v16, %s4664_s20  ;;  %4601 = vmatpush3.bf16.msra.mxu1 %v4598_v49 }
 0x410   : > { %v7470_v6 = vpop.permute.xlu0 %2655  ;;  %4536 = vmatprep.subr.msk.mxu1 %vm1721_vm3, %v2227_v11 }
 0x411   : > { %v7468_v25 = vpop.permute.xlu1 %2657 }
 0x412   : > { %3113 = vrot.lane.b32.xlu0 %v9401_v55, %s4667_s6 }
 0x413   : > { %3201 = vrot.lane.b32.xlu1 %v9415_v7, %s4668_s7  ;;  %4537 = vmatpush3.msk.msra.mxu1 %vm1721_vm3, %v2227_v11 }
 0x414   : > { %v7481_v27 = vpop.permute.xlu0 %2659 }
 0x415   : > { %v7479_v19 = vpop.permute.xlu1 %2661 }
 0x416   : > { %9416 = vst [vmem:[#allocation5_spill] sm:$0xff] %v7479_v19  ;;  %2829 = vrot.lane.b32.xlu0 %v9401_v55, %s4664_s20  ;;  %v9419_v19 = vld [vmem:[#allocation19_spill] sm:$0xff] }
 0x417   : > { %2923 = vrot.lane.b32.xlu1 %v9415_v7, %s4665_s21 }
 0x418   : > { %v7490_v37 = vpop.permute.xlu0 %2663 }
 0x419   : > { %v7488_v33 = vpop.permute.xlu1 %2665  ;;  %9418 = vst [vmem:[#allocation44_spill] sm:$0xff] %v7490_v37 }
 0x41a   : > { %9417 = vst [vmem:[#allocation103_spill] sm:$0xff] %v7488_v33  ;;  %3203 = vrot.lane.b32.xlu0 %v9419_v19, %s4668_s7 }
 0x41b   : > { %3291 = vrot.lane.b32.xlu1 %v7267_v63, %s4669_s8 }
 0x41c   : > { %v7499_v15 = vpop.permute.xlu0 %2667 }
 0x41d   : > { %v7497_v49 = vpop.permute.xlu1 %2669  ;;  %9421 = vst [vmem:[#allocation10_spill] sm:$0xff] %v7499_v15 }
 0x41e   : > { %9420 = vst [vmem:[#allocation69_spill] sm:$0xff] %v7497_v49  ;;  %2925 = vrot.lane.b32.xlu0 %v9419_v19, %s4665_s21 }
 0x41f   : > { %3019 = vrot.lane.b32.xlu1 %v7267_v63, %s4666_s30 }
 0x420   : > { %v7507_v33 = vpop.permute.xlu0 %2671 }
 0x421   : > { %v7505_v7 = vpop.permute.xlu1 %2673  ;;  %9423 = vst [vmem:[#allocation104_spill] sm:$0xff] %v7507_v33 }
 0x422   : > { %9422 = vst [vmem:[#allocation6_spill] sm:$0xff] %v7505_v7  ;;  %3293 = vrot.lane.b32.xlu0 %v7264_v9, %s4669_s8 }
 0x423   : > { %3021 = vrot.lane.b32.xlu1 %v7264_v9, %s4666_s30 }
 0x424   : > { %v7515_v49 = vpop.permute.xlu0 %2675 }
 0x425   : > { %v7513_v11 = vpop.permute.xlu1 %2677  ;;  %9425 = vst [vmem:[#allocation12_spill] sm:$0xff] %v7515_v49 }
 0x426   : > { %9424 = vst [vmem:[#allocation70_spill] sm:$0xff] %v7513_v11  ;;  %3115 = vrot.lane.b32.xlu0 %v6923_v35, %s4667_s6 }
 0x427   : > { %2831 = vrot.lane.b32.xlu1 %v6923_v35, %s4664_s20 }
 0x428   : > { %v7523_v19 = vpop.permute.xlu0 %2679 }
 0x429   : > { %v7521_v63 = vpop.permute.xlu1 %2681  ;;  %9427 = vst [vmem:[#allocation105_spill] sm:$0xff] %v7523_v19 }
 0x42a   : > { %9426 = vst [vmem:[#allocation8_spill] sm:$0xff] %v7521_v63  ;;  %3117 = vrot.lane.b32.xlu0 %v6856_v18, %s4667_s6 }
 0x42b   : > { %3205 = vrot.lane.b32.xlu1 %v6947_v47, %s4668_s7 }
 0x42c   : > { %v7531_v11 = vpop.permute.xlu0 %2683 }
 0x42d   : > { %v7529_v9 = vpop.permute.xlu1 %2685  ;;  %9429 = vst [vmem:[#allocation13_spill] sm:$0xff] %v7531_v11 }
 0x42e   : > { %9428 = vst [vmem:[#allocation71_spill] sm:$0xff] %v7529_v9  ;;  %2833 = vrot.lane.b32.xlu0 %v6856_v18, %s4664_s20 }
 0x42f   : > { %2927 = vrot.lane.b32.xlu1 %v6947_v47, %s4665_s21 }
 0x430   : > { %v7539_v63 = vpop.permute.xlu0 %2687 }
 0x431   : > { %v7537_v49 = vpop.permute.xlu1 %2689  ;;  %9431 = vst [vmem:[#allocation106_spill] sm:$0xff] %v7539_v63 }
 0x432   : > { %9430 = vst [vmem:[#allocation9_spill] sm:$0xff] %v7537_v49  ;;  %3207 = vrot.lane.b32.xlu0 %v6944_v29, %s4668_s7 }
 0x433   : > { %3295 = vrot.lane.b32.xlu1 %v7293_v24, %s4669_s8 }
 0x434   : > { %v7547_v9 = vpop.permute.xlu0 %2691 }
 0x435   : > { %v7545_v19 = vpop.permute.xlu1 %2693  ;;  %9433 = vst [vmem:[#allocation14_spill] sm:$0xff] %v7547_v9 }
 0x436   : > { %9432 = vst [vmem:[#allocation72_spill] sm:$0xff] %v7545_v19  ;;  %2929 = vrot.lane.b32.xlu0 %v6944_v29, %s4665_s21 }
 0x437   : > { %3023 = vrot.lane.b32.xlu1 %v7293_v24, %s4666_s30 }
 0x438   : > { %v7555_v49 = vpop.permute.xlu0 %2695 }
 0x439   : > { %v7553_v47 = vpop.permute.xlu1 %2697  ;;  %9435 = vst [vmem:[#allocation73_spill] sm:$0xff] %v7555_v49 }
 0x43a   : > { %9434 = vst [vmem:[#allocation107_spill] sm:$0xff] %v7553_v47  ;;  %3297 = vrot.lane.b32.xlu0 %v7290_v4, %s4669_s8 }
 0x43b   : > { %3025 = vrot.lane.b32.xlu1 %v7290_v4, %s4666_s30 }
 0x43c   : > { %v7563_v19 = vpop.permute.xlu0 %2699 }
 0x43d   : > { %v7561_v63 = vpop.permute.xlu1 %2701  ;;  %9437 = vst [vmem:[#allocation108_spill] sm:$0xff] %v7563_v19 }
 0x43e   : > { %9436 = vst [vmem:[#allocation15_spill] sm:$0xff] %v7561_v63  ;;  %3119 = vrot.lane.b32.xlu0 %v6930_v3, %s4667_s6 }
 0x43f   : > { %2835 = vrot.lane.b32.xlu1 %v6930_v3, %s4664_s20 }
 0x440   : > { %v7571_v24 = vpop.permute.xlu0 %2733 }
 0x441   : > { %v7569_v29 = vpop.permute.xlu1 %2735 }
 0x442   : > { %3121 = vrot.lane.b32.xlu0 %v6860_v51, %s4667_s6 }
 0x443   : > { %3209 = vrot.lane.b32.xlu1 %v6972_v2, %s4668_s7 }
 0x444   : > { %v7579_v63 = vpop.permute.xlu0 %2737 }
 0x445   : > { %v7577_v4 = vpop.permute.xlu1 %2739 }
 0x446   : > { %2837 = vrot.lane.b32.xlu0 %v6860_v51, %s4664_s20 }
 0x447   : > { %2931 = vrot.lane.b32.xlu1 %v6972_v2, %s4665_s21 }
 0x448   : > { %v7587_v19 = vpop.permute.xlu0 %2741 }
 0x449   : > { %v7585_v47 = vpop.permute.xlu1 %2743 }
 0x44a   : > { %3211 = vrot.lane.b32.xlu0 %v6969_v31, %s4668_s7 }
 0x44b   : > { %3299 = vrot.lane.b32.xlu1 %v7306_v59, %s4669_s8 }
 0x44c   : > { %v7595_v9 = vpop.permute.xlu0 %2745 }
 0x44d   : > { %v7593_v49 = vpop.permute.xlu1 %2747 }
 0x44e   : > { %2933 = vrot.lane.b32.xlu0 %v6969_v31, %s4665_s21 }
 0x44f   : > { %3027 = vrot.lane.b32.xlu1 %v7306_v59, %s4666_s30 }
 0x450   : > { %v7603_v11 = vpop.permute.xlu0 %2749 }
 0x451   : > { %v7601_v2 = vpop.permute.xlu1 %2751 }
 0x452   : > { %9438 = vst [vmem:[#allocation74_spill] sm:$0xff] %v7601_v2  ;;  %3301 = vrot.lane.b32.xlu0 %v7303_v44, %s4669_s8 }
 0x453   : > { %3029 = vrot.lane.b32.xlu1 %v7303_v44, %s4666_s30 }
 0x454   : > { %v7611_v33 = vpop.permute.xlu0 %2753 }
 0x455   : > { %v7609_v7 = vpop.permute.xlu1 %2755  ;;  %9440 = vst [vmem:[#allocation109_spill] sm:$0xff] %v7611_v33 }
 0x456   : > { %9439 = vst [vmem:[#allocation16_spill] sm:$0xff] %v7609_v7  ;;  %3123 = vrot.lane.b32.xlu0 %v6958_v60, %s4667_s6 }
 0x457   : > { %2839 = vrot.lane.b32.xlu1 %v6958_v60, %s4664_s20 }
 0x458   : > { %v7619_v59 = vpop.permute.xlu0 %2757 }
 0x459   : > { %v7617_v31 = vpop.permute.xlu1 %2759  ;;  %9442 = vst [vmem:[#allocation17_spill] sm:$0xff] %v7619_v59 }
 0x45a   : > { %9441 = vst [vmem:[#allocation75_spill] sm:$0xff] %v7617_v31  ;;  %3125 = vrot.lane.b32.xlu0 %v6863_v38, %s4667_s6 }
 0x45b   : > { %3213 = vrot.lane.b32.xlu1 %v6997_v30, %s4668_s7 }
 0x45c   : > { %v7627_v15 = vpop.permute.xlu0 %2761 }
 0x45d   : > { %v7625_v44 = vpop.permute.xlu1 %2763  ;;  %9444 = vst [vmem:[#allocation76_spill] sm:$0xff] %v7627_v15 }
 0x45e   : > { %9443 = vst [vmem:[#allocation110_spill] sm:$0xff] %v7625_v44  ;;  %2841 = vrot.lane.b32.xlu0 %v6863_v38, %s4664_s20 }
 0x45f   : > { %2935 = vrot.lane.b32.xlu1 %v6997_v30, %s4665_s21 }
 0x460   : > { %v7635_v31 = vpop.permute.xlu0 %2765 }
 0x461   : > { %v7633_v7 = vpop.permute.xlu1 %2767  ;;  %9446 = vst [vmem:[#allocation42_spill] sm:$0xff] %v7635_v31 }
 0x462   : > { %9445 = vst [vmem:[#allocation18_spill] sm:$0xff] %v7633_v7  ;;  %3215 = vrot.lane.b32.xlu0 %v6994_v12, %s4668_s7 }
 0x463   : > { %3303 = vrot.lane.b32.xlu1 %v7319_v40, %s4669_s8 }
 0x464   : > { %v7643_v44 = vpop.permute.xlu0 %2769 }
 0x465   : > { %v7641_v59 = vpop.permute.xlu1 %2771  ;;  %9448 = vst [vmem:[#allocation94_spill] sm:$0xff] %v7643_v44 }
 0x466   : > { %9447 = vst [vmem:[#allocation77_spill] sm:$0xff] %v7641_v59  ;;  %2937 = vrot.lane.b32.xlu0 %v6994_v12, %s4665_s21 }
 0x467   : > { %3031 = vrot.lane.b32.xlu1 %v7319_v40, %s4666_s30 }
 0x468   : > { %v7651_v7 = vpop.permute.xlu0 %2773 }
 0x469   : > { %v7649_v30 = vpop.permute.xlu1 %2775  ;;  %9450 = vst [vmem:[#allocation78_spill] sm:$0xff] %v7651_v7 }
 0x46a   : > { %9449 = vst [vmem:[#allocation111_spill] sm:$0xff] %v7649_v30  ;;  %3305 = vrot.lane.b32.xlu0 %v7316_v10, %s4669_s8  ;;  %v9455_v30 = vld [vmem:[#allocation35_spill] sm:$0xff] }
 0x46b   : > { %3033 = vrot.lane.b32.xlu1 %v7316_v10, %s4666_s30 }
 0x46c   : > { %v7659_v59 = vpop.permute.xlu0 %2777 }
 0x46d   : > { %v7657_v31 = vpop.permute.xlu1 %2779  ;;  %9452 = vst [vmem:[#allocation112_spill] sm:$0xff] %v7659_v59 }
 0x46e   : > { %9451 = vst [vmem:[#allocation95_spill] sm:$0xff] %v7657_v31  ;;  %3127 = vrot.lane.b32.xlu0 %v6979_v14, %s4667_s6 }
 0x46f   : > { %2843 = vrot.lane.b32.xlu1 %v6979_v14, %s4664_s20  ;;  %v3381_v14 = vsel %vm1364_vm4, %v9405_v16, %v7430_v1  ;;  %v9457_v16 = vld [vmem:[#allocation63_spill] sm:$0xff] }
 0x470   : > { %v7667_v40 = vpop.permute.xlu0 %2781 }
 0x471   : > { %v7665_v12 = vpop.permute.xlu1 %2783  ;;  %9454 = vst [vmem:[#allocation96_spill] sm:$0xff] %v7667_v40 }
 0x472   : > { %9453 = vst [vmem:[#allocation79_spill] sm:$0xff] %v7665_v12  ;;  %3129 = vrot.lane.b32.xlu0 %v6868_v61, %s4667_s6  ;;  %v9456_v12 = vld [vmem:[#allocation91_spill] sm:$0xff] }
 0x473   : > { %3217 = vrot.lane.b32.xlu1 %v9455_v30, %s4668_s7 }
 0x474   : > { %v2824_v31 = vpop.permute.xlu0 %2823 }
 0x475   : > { %v2826_v10 = vpop.permute.xlu1 %2825 }
 0x476   : > { %2845 = vrot.lane.b32.xlu0 %v6868_v61, %s4664_s20 }
 0x477   : > { %2939 = vrot.lane.b32.xlu1 %v9455_v30, %s4665_s21 }
 0x478   : > { %v2920_v7 = vpop.permute.xlu0 %2919 }
 0x479   : > { %v2922_v59 = vpop.permute.xlu1 %2921 }
 0x47a   : > { %3219 = vrot.lane.b32.xlu0 %v9456_v12, %s4668_s7 }
 0x47b   : > { %3307 = vrot.lane.b32.xlu1 %v7332_v0, %s4669_s8 }
 0x47c   : > { %v3016_v44 = vpop.permute.xlu0 %3015 }
 0x47d   : > { %v3018_v40 = vpop.permute.xlu1 %3017 }
 0x47e   : > { %2941 = vrot.lane.b32.xlu0 %v9456_v12, %s4665_s21 }
 0x47f   : > { %3035 = vrot.lane.b32.xlu1 %v7332_v0, %s4666_s30  ;;  %v7698_v0 = vsel %vm1395_vm5, %v3381_v14, %v7571_v24 }
 0x480   : > { %v3112_v15 = vpop.permute.xlu0 %3111  ;;  %v3441_v12 = vsel %vm1426_vm6, %v7698_v0, %v2824_v31 }
 0x481   : > { %v2828_v30 = vpop.permute.xlu1 %2827  ;;  %v3473_v2 = vsel %vm1459_vm7, %v3441_v12, %v2920_v7  ;;  %v3382_v7 = vsel %vm1364_vm4, %v9401_v55, %v7428_v45  ;;  %v9458_v45 = vld [vmem:[#allocation52_spill] sm:$0xff] }
 0x482   : > { %3309 = vrot.lane.b32.xlu0 %v7329_v46, %s4669_s8  ;;  %v3505_v38 = vsel %vm1492_vm8, %v3473_v2, %v3016_v44  ;;  %v7720_v2 = vsel %vm1395_vm5, %v3382_v7, %v7569_v29 }
 0x483   : > { %3037 = vrot.lane.b32.xlu1 %v7329_v46, %s4666_s30  ;;  %v3537_v1 = vsel %vm1525_vm9, %v3505_v38, %v3112_v15  ;;  %v3442_v38 = vsel %vm1426_vm6, %v7720_v2, %v2826_v10 }
 0x484   : > { %v3114_v33 = vpop.permute.xlu0 %3113  ;;  %v3474_v44 = vsel %vm1459_vm7, %v3442_v38, %v2922_v59 }
 0x485   : > { %v3202_v61 = vpop.permute.xlu1 %3201  ;;  %v3506_v55 = vsel %vm1492_vm8, %v3474_v44, %v3018_v40  ;;  %v9459_v44 = vld [vmem:[#allocation53_spill] sm:$0xff] }
 0x486   : > { %3131 = vrot.lane.b32.xlu0 %v6991_v23, %s4667_s6  ;;  %v3569_v14 = vsel %vm1558_vm10, %v3537_v1, %v3202_v61  ;;  %v3538_v29 = vsel %vm1525_vm9, %v3506_v55, %v3114_v33 }
 0x487   : > { %2847 = vrot.lane.b32.xlu1 %v6991_v23, %s4664_s20 }
 0x488   : > { %v2830_v37 = vpop.permute.xlu0 %2829 }
 0x489   : > { %v2924_v46 = vpop.permute.xlu1 %2923 }
 0x48a   : > { %3133 = vrot.lane.b32.xlu0 %v6873_v41, %s4667_s6 }
 0x48b   : > { %3221 = vrot.lane.b32.xlu1 %v9457_v16, %s4668_s7 }
 0x48c   : > { %v3204_v23 = vpop.permute.xlu0 %3203 }
 0x48d   : > { %v3292_v24 = vpop.permute.xlu1 %3291  ;;  %v3570_v12 = vsel %vm1558_vm10, %v3538_v29, %v3204_v23 }
 0x48e   : > { %v3601_v31 = vsel %vm1591_vm11, %v3569_v14, %v3292_v24  ;;  %2849 = vrot.lane.b32.xlu0 %v6873_v41, %s4664_s20  ;;  %v3383_v14 = vsel %vm1364_vm4, %v9408_v13, %v7442_v54 }
 0x48f   : > { %2943 = vrot.lane.b32.xlu1 %v9457_v16, %s4665_s21  ;;  %4538 = vmatprep.mubr.msk.f32.mxu1 %vm1624_vm12, %v3601_v31 }
 0x490   : > { %v2926_v15 = vpop.permute.xlu0 %2925 }
 0x491   : > { %v3020_v61 = vpop.permute.xlu1 %3019 }
 0x492   : > { %3223 = vrot.lane.b32.xlu0 %v9458_v45, %s4668_s7 }
 0x493   : > { %3311 = vrot.lane.b32.xlu1 %v7345_v39, %s4669_s8 }
 0x494   : > { %v3294_v1 = vpop.permute.xlu0 %3293 }
 0x495   : > { %v3022_v16 = vpop.permute.xlu1 %3021  ;;  %v3602_v10 = vsel %vm1591_vm11, %v3570_v12, %v3294_v1 }
 0x496   : > { %2945 = vrot.lane.b32.xlu0 %v9458_v45, %s4665_s21  ;;  %4539 = vmatmul.mubr.msk.f32.vlgmr.msra.gmra.mrb[0].mxu1 %vm1624_vm12, %v3602_v10 }
 0x497   : > { %3039 = vrot.lane.b32.xlu1 %v7345_v39, %s4666_s30  ;;  %v3413_v39 = vsel %vm1395_vm5, %v3383_v14, %v7579_v63 }
 0x498   : > { %v3116_v40 = vpop.permute.xlu0 %3115  ;;  %v3443_v24 = vsel %vm1426_vm6, %v3413_v39, %v2828_v30 }
 0x499   : > { %v2832_v59 = vpop.permute.xlu1 %2831 }
 0x49a   : > { %3313 = vrot.lane.b32.xlu0 %v7342_v56, %s4669_s8 }
 0x49b   : > { %3041 = vrot.lane.b32.xlu1 %v7342_v56, %s4666_s30  ;;  %v3475_v56 = vsel %vm1459_vm7, %v3443_v24, %v2924_v46  ;;  %v3384_v46 = vsel %vm1364_vm4, %v9406_v5, %v7440_v62  ;;  %v9460_v5 = vld [vmem:[#allocation92_spill] sm:$0xff] }
 0x49c   : > { %v3118_v33 = vpop.permute.xlu0 %3117  ;;  %v3507_v38 = vsel %vm1492_vm8, %v3475_v56, %v3020_v61  ;;  %v3414_v61 = vsel %vm1395_vm5, %v3384_v46, %v7577_v4 }
 0x49d   : > { %v3206_v23 = vpop.permute.xlu1 %3205  ;;  %v3539_v13 = vsel %vm1525_vm9, %v3507_v38, %v3116_v40  ;;  %v3444_v45 = vsel %vm1426_vm6, %v3414_v61, %v2830_v37  ;;  %v9462_v61 = vld [vmem:[#allocation64_spill] sm:$0xff] }
 0x49e   : > { %3135 = vrot.lane.b32.xlu0 %v7029_v57, %s4667_s6  ;;  %v3571_v54 = vsel %vm1558_vm10, %v3539_v13, %v3206_v23  ;;  %v3476_v1 = vsel %vm1459_vm7, %v3444_v45, %v2926_v15 }
 0x49f   : > { %2851 = vrot.lane.b32.xlu1 %v7029_v57, %s4664_s20  ;;  %v3508_v10 = vsel %vm1492_vm8, %v3476_v1, %v3022_v16 }
 0x4a0   : > { %v2834_v7 = vpop.permute.xlu0 %2833  ;;  %v3540_v62 = vsel %vm1525_vm9, %v3508_v10, %v3118_v33 }
 0x4a1   : > { %v2928_v31 = vpop.permute.xlu1 %2927 }
 0x4a2   : > { %3137 = vrot.lane.b32.xlu0 %v6878_v50, %s4667_s6 }
 0x4a3   : > { %3225 = vrot.lane.b32.xlu1 %v9459_v44, %s4668_s7 }
 0x4a4   : > { %v3208_v63 = vpop.permute.xlu0 %3207 }
 0x4a5   : > { %v3296_v55 = vpop.permute.xlu1 %3295  ;;  %v3572_v4 = vsel %vm1558_vm10, %v3540_v62, %v3208_v63 }
 0x4a6   : > { %v3603_v30 = vsel %vm1591_vm11, %v3571_v54, %v3296_v55  ;;  %2853 = vrot.lane.b32.xlu0 %v6878_v50, %s4664_s20 }
 0x4a7   : > { %2947 = vrot.lane.b32.xlu1 %v9459_v44, %s4665_s21  ;;  %4541 = vmatprep.mubr.msk.f32.mxu1 %vm1624_vm12, %v3603_v30  ;;  %v9461_v44 = vld [vmem:[#allocation33_spill] sm:$0xff] }
 0x4a8   : > { %v2930_v12 = vpop.permute.xlu0 %2929 }
 0x4a9   : > { %v3024_v29 = vpop.permute.xlu1 %3023 }
 0x4aa   : > { %3227 = vrot.lane.b32.xlu0 %v9460_v5, %s4668_s7 }
 0x4ab   : > { %3315 = vrot.lane.b32.xlu1 %v7358_v58, %s4669_s8 }
 0x4ac   : > { %v3298_v23 = vpop.permute.xlu0 %3297 }
 0x4ad   : > { %v3026_v40 = vpop.permute.xlu1 %3025  ;;  %v3604_v37 = vsel %vm1591_vm11, %v3572_v4, %v3298_v23  ;;  %v3385_v4 = vsel %vm1364_vm4, %v6923_v35, %v7456_v48 }
 0x4ae   : > { %2949 = vrot.lane.b32.xlu0 %v9460_v5, %s4665_s21  ;;  %4542 = vmatmul.mubr.msk.f32.gmra.mrb[2].mxu1 %vm1624_vm12, %v3604_v37 }
 0x4af   : > { %3043 = vrot.lane.b32.xlu1 %v7358_v58, %s4666_s30  ;;  %v3445_v58 = vsel %vm1426_vm6, %v7698_v0, %v2832_v59  ;;  %v3446_v59 = vsel %vm1426_vm6, %v7720_v2, %v2834_v7 }
 0x4b0   : > { %v3120_v16 = vpop.permute.xlu0 %3119  ;;  %v3477_v56 = vsel %vm1459_vm7, %v3445_v58, %v2928_v31  ;;  %v3478_v30 = vsel %vm1459_vm7, %v3446_v59, %v2930_v12  ;;  %v3386_v58 = vsel %vm1364_vm4, %v6856_v18, %v7454_v53  ;;  %v9464_v18 = vld [vmem:[#allocation2_spill] sm:$0xff] }
 0x4b1   : > { %v2836_v15 = vpop.permute.xlu1 %2835  ;;  %v3509_v38 = vsel %vm1492_vm8, %v3477_v56, %v3024_v29  ;;  %v3510_v46 = vsel %vm1492_vm8, %v3478_v30, %v3026_v40  ;;  %v3387_v30 = vsel %vm1364_vm4, %v6930_v3, %v7470_v6 }
 0x4b2   : > { %3317 = vrot.lane.b32.xlu0 %v7355_v17, %s4669_s8 }
 0x4b3   : > { %3045 = vrot.lane.b32.xlu1 %v7355_v17, %s4666_s30  ;;  %v3541_v17 = vsel %vm1525_vm9, %v3509_v38, %v3120_v16 }
 0x4b4   : > { %v3122_v14 = vpop.permute.xlu0 %3121 }
 0x4b5   : > { %v3210_v33 = vpop.permute.xlu1 %3209  ;;  %v3542_v45 = vsel %vm1525_vm9, %v3510_v46, %v3122_v14 }
 0x4b6   : > { %3139 = vrot.lane.b32.xlu0 %v7041_v22, %s4667_s6  ;;  %v3573_v13 = vsel %vm1558_vm10, %v3541_v17, %v3210_v33  ;;  %v9463_v33 = vld [vmem:[#allocation38_spill] sm:$0xff] }
 0x4b7   : > { %2855 = vrot.lane.b32.xlu1 %v7041_v22, %s4664_s20 }
 0x4b8   : > { %v2838_v24 = vpop.permute.xlu0 %2837 }
 0x4b9   : > { %v2932_v39 = vpop.permute.xlu1 %2931 }
 0x4ba   : > { %3141 = vrot.lane.b32.xlu0 %v6883_v32, %s4667_s6 }
 0x4bb   : > { %3229 = vrot.lane.b32.xlu1 %v9461_v44, %s4668_s7 }
 0x4bc   : > { %v3212_v55 = vpop.permute.xlu0 %3211 }
 0x4bd   : > { %v3300_v54 = vpop.permute.xlu1 %3299  ;;  %v3574_v29 = vsel %vm1558_vm10, %v3542_v45, %v3212_v55 }
 0x4be   : > { %v3605_v0 = vsel %vm1591_vm11, %v3573_v13, %v3300_v54  ;;  %2857 = vrot.lane.b32.xlu0 %v6883_v32, %s4664_s20 }
 0x4bf   : > { %2951 = vrot.lane.b32.xlu1 %v9461_v44, %s4665_s21  ;;  %4544 = vmatprep.mubr.msk.f32.mxu1 %vm1624_vm12, %v3605_v0 }
 0x4c0   : > { %v2934_v63 = vpop.permute.xlu0 %2933 }
 0x4c1   : > { %v3028_v31 = vpop.permute.xlu1 %3027 }
 0x4c2   : > { %3231 = vrot.lane.b32.xlu0 %v9462_v61, %s4668_s7 }
 0x4c3   : > { %3319 = vrot.lane.b32.xlu1 %v7371_v42, %s4669_s8 }
 0x4c4   : > { %v3302_v10 = vpop.permute.xlu0 %3301 }
 0x4c5   : > { %v3030_v1 = vpop.permute.xlu1 %3029  ;;  %v3606_v2 = vsel %vm1591_vm11, %v3574_v29, %v3302_v10 }
 0x4c6   : > { %2953 = vrot.lane.b32.xlu0 %v9462_v61, %s4665_s21  ;;  %4545 = vmatmul.mubr.msk.f32.gmra.mrb[4].mxu1 %vm1624_vm12, %v3606_v2 }
 0x4c7   : > { %3047 = vrot.lane.b32.xlu1 %v7371_v42, %s4666_s30  ;;  %v3415_v42 = vsel %vm1395_vm5, %v3385_v4, %v7587_v19 }
 0x4c8   : > { %v3124_v12 = vpop.permute.xlu0 %3123  ;;  %v3447_v40 = vsel %vm1426_vm6, %v3415_v42, %v2836_v15 }
 0x4c9   : > { %v2840_v7 = vpop.permute.xlu1 %2839 }
 0x4ca   : > { %3321 = vrot.lane.b32.xlu0 %v7368_v21, %s4669_s8 }
 0x4cb   : > { %3049 = vrot.lane.b32.xlu1 %v7368_v21, %s4666_s30  ;;  %v3479_v21 = vsel %vm1459_vm7, %v3447_v40, %v2932_v39  ;;  %v3416_v39 = vsel %vm1395_vm5, %v3386_v58, %v7585_v47 }
 0x4cc   : > { %v3126_v62 = vpop.permute.xlu0 %3125  ;;  %v3511_v16 = vsel %vm1492_vm8, %v3479_v21, %v3028_v31  ;;  %v3448_v56 = vsel %vm1426_vm6, %v3416_v39, %v2838_v24 }
 0x4cd   : > { %v3214_v5 = vpop.permute.xlu1 %3213  ;;  %v3543_v35 = vsel %vm1525_vm9, %v3511_v16, %v3124_v12  ;;  %v3480_v17 = vsel %vm1459_vm7, %v3448_v56, %v2934_v63 }
 0x4ce   : > { %3143 = vrot.lane.b32.xlu0 %v7079_v34, %s4667_s6  ;;  %v3575_v48 = vsel %vm1558_vm10, %v3543_v35, %v3214_v5  ;;  %v3512_v13 = vsel %vm1492_vm8, %v3480_v17, %v3030_v1  ;;  %v9465_v1 = vld [vmem:[#allocation39_spill] sm:$0xff] }
 0x4cf   : > { %2859 = vrot.lane.b32.xlu1 %v7079_v34, %s4664_s20  ;;  %v3544_v53 = vsel %vm1525_vm9, %v3512_v13, %v3126_v62 }
 0x4d0   : > { %v2842_v37 = vpop.permute.xlu0 %2841 }
 0x4d1   : > { %v2936_v23 = vpop.permute.xlu1 %2935 }
 0x4d2   : > { %3145 = vrot.lane.b32.xlu0 %v6888_v43, %s4667_s6 }
 0x4d3   : > { %3233 = vrot.lane.b32.xlu1 %v9463_v33, %s4668_s7 }
 0x4d4   : > { %v3216_v19 = vpop.permute.xlu0 %3215 }
 0x4d5   : > { %v3304_v14 = vpop.permute.xlu1 %3303  ;;  %v3576_v47 = vsel %vm1558_vm10, %v3544_v53, %v3216_v19  ;;  %v9471_v53 = vld [vmem:[#allocation50_spill] sm:$0xff] }
 0x4d6   : > { %v3607_v15 = vsel %vm1591_vm11, %v3575_v48, %v3304_v14  ;;  %2861 = vrot.lane.b32.xlu0 %v6888_v43, %s4664_s20  ;;  %v3389_v14 = vsel %vm1364_vm4, %v6958_v60, %v7481_v27  ;;  %v9469_v60 = vld [vmem:[#allocation90_spill] sm:$0xff] }
 0x4d7   : > { %2955 = vrot.lane.b32.xlu1 %v9463_v33, %s4665_s21  ;;  %4547 = vmatprep.mubr.msk.f32.mxu1 %vm1624_vm12, %v3607_v15  ;;  %v3419_v19 = vsel %vm1395_vm5, %v3389_v14, %v7603_v11  ;;  %v9482_v14 = vld [vmem:[#allocation103_spill] sm:$0xff] }
 0x4d8   : > { %v2938_v44 = vpop.permute.xlu0 %2937 }
 0x4d9   : > { %v3032_v38 = vpop.permute.xlu1 %3031 }
 0x4da   : > { %3235 = vrot.lane.b32.xlu0 %v9464_v18, %s4668_s7 }
 0x4db   : > { %3323 = vrot.lane.b32.xlu1 %v7384_v28, %s4669_s8 }
 0x4dc   : > { %v3306_v55 = vpop.permute.xlu0 %3305 }
 0x4dd   : > { %v3034_v54 = vpop.permute.xlu1 %3033  ;;  %v3608_v24 = vsel %vm1591_vm11, %v3576_v47, %v3306_v55 }
 0x4de   : > { %2957 = vrot.lane.b32.xlu0 %v9464_v18, %s4665_s21  ;;  %4548 = vmatmul.mubr.msk.f32.gmra.mrb[6].mxu1 %vm1624_vm12, %v3608_v24  ;;  %v9470_v18 = vld [vmem:[#allocation5_spill] sm:$0xff] }
 0x4df   : > { %3051 = vrot.lane.b32.xlu1 %v7384_v28, %s4666_s30  ;;  %v3417_v28 = vsel %vm1395_vm5, %v3387_v30, %v7595_v9  ;;  %v3390_v47 = vsel %vm1364_vm4, %v9471_v53, %v9470_v18  ;;  %v9473_v30 = vld [vmem:[#allocation11_spill] sm:$0xff] }
 0x4e0   : > { %v3128_v59 = vpop.permute.xlu0 %3127  ;;  %v3449_v46 = vsel %vm1426_vm6, %v3417_v28, %v2840_v7  ;;  %v3388_v7 = vsel %vm1364_vm4, %v6860_v51, %v7468_v25  ;;  %v9466_v51 = vld [vmem:[#allocation93_spill] sm:$0xff]  ;;  %v9474_v28 = vld [vmem:[#allocation54_spill] sm:$0xff] }
 0x4e1   : > { %v2844_v0 = vpop.permute.xlu1 %2843  ;;  %v3418_v12 = vsel %vm1395_vm5, %v3388_v7, %v7593_v49  ;;  %v9477_v7 = vld [vmem:[#allocation34_spill] sm:$0xff] }
 0x4e2   : > { %3325 = vrot.lane.b32.xlu0 %v7381_v36, %s4669_s8  ;;  %v3450_v5 = vsel %vm1426_vm6, %v3418_v12, %v2842_v37  ;;  %v3451_v15 = vsel %vm1426_vm6, %v3419_v19, %v2844_v0  ;;  %v9483_v19 = vld [vmem:[#allocation89_spill] sm:$0xff] }
 0x4e3   : > { %3053 = vrot.lane.b32.xlu1 %v7381_v36, %s4666_s30  ;;  %v3481_v36 = vsel %vm1459_vm7, %v3449_v46, %v2936_v23  ;;  %v3482_v42 = vsel %vm1459_vm7, %v3450_v5, %v2938_v44  ;;  %v9478_v5 = vld [vmem:[#allocation65_spill] sm:$0xff] }
 0x4e4   : > { %v3130_v63 = vpop.permute.xlu0 %3129  ;;  %v3513_v29 = vsel %vm1492_vm8, %v3481_v36, %v3032_v38  ;;  %v3514_v40 = vsel %vm1492_vm8, %v3482_v42, %v3034_v54  ;;  %v9468_v38 = vld [vmem:[#allocation55_spill] sm:$0xff]  ;;  %v9472_v54 = vld [vmem:[#allocation74_spill] sm:$0xff] }
 0x4e5   : > { %v3218_v31 = vpop.permute.xlu1 %3217  ;;  %v3545_v3 = vsel %vm1525_vm9, %v3513_v29, %v3128_v59  ;;  %v3546_v25 = vsel %vm1525_vm9, %v3514_v40, %v3130_v63  ;;  %v3420_v55 = vsel %vm1395_vm5, %v3390_v47, %v9472_v54 }
 0x4e6   : > { %3147 = vrot.lane.b32.xlu0 %v7095_v8, %s4667_s6  ;;  %v3577_v6 = vsel %vm1558_vm10, %v3545_v3, %v3218_v31 }
 0x4e7   : > { %2863 = vrot.lane.b32.xlu1 %v7095_v8, %s4664_s20 }
 0x4e8   : > { %v2846_v45 = vpop.permute.xlu0 %2845 }
 0x4e9   : > { %v2940_v61 = vpop.permute.xlu1 %2939  ;;  %v3452_v24 = vsel %vm1426_vm6, %v3420_v55, %v2846_v45 }
 0x4ea   : > { %3149 = vrot.lane.b32.xlu0 %v6896_v20, %s4667_s6 }
 0x4eb   : > { %3237 = vrot.lane.b32.xlu1 %v9465_v1, %s4668_s7 }
 0x4ec   : > { %v3220_v9 = vpop.permute.xlu0 %3219 }
 0x4ed   : > { %v3308_v10 = vpop.permute.xlu1 %3307  ;;  %v3578_v49 = vsel %vm1558_vm10, %v3546_v25, %v3220_v9 }
 0x4ee   : > { %v3609_v2 = vsel %vm1591_vm11, %v3577_v6, %v3308_v10  ;;  %2865 = vrot.lane.b32.xlu0 %v6896_v20, %s4664_s20  ;;  %v9475_v6 = vld [vmem:[#allocation68_spill] sm:$0xff] }
 0x4ef   : > { %2959 = vrot.lane.b32.xlu1 %v9465_v1, %s4665_s21  ;;  %4550 = vmatprep.mubr.msk.f32.mxu1 %vm1624_vm12, %v3609_v2  ;;  %v9476_v2 = vld [vmem:[#allocation44_spill] sm:$0xff] }
 0x4f0   : > { %v2942_v4 = vpop.permute.xlu0 %2941  ;;  %v3391_v12 = vsel %vm1364_vm4, %v9477_v7, %v9476_v2  ;;  %v9493_v2 = vld [vmem:[#allocation29_spill] sm:$0xff] }
 0x4f1   : > { %v3036_v62 = vpop.permute.xlu1 %3035  ;;  %v3484_v31 = vsel %vm1459_vm7, %v3452_v24, %v2942_v4 }
 0x4f2   : > { %3239 = vrot.lane.b32.xlu0 %v9466_v51, %s4668_s7 }
 0x4f3   : > { %3327 = vrot.lane.b32.xlu1 %v7397_v26, %s4669_s8 }
 0x4f4   : > { %v3310_v21 = vpop.permute.xlu0 %3309 }
 0x4f5   : > { %v3038_v23 = vpop.permute.xlu1 %3037  ;;  %v3610_v37 = vsel %vm1591_vm11, %v3578_v49, %v3310_v21  ;;  %v9481_v21 = vld [vmem:[#allocation51_spill] sm:$0xff] }
 0x4f6   : > { %2961 = vrot.lane.b32.xlu0 %v9466_v51, %s4665_s21  ;;  %4551 = vmatmul.mubr.msk.f32.gmra.mrb[8].mxu1 %vm1624_vm12, %v3610_v37  ;;  %v3516_v63 = vsel %vm1492_vm8, %v3484_v31, %v3038_v23  ;;  %v9480_v23 = vld [vmem:[#allocation36_spill] sm:$0xff] }
 0x4f7   : > { %3055 = vrot.lane.b32.xlu1 %v7397_v26, %s4666_s30  ;;  %v9467_v26 = vld [vmem:[#allocation32_spill] sm:$0xff] }
 0x4f8   : > { %v3132_v33 = vpop.permute.xlu0 %3131 }
 0x4f9   : > { %v2848_v16 = vpop.permute.xlu1 %2847 }
 0x4fa   : > { %3329 = vrot.lane.b32.xlu0 %v7394_v52, %s4669_s8 }
 0x4fb   : > { %3057 = vrot.lane.b32.xlu1 %v7394_v52, %s4666_s30  ;;  %v3483_v52 = vsel %vm1459_vm7, %v3451_v15, %v2940_v61  ;;  %v3392_v15 = vsel %vm1364_vm4, %v9483_v19, %v9482_v14  ;;  %v9496_v19 = vld [vmem:[#allocation41_spill] sm:$0xff] }
 0x4fc   : > { %v3134_v48 = vpop.permute.xlu0 %3133  ;;  %v3515_v56 = vsel %vm1492_vm8, %v3483_v52, %v3036_v62  ;;  %v9479_v62 = vld [vmem:[#allocation109_spill] sm:$0xff] }
 0x4fd   : > { %v3222_v35 = vpop.permute.xlu1 %3221  ;;  %v3547_v27 = vsel %vm1525_vm9, %v3515_v56, %v3132_v33  ;;  %v3548_v46 = vsel %vm1525_vm9, %v3516_v63, %v3134_v48  ;;  %v3421_v4 = vsel %vm1395_vm5, %v3391_v12, %v9479_v62  ;;  %v9488_v63 = vld [vmem:[#allocation10_spill] sm:$0xff] }
 0x4fe   : > { %3151 = vrot.lane.b32.xlu0 %v9467_v26, %s4667_s6  ;;  %v3579_v44 = vsel %vm1558_vm10, %v3547_v27, %v3222_v35  ;;  %v3453_v42 = vsel %vm1426_vm6, %v3421_v4, %v2848_v16 }
 0x4ff   : > { %2867 = vrot.lane.b32.xlu1 %v9467_v26, %s4664_s20 }
 0x500   : > { %v2850_v39 = vpop.permute.xlu0 %2849 }
 0x501   : > { %v2944_v58 = vpop.permute.xlu1 %2943 }
 0x502   : > { %3153 = vrot.lane.b32.xlu0 %v9469_v60, %s4667_s6  ;;  %v3485_v25 = vsel %vm1459_vm7, %v3453_v42, %v2944_v58  ;;  %v9484_v58 = vld [vmem:[#allocation16_spill] sm:$0xff] }
 0x503   : > { %3241 = vrot.lane.b32.xlu1 %v9468_v38, %s4668_s7  ;;  %v3422_v52 = vsel %vm1395_vm5, %v3392_v15, %v9484_v58 }
 0x504   : > { %v3224_v11 = vpop.permute.xlu0 %3223  ;;  %v3454_v56 = vsel %vm1426_vm6, %v3422_v52, %v2850_v39 }
 0x505   : > { %v3312_v17 = vpop.permute.xlu1 %3311  ;;  %v3580_v61 = vsel %vm1558_vm10, %v3548_v46, %v3224_v11  ;;  %v9485_v11 = vld [vmem:[#allocation86_spill] sm:$0xff]  ;;  %v9490_v46 = vld [vmem:[#allocation101_spill] sm:$0xff] }
 0x506   : > { %v3611_v13 = vsel %vm1591_vm11, %v3579_v44, %v3312_v17  ;;  %2869 = vrot.lane.b32.xlu0 %v9469_v60, %s4664_s20  ;;  %v2621_v42 = vrot.slane %v9490_v46, 2 }
 0x507   : > { %2963 = vrot.lane.b32.xlu1 %v9468_v38, %s4665_s21  ;;  %4553 = vmatprep.mubr.msk.f32.mxu1 %vm1624_vm12, %v3611_v13  ;;  %v9486_v13 = vld [vmem:[#allocation7_spill] sm:$0xff] }
 0x508   : > { %v2946_v59 = vpop.permute.xlu0 %2945 }
 0x509   : > { %v3040_v0 = vpop.permute.xlu1 %3039  ;;  %v3486_v44 = vsel %vm1459_vm7, %v3454_v56, %v2946_v59 }
 0x50a   : > { %3243 = vrot.lane.b32.xlu0 %v9474_v28, %s4668_s7  ;;  %v3517_v49 = vsel %vm1492_vm8, %v3485_v25, %v3040_v0  ;;  %v9487_v0 = vld [vmem:[#allocation85_spill] sm:$0xff] }
 0x50b   : > { %3331 = vrot.lane.b32.xlu1 %v9473_v30, %s4669_s8  ;;  %v9494_v25 = vld [vmem:[#allocation69_spill] sm:$0xff] }
 0x50c   : > { %v3314_v29 = vpop.permute.xlu0 %3313 }
 0x50d   : > { %v3042_v36 = vpop.permute.xlu1 %3041  ;;  %v3612_v45 = vsel %vm1591_vm11, %v3580_v61, %v3314_v29  ;;  %v9491_v61 = vld [vmem:[#allocation17_spill] sm:$0xff] }
 0x50e   : > { %2965 = vrot.lane.b32.xlu0 %v9474_v28, %s4665_s21  ;;  %4554 = vmatmul.mubr.msk.f32.gmra.mrb[10].mxu1 %vm1624_vm12, %v3612_v45  ;;  %v3518_v17 = vsel %vm1492_vm8, %v3486_v44, %v3042_v36 }
 0x50f   : > { %3059 = vrot.lane.b32.xlu1 %v9473_v30, %s4666_s30  ;;  %v9489_v30 = vld [vmem:[#allocation62_spill] sm:$0xff] }
 0x510   : > { %v3136_v3 = vpop.permute.xlu0 %3135  ;;  %v3393_v28 = vsel %vm1364_vm4, %v9489_v30, %v9488_v63 }
 0x511   : > { %v2852_v1 = vpop.permute.xlu1 %2851  ;;  %v3549_v37 = vsel %vm1525_vm9, %v3517_v49, %v3136_v3  ;;  %v3423_v36 = vsel %vm1395_vm5, %v3393_v28, %v9491_v61  ;;  %v3394_v49 = vsel %vm1364_vm4, %v6873_v41, %v9494_v25 }
 0x512   : > { %3333 = vrot.lane.b32.xlu0 %v9475_v6, %s4669_s8  ;;  %v3455_v29 = vsel %vm1426_vm6, %v3423_v36, %v2852_v1 }
 0x513   : > { %3061 = vrot.lane.b32.xlu1 %v9475_v6, %s4666_s30 }
 0x514   : > { %v3138_v9 = vpop.permute.xlu0 %3137 }
 0x515   : > { %v3226_v10 = vpop.permute.xlu1 %3225  ;;  %v3550_v18 = vsel %vm1525_vm9, %v3518_v17, %v3138_v9  ;;  %v9492_v9 = vld [vmem:[#allocation56_spill] sm:$0xff] }
 0x516   : > { %3155 = vrot.lane.b32.xlu0 %v9478_v5, %s4667_s6  ;;  %v3581_v33 = vsel %vm1558_vm10, %v3549_v37, %v3226_v10 }
 0x517   : > { %2871 = vrot.lane.b32.xlu1 %v9478_v5, %s4664_s20 }
 0x518   : > { %v2854_v51 = vpop.permute.xlu0 %2853 }
 0x519   : > { %v2948_v40 = vpop.permute.xlu1 %2947 }
 0x51a   : > { %3157 = vrot.lane.b32.xlu0 %v9481_v21, %s4667_s6  ;;  %v3487_v6 = vsel %vm1459_vm7, %v3455_v29, %v2948_v40  ;;  %v2622_v40 = vrot.slane %v9493_v2, 2  ;;  %v9501_v29 = vld [vmem:[#allocation6_spill] sm:$0xff] }
 0x51b   : > { %3245 = vrot.lane.b32.xlu1 %v9480_v23, %s4668_s7 }
 0x51c   : > { %v3228_v48 = vpop.permute.xlu0 %3227  ;;  %v2623_v14 = vsel %vm538_vm2, %v2621_v42, %v2622_v40 }
 0x51d   : > { %v3316_v35 = vpop.permute.xlu1 %3315  ;;  %v3582_v53 = vsel %vm1558_vm10, %v3550_v18, %v3228_v48 }
 0x51e   : > { %v3613_v16 = vsel %vm1591_vm11, %v3581_v33, %v3316_v35  ;;  %2873 = vrot.lane.b32.xlu0 %v9481_v21, %s4664_s20 }
 0x51f   : > { %2967 = vrot.lane.b32.xlu1 %v9480_v23, %s4665_s21  ;;  %4556 = vmatprep.mubr.msk.f32.mxu1 %vm1624_vm12, %v3613_v16  ;;  %v9495_v23 = vld [vmem:[#allocation75_spill] sm:$0xff] }
 0x520   : > { %v2950_v27 = vpop.permute.xlu0 %2949  ;;  %v3424_v37 = vsel %vm1395_vm5, %v3394_v49, %v9495_v23 }
 0x521   : > { %v3044_v38 = vpop.permute.xlu1 %3043  ;;  %v3456_v33 = vsel %vm1426_vm6, %v3424_v37, %v2854_v51 }
 0x522   : > { %3247 = vrot.lane.b32.xlu0 %v9486_v13, %s4668_s7  ;;  %v3519_v10 = vsel %vm1492_vm8, %v3487_v6, %v3044_v38  ;;  %v3488_v16 = vsel %vm1459_vm7, %v3456_v33, %v2950_v27  ;;  %v9497_v38 = vld [vmem:[#allocation3_spill] sm:$0xff]  ;;  %v3396_v6 = vsel %vm1364_vm4, %v6878_v50, %v9501_v29  ;;  %v9512_v29 = vld [vmem:[#allocation37_spill] sm:$0xff] }
 0x523   : > { %3335 = vrot.lane.b32.xlu1 %v9485_v11, %s4669_s8  ;;  %v2624_v44 = vrot.slane %v9497_v38, 2 }
 0x524   : > { %v3318_v54 = vpop.permute.xlu0 %3317 }
 0x525   : > { %v3046_v47 = vpop.permute.xlu1 %3045  ;;  %v3614_v39 = vsel %vm1591_vm11, %v3582_v53, %v3318_v54  ;;  %v9498_v53 = vld [vmem:[#allocation104_spill] sm:$0xff]  ;;  %v9499_v54 = vld [vmem:[#allocation102_spill] sm:$0xff] }
 0x526   : > { %2969 = vrot.lane.b32.xlu0 %v9486_v13, %s4665_s21  ;;  %4557 = vmatmul.mubr.msk.f32.gmra.mrb[12].mxu1 %vm1624_vm12, %v3614_v39  ;;  %v3520_v41 = vsel %vm1492_vm8, %v3488_v16, %v3046_v47  ;;  %v3395_v47 = vsel %vm1364_vm4, %v7029_v57, %v9498_v53  ;;  %v9500_v39 = vld [vmem:[#allocation76_spill] sm:$0xff]  ;;  %v2626_v50 = vrot.slane %v9499_v54, 2  ;;  %v9509_v53 = vld [vmem:[#allocation66_spill] sm:$0xff] }
 0x527   : > { %3063 = vrot.lane.b32.xlu1 %v9485_v11, %s4666_s30  ;;  %v2625_v11 = vsel %vm538_vm2, %v2622_v40, %v2624_v44 }
 0x528   : > { %v3140_v24 = vpop.permute.xlu0 %3139 }
 0x529   : > { %v2856_v55 = vpop.permute.xlu1 %2855  ;;  %v3551_v7 = vsel %vm1525_vm9, %v3519_v10, %v3140_v24  ;;  %v3425_v24 = vsel %vm1395_vm5, %v3395_v47, %v9500_v39  ;;  %v9503_v10 = vld [vmem:[#allocation28_spill] sm:$0xff] }
 0x52a   : > { %3337 = vrot.lane.b32.xlu0 %v9487_v0, %s4669_s8  ;;  %v2627_v42 = vrot.slane %v9503_v10, 2 }
 0x52b   : > { %3065 = vrot.lane.b32.xlu1 %v9487_v0, %s4666_s30  ;;  %v3457_v0 = vsel %vm1426_vm6, %v3425_v24, %v2856_v55 }
 0x52c   : > { %v3142_v31 = vpop.permute.xlu0 %3141  ;;  %v2628_v33 = vsel %vm538_vm2, %v2626_v50, %v2627_v42 }
 0x52d   : > { %v3230_v59 = vpop.permute.xlu1 %3229  ;;  %v3552_v15 = vsel %vm1525_vm9, %v3520_v41, %v3142_v31 }
 0x52e   : > { %3159 = vrot.lane.b32.xlu0 %v9490_v46, %s4667_s6  ;;  %v3583_v12 = vsel %vm1558_vm10, %v3551_v7, %v3230_v59 }
 0x52f   : > { %2875 = vrot.lane.b32.xlu1 %v9490_v46, %s4664_s20 }
 0x530   : > { %v8033_v3 = vpop.permute.xlu0 %2857 }
 0x531   : > { %v2952_v45 = vpop.permute.xlu1 %2951 }
 0x532   : > { %3161 = vrot.lane.b32.xlu0 %v9493_v2, %s4667_s6  ;;  %v3489_v63 = vsel %vm1459_vm7, %v3457_v0, %v2952_v45  ;;  %v9502_v45 = vld [vmem:[#allocation57_spill] sm:$0xff]  ;;  %v9510_v0 = vld [vmem:[#allocation70_spill] sm:$0xff] }
 0x533   : > { %3249 = vrot.lane.b32.xlu1 %v9492_v9, %s4668_s7 }
 0x534   : > { %v3232_v4 = vpop.permute.xlu0 %3231 }
 0x535   : > { %v3320_v62 = vpop.permute.xlu1 %3319  ;;  %v3584_v58 = vsel %vm1558_vm10, %v3552_v15, %v3232_v4 }
 0x536   : > { %v3615_v1 = vsel %vm1591_vm11, %v3583_v12, %v3320_v62  ;;  %2877 = vrot.lane.b32.xlu0 %v9493_v2, %s4664_s20 }
 0x537   : > { %2971 = vrot.lane.b32.xlu1 %v9492_v9, %s4665_s21  ;;  %4559 = vmatprep.mubr.msk.f32.mxu1 %vm1624_vm12, %v3615_v1  ;;  %v9504_v9 = vld [vmem:[#allocation110_spill] sm:$0xff] }
 0x538   : > { %v2954_v48 = vpop.permute.xlu0 %2953  ;;  %v3426_v7 = vsel %vm1395_vm5, %v3396_v6, %v9504_v9  ;;  %v9513_v6 = vld [vmem:[#allocation25_spill] sm:$0xff] }
 0x539   : > { %v3048_v35 = vpop.permute.xlu1 %3047  ;;  %v3458_v12 = vsel %vm1426_vm6, %v3426_v7, %v8033_v3 }
 0x53a   : > { %3251 = vrot.lane.b32.xlu0 %v9496_v19, %s4668_s7  ;;  %v3521_v30 = vsel %vm1492_vm8, %v3489_v63, %v3048_v35  ;;  %v3490_v1 = vsel %vm1459_vm7, %v3458_v12, %v2954_v48  ;;  %v9505_v35 = vld [vmem:[#allocation84_spill] sm:$0xff]  ;;  %v3398_v63 = vsel %vm1364_vm4, %v6883_v32, %v9510_v0 }
 0x53b   : > { %3339 = vrot.lane.b32.xlu1 %v2623_v14, %s4669_s8 }
 0x53c   : > { %v3322_v56 = vpop.permute.xlu0 %3321 }
 0x53d   : > { %v3050_v52 = vpop.permute.xlu1 %3049  ;;  %v3616_v51 = vsel %vm1591_vm11, %v3584_v58, %v3322_v56 }
 0x53e   : > { %2973 = vrot.lane.b32.xlu0 %v9496_v19, %s4665_s21  ;;  %4560 = vmatmul.mubr.msk.f32.gmra.mrb[14].mxu1 %vm1624_vm12, %v3616_v51  ;;  %v3522_v40 = vsel %vm1492_vm8, %v3490_v1, %v3050_v52  ;;  %v9507_v52 = vld [vmem:[#allocation12_spill] sm:$0xff]  ;;  %v9508_v51 = vld [vmem:[#allocation42_spill] sm:$0xff] }
 0x53f   : > { %3067 = vrot.lane.b32.xlu1 %v2623_v14, %s4666_s30  ;;  %v3397_v56 = vsel %vm1364_vm4, %v7041_v22, %v9507_v52 }
 0x540   : > { %v3144_v17 = vpop.permute.xlu0 %3143  ;;  %v3427_v38 = vsel %vm1395_vm5, %v3397_v56, %v9508_v51 }
 0x541   : > { %v2860_v27 = vpop.permute.xlu1 %2859  ;;  %v3553_v57 = vsel %vm1525_vm9, %v3521_v30, %v3144_v17 }
 0x542   : > { %3341 = vrot.lane.b32.xlu0 %v2625_v11, %s4669_s8  ;;  %v3459_v44 = vsel %vm1426_vm6, %v3427_v38, %v2860_v27 }
 0x543   : > { %2785 = vrot.lane.b32.xlu1 %v2623_v14, %s4663_s19  ;;  %v9506_v14 = vld [vmem:[#allocation43_spill] sm:$0xff] }
 0x544   : > { %v3146_v18 = vpop.permute.xlu0 %3145  ;;  %v2629_v41 = vrot.slane %v9506_v14, 2 }
 0x545   : > { %v3234_v13 = vpop.permute.xlu1 %3233  ;;  %v3554_v25 = vsel %vm1525_vm9, %v3522_v40, %v3146_v18 }
 0x546   : > { %3069 = vrot.lane.b32.xlu0 %v2625_v11, %s4666_s30  ;;  %v3585_v28 = vsel %vm1558_vm10, %v3553_v57, %v3234_v13  ;;  %v2630_v58 = vsel %vm538_vm2, %v2627_v42, %v2629_v41  ;;  %v9516_v41 = vld [vmem:[#allocation105_spill] sm:$0xff] }
 0x547   : > { %3163 = vrot.lane.b32.xlu1 %v9499_v54, %s4667_s6 }
 0x548   : > { %v8083_v31 = vpop.permute.xlu0 %2861 }
 0x549   : > { %v2956_v59 = vpop.permute.xlu1 %2955 }
 0x54a   : > { %2787 = vrot.lane.b32.xlu0 %v2625_v11, %s4663_s19  ;;  %v3491_v13 = vsel %vm1459_vm7, %v3459_v44, %v2956_v59  ;;  %v9511_v59 = vld [vmem:[#allocation18_spill] sm:$0xff] }
 0x54b   : > { %2879 = vrot.lane.b32.xlu1 %v9499_v54, %s4664_s20  ;;  %v3428_v30 = vsel %vm1395_vm5, %v3398_v63, %v9511_v59 }
 0x54c   : > { %v3236_v36 = vpop.permute.xlu0 %3235  ;;  %v3460_v57 = vsel %vm1426_vm6, %v3428_v30, %v8083_v31 }
 0x54d   : > { %v3324_v61 = vpop.permute.xlu1 %3323  ;;  %v3586_v3 = vsel %vm1558_vm10, %v3554_v25, %v3236_v36 }
 0x54e   : > { %v3617_v55 = vsel %vm1591_vm11, %v3585_v28, %v3324_v61  ;;  %3165 = vrot.lane.b32.xlu0 %v9503_v10, %s4667_s6 }
 0x54f   : > { %3253 = vrot.lane.b32.xlu1 %v9502_v45, %s4668_s7  ;;  %4562 = vmatprep.mubr.msk.f32.mxu1 %vm1624_vm12, %v3617_v55 }
 0x550   : > { %v2958_v4 = vpop.permute.xlu0 %2957 }
 0x551   : > { %v3052_v62 = vpop.permute.xlu1 %3051  ;;  %v3492_v36 = vsel %vm1459_vm7, %v3460_v57, %v2958_v4 }
 0x552   : > { %2881 = vrot.lane.b32.xlu0 %v9503_v10, %s4664_s20  ;;  %v3523_v18 = vsel %vm1492_vm8, %v3491_v13, %v3052_v62 }
 0x553   : > { %2975 = vrot.lane.b32.xlu1 %v9502_v45, %s4665_s21 }
 0x554   : > { %v3326_v23 = vpop.permute.xlu0 %3325 }
 0x555   : > { %v3054_v49 = vpop.permute.xlu1 %3053  ;;  %v3618_v37 = vsel %vm1591_vm11, %v3586_v3, %v3326_v23 }
 0x556   : > { %3255 = vrot.lane.b32.xlu0 %v9505_v35, %s4668_s7  ;;  %4563 = vmatmul.mubr.msk.f32.gmra.mrb[16].mxu1 %vm1624_vm12, %v3618_v37  ;;  %v3524_v55 = vsel %vm1492_vm8, %v3492_v36, %v3054_v49 }
 0x557   : > { %3343 = vrot.lane.b32.xlu1 %v2628_v33, %s4669_s8 }
 0x558   : > { %v3148_v16 = vpop.permute.xlu0 %3147 }
 0x559   : > { %v8121_v48 = vpop.permute.xlu1 %2863  ;;  %v3555_v22 = vsel %vm1525_vm9, %v3523_v18, %v3148_v16 }
 0x55a   : > { %2977 = vrot.lane.b32.xlu0 %v9505_v35, %s4665_s21  ;;  %v9515_v35 = vld [vmem:[#allocation40_spill] sm:$0xff] }
 0x55b   : > { %3071 = vrot.lane.b32.xlu1 %v2628_v33, %s4666_s30 }
 0x55c   : > { %v3150_v15 = vpop.permute.xlu0 %3149 }
 0x55d   : > { %v3238_v19 = vpop.permute.xlu1 %3237  ;;  %v3556_v45 = vsel %vm1525_vm9, %v3524_v55, %v3150_v15  ;;  %v9517_v15 = vld [vmem:[#allocation94_spill] sm:$0xff] }
 0x55e   : > { %3345 = vrot.lane.b32.xlu0 %v2630_v58, %s4669_s8  ;;  %v3587_v47 = vsel %vm1558_vm10, %v3555_v22, %v3238_v19  ;;  %v3399_v19 = vsel %vm1364_vm4, %v7079_v34, %v9516_v41  ;;  %v9518_v34 = vld [vmem:[#allocation4_spill] sm:$0xff] }
 0x55f   : > { %2789 = vrot.lane.b32.xlu1 %v2628_v33, %s4663_s19  ;;  %v9514_v33 = vld [vmem:[#allocation67_spill] sm:$0xff] }
 0x560   : > { %v8136_v11 = vpop.permute.xlu0 %2865 }
 0x561   : > { %v2960_v17 = vpop.permute.xlu1 %2959 }
 0x562   : > { %3073 = vrot.lane.b32.xlu0 %v2630_v58, %s4666_s30 }
 0x563   : > { %3167 = vrot.lane.b32.xlu1 %v9509_v53, %s4667_s6 }
 0x564   : > { %v3240_v24 = vpop.permute.xlu0 %3239 }
 0x565   : > { %v3328_v39 = vpop.permute.xlu1 %3327  ;;  %v3588_v12 = vsel %vm1558_vm10, %v3556_v45, %v3240_v24 }
 0x566   : > { %v3619_v27 = vsel %vm1591_vm11, %v3587_v47, %v3328_v39  ;;  %2791 = vrot.lane.b32.xlu0 %v2630_v58, %s4663_s19  ;;  %v3429_v58 = vsel %vm1395_vm5, %v3399_v19, %v9517_v15  ;;  %v9519_v47 = vld [vmem:[#allocation8_spill] sm:$0xff]  ;;  %v9520_v39 = vld [vmem:[#allocation77_spill] sm:$0xff] }
 0x567   : > { %2883 = vrot.lane.b32.xlu1 %v9509_v53, %s4664_s20  ;;  %4565 = vmatprep.mubr.msk.f32.mxu1 %vm1624_vm12, %v3619_v27  ;;  %v3461_v52 = vsel %vm1426_vm6, %v3429_v58, %v8121_v48 }
 0x568   : > { %v2962_v61 = vpop.permute.xlu0 %2961  ;;  %v3493_v38 = vsel %vm1459_vm7, %v3461_v52, %v2960_v17  ;;  %v3400_v17 = vsel %vm1364_vm4, %v6888_v43, %v9519_v47 }
 0x569   : > { %v3056_v28 = vpop.permute.xlu1 %3055  ;;  %v8159_v32 = vpop.f32.mrb[0].mxu1  ;;  %v3430_v24 = vsel %vm1395_vm5, %v3400_v17, %v9520_v39 }
 0x56a   : > { %3169 = vrot.lane.b32.xlu0 %v9513_v6, %s4667_s6  ;;  %v3958_v9 = vsel %vm1364_vm4, %v8159_v32, 0.0  ;;  %v4028_v31 = vmul.f32 %v8159_v32, %v8159_v32  ;;  %v8170_v7 = vpop.f32.mrb[1].mxu1  ;;  %v3525_v44 = vsel %vm1492_vm8, %v3493_v38, %v3056_v28  ;;  %v3462_v27 = vsel %vm1426_vm6, %v3430_v24, %v8136_v11 }
 0x56b   : > { %3257 = vrot.lane.b32.xlu1 %v9512_v29, %s4668_s7  ;;  %v3957_v62 = vsel %vm1364_vm4, %v8170_v7, 0.0  ;;  %v4027_v4 = vmul.f32 %v8170_v7, %v8170_v7  ;;  %v3494_v59 = vsel %vm1459_vm7, %v3462_v27, %v2962_v61 }
 0x56c   : > { %v3330_v50 = vpop.permute.xlu0 %3329  ;;  %v4060_v42 = vsel %vm1364_vm4, %v4028_v31, 0.0  ;;  %v3959_v40 = vadd.f32 %v3958_v9, %v3957_v62 }
 0x56d   : > { %v3058_v1 = vpop.permute.xlu1 %3057  ;;  %v3620_v25 = vsel %vm1591_vm11, %v3588_v12, %v3330_v50  ;;  %v4059_v3 = vsel %vm1364_vm4, %v4027_v4, 0.0 }
 0x56e   : > { %2885 = vrot.lane.b32.xlu0 %v9513_v6, %s4664_s20  ;;  %v4061_v49 = vadd.f32 %v4060_v42, %v4059_v3  ;;  %4566 = vmatmul.mubr.msk.f32.gmra.mrb[18].mxu1 %vm1624_vm12, %v3620_v25  ;;  %v3526_v30 = vsel %vm1492_vm8, %v3494_v59, %v3058_v1 }
 0x56f   : > { %2979 = vrot.lane.b32.xlu1 %v9512_v29, %s4665_s21 }
 0x570   : > { %v3152_v37 = vpop.permute.xlu0 %3151 }
 0x571   : > { %v2868_v23 = vpop.permute.xlu1 %2867  ;;  %v3557_v13 = vsel %vm1525_vm9, %v3525_v44, %v3152_v37 }
 0x572   : > { %3259 = vrot.lane.b32.xlu0 %v9515_v35, %s4668_s7 }
 0x573   : > { %3347 = vrot.lane.b32.xlu1 %v9514_v33, %s4669_s8 }
 0x574   : > { %v3154_v14 = vpop.permute.xlu0 %3153 }
 0x575   : > { %v3242_v16 = vpop.permute.xlu1 %3241  ;;  %v3558_v28 = vsel %vm1525_vm9, %v3526_v30, %v3154_v14 }
 0x576   : > { %2981 = vrot.lane.b32.xlu0 %v9515_v35, %s4665_s21  ;;  %v3589_v18 = vsel %vm1558_vm10, %v3557_v13, %v3242_v16  ;;  %v9522_v35 = vld [vmem:[#allocation78_spill] sm:$0xff]  ;;  %s8671_s21 = scalar_lea.vmem %s8795_s3, %s4394_s14 }
 0x577   : > { %3075 = vrot.lane.b32.xlu1 %v9514_v33, %s4666_s30  ;;  %v9521_v33 = vld [vmem:[#allocation13_spill] sm:$0xff] }
 0x578   : > { %v2870_v51 = vpop.permute.xlu0 %2869 }
 0x579   : > { %v2964_v56 = vpop.permute.xlu1 %2963 }
 0x57a   : > { %3349 = vrot.lane.b32.xlu0 %v9518_v34, %s4669_s8 }
 0x57b   : > { %3077 = vrot.lane.b32.xlu1 %v9518_v34, %s4666_s30 }
 0x57c   : > { %v3244_v22 = vpop.permute.xlu0 %3243 }
 0x57d   : > { %v3332_v53 = vpop.permute.xlu1 %3331  ;;  %v3590_v43 = vsel %vm1558_vm10, %v3558_v28, %v3244_v22 }
 0x57e   : > { %v3621_v48 = vsel %vm1591_vm11, %v3589_v18, %v3332_v53 }
 0x57f   : > { %4568 = vmatprep.mubr.msk.f32.mxu1 %vm1624_vm12, %v3621_v48 }
 0x580   : > { %v2966_v63 = vpop.permute.xlu0 %2965 }
 0x581   : > { %v3060_v0 = vpop.permute.xlu1 %3059  ;;  %v8219_v57 = vpop.f32.mrb[2].mxu1 }
 0x582   : > { %v8222_v36 = vpop.f32.mrb[3].mxu1  ;;  %v4030_v55 = vmul.f32 %v8219_v57, %v8219_v57  ;;  %v3962_v31 = vsel %vm1364_vm4, %v8219_v57, 0.0 }
 0x583   : > { %v3960_v11 = vsel %vm1364_vm4, %v8222_v36, 0.0  ;;  %v4029_v29 = vmul.f32 %v8222_v36, %v8222_v36 }
 0x584   : > { %v3334_v6 = vpop.permute.xlu0 %3333  ;;  %v3961_v45 = vadd.f32 %v3960_v11, %v3959_v40  ;;  %v4064_v1 = vsel %vm1364_vm4, %v4030_v55, 0.0  ;;  %v3401_v40 = vsel %vm1364_vm4, %v7095_v8, %v9521_v33  ;;  %v9523_v8 = vld [vmem:[#allocation71_spill] sm:$0xff] }
 0x585   : > { %v3062_v61 = vpop.permute.xlu1 %3061  ;;  %v3622_v9 = vsel %vm1591_vm11, %v3590_v43, %v3334_v6  ;;  %v4062_v12 = vsel %vm1364_vm4, %v4029_v29, 0.0  ;;  %v3431_v16 = vsel %vm1395_vm5, %v3401_v40, %v9522_v35  ;;  %v3402_v13 = vsel %vm1364_vm4, %v6896_v20, %v9523_v8 }
 0x586   : > { %4569 = vmatmul.mubr.msk.f32.gmra.mrb[20].mxu1 %vm1624_vm12, %v3622_v9  ;;  %v4063_v62 = vadd.f32 %v4062_v12, %v4061_v49  ;;  %v3963_v4 = vadd.f32 %v3962_v31, %v3961_v45  ;;  %v3463_v14 = vsel %vm1426_vm6, %v3431_v16, %v2868_v23  ;;  %v9524_v23 = vld [vmem:[#allocation111_spill] sm:$0xff] }
 0x587   : > { %v3495_v49 = vsel %vm1459_vm7, %v3463_v14, %v2964_v56  ;;  %v3432_v18 = vsel %vm1395_vm5, %v3402_v13, %v9524_v23 }
 0x588   : > { %v3156_v42 = vpop.permute.xlu0 %3155  ;;  %v4065_v25 = vadd.f32 %v4064_v1, %v4063_v62  ;;  %v3527_v15 = vsel %vm1492_vm8, %v3495_v49, %v3060_v0  ;;  %v3464_v56 = vsel %vm1426_vm6, %v3432_v18, %v2870_v51  ;;  %v9525_v62 = vld [vmem:[#allocation106_spill] sm:$0xff]  ;;  %v9526_v1 = vld [vmem:[#allocation112_spill] sm:$0xff] }
 0x589   : > { %v2872_v50 = vpop.permute.xlu1 %2871  ;;  %v3559_v58 = vsel %vm1525_vm9, %v3527_v15, %v3156_v42  ;;  %v3496_v48 = vsel %vm1459_vm7, %v3464_v56, %v2966_v63 }
 0x58a   : > { %v3528_v47 = vsel %vm1492_vm8, %v3496_v48, %v3062_v61 }
 0x58c   : > { %v3158_v37 = vpop.permute.xlu0 %3157 }
 0x58d   : > { %v3246_v3 = vpop.permute.xlu1 %3245  ;;  %v3560_v39 = vsel %vm1525_vm9, %v3528_v47, %v3158_v37 }
 0x58e   : > { %v3591_v52 = vsel %vm1558_vm10, %v3559_v58, %v3246_v3 }
 0x590   : > { %v2874_v19 = vpop.permute.xlu0 %2873 }
 0x591   : > { %v2968_v41 = vpop.permute.xlu1 %2967 }
 0x594   : > { %v3248_v44 = vpop.permute.xlu0 %3247 }
 0x595   : > { %v3336_v38 = vpop.permute.xlu1 %3335  ;;  %v3592_v20 = vsel %vm1558_vm10, %v3560_v39, %v3248_v44 }
 0x596   : > { %v3623_v34 = vsel %vm1591_vm11, %v3591_v52, %v3336_v38 }
 0x597   : > { %4571 = vmatprep.mubr.msk.f32.mxu1 %vm1624_vm12, %v3623_v34 }
 0x598   : > { %v2970_v22 = vpop.permute.xlu0 %2969 }
 0x599   : > { %v3064_v53 = vpop.permute.xlu1 %3063  ;;  %v8257_v17 = vpop.f32.mrb[4].mxu1 }
 0x59a   : > { %v8260_v24 = vpop.f32.mrb[5].mxu1  ;;  %v4032_v27 = vmul.f32 %v8257_v17, %v8257_v17  ;;  %v3966_v43 = vsel %vm1364_vm4, %v8257_v17, 0.0 }
 0x59b   : > { %v3964_v51 = vsel %vm1364_vm4, %v8260_v24, 0.0  ;;  %v4031_v0 = vmul.f32 %v8260_v24, %v8260_v24 }
 0x59c   : > { %v3338_v59 = vpop.permute.xlu0 %3337  ;;  %v3965_v30 = vadd.f32 %v3964_v51, %v3963_v4  ;;  %v4068_v61 = vsel %vm1364_vm4, %v4032_v27, 0.0  ;;  %v3403_v4 = vsel %vm1364_vm4, %v9467_v26, %v9525_v62  ;;  %v9527_v26 = vld [vmem:[#allocation9_spill] sm:$0xff] }
 0x59d   : > { %v3066_v63 = vpop.permute.xlu1 %3065  ;;  %v3624_v28 = vsel %vm1591_vm11, %v3592_v20, %v3338_v59  ;;  %v4066_v55 = vsel %vm1364_vm4, %v4031_v0, 0.0  ;;  %v3433_v42 = vsel %vm1395_vm5, %v3403_v4, %v9526_v1  ;;  %v3404_v58 = vsel %vm1364_vm4, %v9469_v60, %v9527_v26 }
 0x59e   : > { %4572 = vmatmul.mubr.msk.f32.gmra.mrb[22].mxu1 %vm1624_vm12, %v3624_v28  ;;  %v4067_v11 = vadd.f32 %v4066_v55, %v4065_v25  ;;  %v3967_v29 = vadd.f32 %v3966_v43, %v3965_v30  ;;  %v3465_v3 = vsel %vm1426_vm6, %v3433_v42, %v2872_v50  ;;  %v9528_v50 = vld [vmem:[#allocation95_spill] sm:$0xff] }
 0x59f   : > { %v3497_v25 = vsel %vm1459_vm7, %v3465_v3, %v2968_v41  ;;  %v3434_v52 = vsel %vm1395_vm5, %v3404_v58, %v9528_v50 }
 0x5a0   : > { %v3160_v45 = vpop.permute.xlu0 %3159  ;;  %v4069_v9 = vadd.f32 %v4068_v61, %v4067_v11  ;;  %v3529_v40 = vsel %vm1492_vm8, %v3497_v25, %v3064_v53  ;;  %v3466_v41 = vsel %vm1426_vm6, %v3434_v52, %v2874_v19  ;;  %v9529_v61 = vld [vmem:[#allocation14_spill] sm:$0xff] }
 0x5a1   : > { %v2876_v6 = vpop.permute.xlu1 %2875  ;;  %v3561_v35 = vsel %vm1525_vm9, %v3529_v40, %v3160_v45  ;;  %v3498_v34 = vsel %vm1459_vm7, %v3466_v41, %v2970_v22  ;;  %v3405_v45 = vsel %vm1364_vm4, %v9478_v5, %v9529_v61  ;;  %v9533_v61 = vld [vmem:[#allocation73_spill] sm:$0xff] }
 0x5a2   : > { %v3530_v8 = vsel %vm1492_vm8, %v3498_v34, %v3066_v63 }
 0x5a4   : > { %v3162_v12 = vpop.permute.xlu0 %3161 }
 0x5a5   : > { %v3250_v31 = vpop.permute.xlu1 %3249  ;;  %v3562_v23 = vsel %vm1525_vm9, %v3530_v8, %v3162_v12 }
 0x5a6   : > { %v3593_v16 = vsel %vm1558_vm10, %v3561_v35, %v3250_v31  ;;  %v9530_v31 = vld [vmem:[#allocation96_spill] sm:$0xff] }
 0x5a7   : > { %v9531_v35 = vld [vmem:[#allocation72_spill] sm:$0xff] }
 0x5a8   : > { %v2878_v33 = vpop.permute.xlu0 %2877 }
 0x5a9   : > { %v2972_v37 = vpop.permute.xlu1 %2971 }
 0x5ac   : > { %v3252_v49 = vpop.permute.xlu0 %3251 }
 0x5ad   : > { %v3340_v14 = vpop.permute.xlu1 %3339  ;;  %v3594_v60 = vsel %vm1558_vm10, %v3562_v23, %v3252_v49 }
 0x5ae   : > { %v3625_v15 = vsel %vm1591_vm11, %v3593_v16, %v3340_v14  ;;  %v3406_v16 = vsel %vm1364_vm4, %v9481_v21, %v9531_v35  ;;  %v9532_v14 = vld [vmem:[#allocation79_spill] sm:$0xff] }
 0x5af   : > { %4574 = vmatprep.mubr.msk.f32.mxu1 %vm1624_vm12, %v3625_v15  ;;  %v3436_v49 = vsel %vm1395_vm5, %v3406_v16, %v9532_v14 }
 0x5b0   : > { %v2974_v44 = vpop.permute.xlu0 %2973  ;;  %v3468_v26 = vsel %vm1426_vm6, %v3436_v49, %v2878_v33  ;;  %v9534_v49 = vld [vmem:[#allocation108_spill] sm:$0xff] }
 0x5b1   : > { %v3068_v38 = vpop.permute.xlu1 %3067  ;;  %v8295_v13 = vpop.f32.mrb[6].mxu1 }
 0x5b2   : > { %v8298_v18 = vpop.f32.mrb[7].mxu1  ;;  %v4034_v56 = vmul.f32 %v8295_v13, %v8295_v13  ;;  %v3970_v20 = vsel %vm1364_vm4, %v8295_v13, 0.0 }
 0x5b3   : > { %v3968_v19 = vsel %vm1364_vm4, %v8298_v18, 0.0  ;;  %v4033_v53 = vmul.f32 %v8298_v18, %v8298_v18 }
 0x5b4   : > { %v3342_v48 = vpop.permute.xlu0 %3341  ;;  %v3969_v47 = vadd.f32 %v3968_v19, %v3967_v29  ;;  %v4072_v63 = vsel %vm1364_vm4, %v4034_v56, 0.0 }
 0x5b5   : > { %v8307_v22 = vpop.permute.xlu1 %2785  ;;  %v3626_v39 = vsel %vm1591_vm11, %v3594_v60, %v3342_v48  ;;  %v4070_v27 = vsel %vm1364_vm4, %v4033_v53, 0.0 }
 0x5b6   : > { %4575 = vmatmul.mubr.msk.f32.gmra.mrb[24].mxu1 %vm1624_vm12, %v3626_v39  ;;  %v4071_v51 = vadd.f32 %v4070_v27, %v4069_v9  ;;  %v3971_v0 = vadd.f32 %v3970_v20, %v3969_v47  ;;  %v3435_v9 = vsel %vm1395_vm5, %v3405_v45, %v9530_v31  ;;  %v3407_v45 = vsel %vm1364_vm4, %v9490_v46, %v9533_v61 }
 0x5b7   : > { %v3467_v12 = vsel %vm1426_vm6, %v3435_v9, %v2876_v6  ;;  %v3437_v31 = vsel %vm1395_vm5, %v3407_v45, %v8307_v22 }
 0x5b8   : > { %v3070_v30 = vpop.permute.xlu0 %3069  ;;  %v4073_v28 = vadd.f32 %v4072_v63, %v4071_v51  ;;  %v3499_v1 = vsel %vm1459_vm7, %v3467_v12, %v2972_v37 }
 0x5b9   : > { %v8315_v59 = vpop.permute.xlu1 %3163  ;;  %v3531_v42 = vsel %vm1492_vm8, %v3499_v1, %v3068_v38  ;;  %v3500_v38 = vsel %vm1459_vm7, %v3468_v26, %v2974_v44  ;;  %v3409_v26 = vsel %vm1364_vm4, %v9499_v54, %v9534_v49 }
 0x5ba   : > { %v3563_v3 = vsel %vm1525_vm9, %v3531_v42, %v8315_v59  ;;  %v3532_v8 = vsel %vm1492_vm8, %v3500_v38, %v3070_v30 }
 0x5bc   : > { %v8317_v55 = vpop.permute.xlu0 %2787 }
 0x5bd   : > { %v2880_v43 = vpop.permute.xlu1 %2879 }
 0x5be   : > { %v3469_v9 = vsel %vm1426_vm6, %v3437_v31, %v2880_v43 }
 0x5c0   : > { %v8321_v29 = vpop.permute.xlu0 %3165 }
 0x5c1   : > { %v8319_v11 = vpop.permute.xlu1 %3253  ;;  %v3564_v60 = vsel %vm1525_vm9, %v3532_v8, %v8321_v29 }
 0x5c2   : > { %v3595_v25 = vsel %vm1558_vm10, %v3563_v3, %v8319_v11 }
 0x5c4   : > { %v8329_v4 = vpop.permute.xlu0 %2881 }
 0x5c5   : > { %v2976_v62 = vpop.permute.xlu1 %2975 }
 0x5c6   : > { %v3501_v42 = vsel %vm1459_vm7, %v3469_v9, %v2976_v62 }
 0x5c8   : > { %v8339_v5 = vpop.permute.xlu0 %3255 }
 0x5c9   : > { %v8337_v40 = vpop.permute.xlu1 %3343  ;;  %v8346_v37 = vpop.f32.mrb[8].mxu1  ;;  %v3596_v53 = vsel %vm1558_vm10, %v3564_v60, %v8339_v5 }
 0x5ca   : > { %v3627_v6 = vsel %vm1591_vm11, %v3595_v25, %v8337_v40  ;;  %v8351_v15 = vpop.f32.mrb[9].mxu1  ;;  %v4036_v58 = vmul.f32 %v8346_v37, %v8346_v37  ;;  %v3974_v23 = vsel %vm1364_vm4, %v8346_v37, 0.0 }
 0x5cb   : > { %4577 = vmatprep.mubr.msk.f32.mxu1 %vm1624_vm12, %v3627_v6  ;;  %v3972_v50 = vsel %vm1364_vm4, %v8351_v15, 0.0  ;;  %v4035_v21 = vmul.f32 %v8351_v15, %v8351_v15 }
 0x5cc   : > { %v2978_v41 = vpop.permute.xlu0 %2977  ;;  %v3973_v34 = vadd.f32 %v3972_v50, %v3971_v0  ;;  %v4076_v48 = vsel %vm1364_vm4, %v4036_v58, 0.0 }
 0x5cd   : > { %v3072_v52 = vpop.permute.xlu1 %3071  ;;  %v4074_v33 = vsel %vm1364_vm4, %v4035_v21, 0.0  ;;  %v9535_v21 = vld [vmem:[#allocation107_spill] sm:$0xff] }
 0x5ce   : > { %v4075_v56 = vadd.f32 %v4074_v33, %v4073_v28  ;;  %v3975_v19 = vadd.f32 %v3974_v23, %v3973_v34  ;;  %v3533_v3 = vsel %vm1492_vm8, %v3501_v42, %v3072_v52  ;;  %v3408_v52 = vsel %vm1364_vm4, %v9493_v2, %v9535_v21 }
 0x5cf   : > { %v3438_v23 = vsel %vm1395_vm5, %v3408_v52, %v8317_v55 }
 0x5d0   : > { %v8370_v44 = vpop.permute.xlu0 %3345  ;;  %v4077_v20 = vadd.f32 %v4076_v48, %v4075_v56  ;;  %v3470_v56 = vsel %vm1426_vm6, %v3438_v23, %v8329_v4 }
 0x5d1   : > { %v2790_v47 = vpop.permute.xlu1 %2789  ;;  %v3628_v39 = vsel %vm1591_vm11, %v3596_v53, %v8370_v44 }
 0x5d2   : > { %4578 = vmatmul.mubr.msk.f32.gmra.mrb[26].mxu1 %vm1624_vm12, %v3628_v39  ;;  %v3439_v38 = vsel %vm1395_vm5, %v3409_v26, %v2790_v47  ;;  %v9536_v47 = vld [vmem:[#allocation15_spill] sm:$0xff] }
 0x5d3   : > { %v3410_v39 = vsel %vm1364_vm4, %v9503_v10, %v9536_v47 }
 0x5d4   : > { %v3074_v51 = vpop.permute.xlu0 %3073 }
 0x5d5   : > { %v3168_v27 = vpop.permute.xlu1 %3167 }
 0x5d6   : > { %v3565_v6 = vsel %vm1525_vm9, %v3533_v3, %v3168_v27  ;;  %v3502_v27 = vsel %vm1459_vm7, %v3470_v56, %v2978_v41 }
 0x5d8   : > { %v2792_v63 = vpop.permute.xlu0 %2791 }
 0x5d9   : > { %v2884_v0 = vpop.permute.xlu1 %2883 }
 0x5da   : > { %v3471_v54 = vsel %vm1426_vm6, %v3439_v38, %v2884_v0 }
 0x5dc   : > { %v3170_v28 = vpop.permute.xlu0 %3169 }
 0x5dd   : > { %v3258_v30 = vpop.permute.xlu1 %3257 }
 0x5de   : > { %v3597_v16 = vsel %vm1558_vm10, %v3565_v6, %v3258_v30  ;;  %v3440_v30 = vsel %vm1395_vm5, %v3410_v39, %v2792_v63 }
 0x5e0   : > { %v2886_v1 = vpop.permute.xlu0 %2885 }
 0x5e1   : > { %v2980_v12 = vpop.permute.xlu1 %2979  ;;  %v8383_v25 = vpop.f32.mrb[10].mxu1  ;;  %v3472_v45 = vsel %vm1426_vm6, %v3440_v30, %v2886_v1 }
 0x5e2   : > { %v8386_v35 = vpop.f32.mrb[11].mxu1  ;;  %v4038_v46 = vmul.f32 %v8383_v25, %v8383_v25  ;;  %v3978_v34 = vsel %vm1364_vm4, %v8383_v25, 0.0  ;;  %v3503_v2 = vsel %vm1459_vm7, %v3471_v54, %v2980_v12 }
 0x5e3   : > { %v3976_v22 = vsel %vm1364_vm4, %v8386_v35, 0.0  ;;  %v4037_v43 = vmul.f32 %v8386_v35, %v8386_v35 }
 0x5e4   : > { %v3260_v14 = vpop.permute.xlu0 %3259  ;;  %v3977_v58 = vadd.f32 %v3976_v22, %v3975_v19  ;;  %v4080_v19 = vsel %vm1364_vm4, %v4038_v46, 0.0 }
 0x5e5   : > { %v3348_v62 = vpop.permute.xlu1 %3347  ;;  %v4078_v8 = vsel %vm1364_vm4, %v4037_v43, 0.0 }
 0x5e6   : > { %v3629_v50 = vsel %vm1591_vm11, %v3597_v16, %v3348_v62  ;;  %v4079_v33 = vadd.f32 %v4078_v8, %v4077_v20  ;;  %v3979_v60 = vadd.f32 %v3978_v34, %v3977_v58  ;;  %v3534_v20 = vsel %vm1492_vm8, %v3502_v27, %v3074_v51 }
 0x5e7   : > { %4580 = vmatprep.mubr.msk.f32.mxu1 %vm1624_vm12, %v3629_v50  ;;  %v3566_v61 = vsel %vm1525_vm9, %v3534_v20, %v3170_v28 }
 0x5e8   : > { %v2982_v48 = vpop.permute.xlu0 %2981  ;;  %v4081_v0 = vadd.f32 %v4080_v19, %v4079_v33  ;;  %v3598_v10 = vsel %vm1558_vm10, %v3566_v61, %v3260_v14 }
 0x5e9   : > { %v3076_v53 = vpop.permute.xlu1 %3075  ;;  %v3504_v41 = vsel %vm1459_vm7, %v3472_v45, %v2982_v48 }
 0x5ea   : > { %v3535_v55 = vsel %vm1492_vm8, %v3503_v2, %v3076_v53 }
 0x5eb   : > { %v3567_v4 = vsel %vm1525_vm9, %v3535_v55, %v8315_v59 }
 0x5ec   : > { %v3599_v31 = vsel %vm1558_vm10, %v3567_v4, %v8319_v11  ;;  %v3350_v12 = vpop.permute.xlu0 %3349 }
 0x5ed   : > { %v3078_v9 = vpop.permute.xlu1 %3077  ;;  %v3630_v63 = vsel %vm1591_vm11, %v3598_v10, %v3350_v12  ;;  %v3631_v28 = vsel %vm1591_vm11, %v3599_v31, %v8337_v40 }
 0x5ee   : > { %v3536_v51 = vsel %vm1492_vm8, %v3504_v41, %v3078_v9  ;;  %4581 = vmatmul.mubr.msk.f32.gmra.mrb[28].mxu1 %vm1624_vm12, %v3630_v63 }
 0x5ef   : > { %v3568_v59 = vsel %vm1525_vm9, %v3536_v51, %v8321_v29  ;;  %4583 = vmatprep.mubr.msk.f32.mxu1 %vm1624_vm12, %v3631_v28 }
 0x5f0   : > { %v3600_v11 = vsel %vm1558_vm10, %v3568_v59, %v8339_v5 }
 0x5f1   : > { %v3632_v1 = vsel %vm1591_vm11, %v3600_v11, %v8370_v44 }
 0x5f2   : > { %4584 = vmatmul.mubr.msk.f32.gmra.mrb[30].mxu1 %vm1624_vm12, %v3632_v1 }
 0x5f9   : > { %v8442_v42 = vpop.f32.mrb[12].mxu1 }
 0x5fa   : > { %v8444_v3 = vpop.f32.mrb[13].mxu1  ;;  %v4040_v29 = vmul.f32 %v8442_v42, %v8442_v42  ;;  %v3982_v5 = vsel %vm1364_vm4, %v8442_v42, 0.0 }
 0x5fb   : > { %v3980_v40 = vsel %vm1364_vm4, %v8444_v3, 0.0  ;;  %v4039_v6 = vmul.f32 %v8444_v3, %v8444_v3 }
 0x5fc   : > { %v3981_v16 = vadd.f32 %v3980_v40, %v3979_v60  ;;  %v4084_v43 = vsel %vm1364_vm4, %v4040_v29, 0.0 }
 0x5fd   : > { %v4082_v44 = vsel %vm1364_vm4, %v4039_v6, 0.0 }
 0x5fe   : > { %v4083_v46 = vadd.f32 %v4082_v44, %v4081_v0  ;;  %v3983_v22 = vadd.f32 %v3982_v5, %v3981_v16 }
 0x600   : > { %v4085_v62 = vadd.f32 %v4084_v43, %v4083_v46 }
 0x611   : > { %v8456_v14 = vpop.f32.mrb[14].mxu1 }
 0x612   : > { %v8458_v49 = vpop.f32.mrb[15].mxu1  ;;  %v4042_v26 = vmul.f32 %v8456_v14, %v8456_v14  ;;  %v3986_v52 = vsel %vm1364_vm4, %v8456_v14, 0.0 }
 0x613   : > { %v3984_v58 = vsel %vm1364_vm4, %v8458_v49, 0.0  ;;  %v4041_v50 = vmul.f32 %v8458_v49, %v8458_v49 }
 0x614   : > { %v3985_v21 = vadd.f32 %v3984_v58, %v3983_v22  ;;  %v4088_v23 = vsel %vm1364_vm4, %v4042_v26, 0.0 }
 0x615   : > { %v4086_v38 = vsel %vm1364_vm4, %v4041_v50, 0.0 }
 0x616   : > { %v4087_v34 = vadd.f32 %v4086_v38, %v4085_v62  ;;  %v3987_v8 = vadd.f32 %v3986_v52, %v3985_v21 }
 0x618   : > { %v4089_v54 = vadd.f32 %v4088_v23, %v4087_v34 }
 0x629   : > { %v8470_v33 = vpop.f32.mrb[16].mxu1 }
 0x62a   : > { %v8472_v60 = vpop.f32.mrb[17].mxu1  ;;  %v4044_v56 = vmul.f32 %v8470_v33, %v8470_v33  ;;  %v3990_v48 = vsel %vm1364_vm4, %v8470_v33, 0.0 }
 0x62b   : > { %v3988_v2 = vsel %vm1364_vm4, %v8472_v60, 0.0  ;;  %v4043_v19 = vmul.f32 %v8472_v60, %v8472_v60 }
 0x62c   : > { %v3989_v53 = vadd.f32 %v3988_v2, %v3987_v8  ;;  %v4092_v55 = vsel %vm1364_vm4, %v4044_v56, 0.0 }
 0x62d   : > { %v4090_v47 = vsel %vm1364_vm4, %v4043_v19, 0.0 }
 0x62e   : > { %v4091_v39 = vadd.f32 %v4090_v47, %v4089_v54  ;;  %v3991_v27 = vadd.f32 %v3990_v48, %v3989_v53 }
 0x630   : > { %v4093_v0 = vadd.f32 %v4092_v55, %v4091_v39 }
 0x641   : > { %v8484_v20 = vpop.f32.mrb[18].mxu1 }
 0x642   : > { %v8486_v30 = vpop.f32.mrb[19].mxu1  ;;  %v4046_v4 = vmul.f32 %v8484_v20, %v8484_v20  ;;  %v3994_v10 = vsel %vm1364_vm4, %v8484_v20, 0.0 }
 0x643   : > { %v3992_v61 = vsel %vm1364_vm4, %v8486_v30, 0.0  ;;  %v4045_v45 = vmul.f32 %v8486_v30, %v8486_v30 }
 0x644   : > { %v3993_v31 = vadd.f32 %v3992_v61, %v3991_v27  ;;  %v4096_v51 = vsel %vm1364_vm4, %v4046_v4, 0.0 }
 0x645   : > { %v4094_v41 = vsel %vm1364_vm4, %v4045_v45, 0.0 }
 0x646   : > { %v4095_v9 = vadd.f32 %v4094_v41, %v4093_v0  ;;  %v3995_v12 = vadd.f32 %v3994_v10, %v3993_v31 }
 0x648   : > { %v4097_v63 = vadd.f32 %v4096_v51, %v4095_v9 }
 0x659   : > { %v8498_v59 = vpop.f32.mrb[20].mxu1 }
 0x65a   : > { %v8500_v28 = vpop.f32.mrb[21].mxu1  ;;  %v4048_v11 = vmul.f32 %v8498_v59, %v8498_v59  ;;  %v3998_v6 = vsel %vm1364_vm4, %v8498_v59, 0.0 }
 0x65b   : > { %v3996_v1 = vsel %vm1364_vm4, %v8500_v28, 0.0  ;;  %v4047_v29 = vmul.f32 %v8500_v28, %v8500_v28 }
 0x65c   : > { %v3997_v40 = vadd.f32 %v3996_v1, %v3995_v12  ;;  %v4100_v46 = vsel %vm1364_vm4, %v4048_v11, 0.0 }
 0x65d   : > { %v4098_v16 = vsel %vm1364_vm4, %v4047_v29, 0.0 }
 0x65e   : > { %v4099_v5 = vadd.f32 %v4098_v16, %v4097_v63  ;;  %v3999_v44 = vadd.f32 %v3998_v6, %v3997_v40 }
 0x660   : > { %v4101_v22 = vadd.f32 %v4100_v46, %v4099_v5 }
 0x671   : > { %v8512_v43 = vpop.f32.mrb[22].mxu1 }
 0x672   : > { %v8514_v62 = vpop.f32.mrb[23].mxu1  ;;  %v4050_v26 = vmul.f32 %v8512_v43, %v8512_v43  ;;  %v4002_v52 = vsel %vm1364_vm4, %v8512_v43, 0.0 }
 0x673   : > { %v4000_v58 = vsel %vm1364_vm4, %v8514_v62, 0.0  ;;  %v4049_v50 = vmul.f32 %v8514_v62, %v8514_v62 }
 0x674   : > { %v4001_v21 = vadd.f32 %v4000_v58, %v3999_v44  ;;  %v4104_v23 = vsel %vm1364_vm4, %v4050_v26, 0.0 }
 0x675   : > { %v4102_v38 = vsel %vm1364_vm4, %v4049_v50, 0.0 }
 0x676   : > { %v4103_v34 = vadd.f32 %v4102_v38, %v4101_v22  ;;  %v4003_v8 = vadd.f32 %v4002_v52, %v4001_v21 }
 0x678   : > { %v4105_v54 = vadd.f32 %v4104_v23, %v4103_v34 }
 0x689   : > { %v8526_v56 = vpop.f32.mrb[24].mxu1 }
 0x68a   : > { %v8528_v2 = vpop.f32.mrb[25].mxu1  ;;  %v4052_v19 = vmul.f32 %v8526_v56, %v8526_v56  ;;  %v4006_v39 = vsel %vm1364_vm4, %v8526_v56, 0.0 }
 0x68b   : > { %v4004_v53 = vsel %vm1364_vm4, %v8528_v2, 0.0  ;;  %v4051_v48 = vmul.f32 %v8528_v2, %v8528_v2 }
 0x68c   : > { %v4005_v47 = vadd.f32 %v4004_v53, %v4003_v8  ;;  %v4108_v4 = vsel %vm1364_vm4, %v4052_v19, 0.0 }
 0x68d   : > { %v4106_v27 = vsel %vm1364_vm4, %v4051_v48, 0.0 }
 0x68e   : > { %v4107_v55 = vadd.f32 %v4106_v27, %v4105_v54  ;;  %v4007_v0 = vadd.f32 %v4006_v39, %v4005_v47 }
 0x690   : > { %v4109_v61 = vadd.f32 %v4108_v4, %v4107_v55 }
 0x6a5   : > { %v8540_v45 = vpop.f32.mrb[26].mxu1 }
 0x6a6   : > { %v8542_v31 = vpop.f32.mrb[27].mxu1  ;;  %v4054_v10 = vmul.f32 %v8540_v45, %v8540_v45  ;;  %v4010_v51 = vsel %vm1364_vm4, %v8540_v45, 0.0 }
 0x6a7   : > { %v4008_v41 = vsel %vm1364_vm4, %v8542_v31, 0.0  ;;  %v4053_v9 = vmul.f32 %v8542_v31, %v8542_v31 }
 0x6a8   : > { %v4009_v12 = vadd.f32 %v4008_v41, %v4007_v0  ;;  %v4112_v29 = vsel %vm1364_vm4, %v4054_v10, 0.0 }
 0x6a9   : > { %v4110_v63 = vsel %vm1364_vm4, %v4053_v9, 0.0 }
 0x6aa   : > { %v4111_v11 = vadd.f32 %v4110_v63, %v4109_v61  ;;  %v4011_v1 = vadd.f32 %v4010_v51, %v4009_v12 }
 0x6ac   : > { %v4113_v40 = vadd.f32 %v4112_v29, %v4111_v11 }
 0x6c1   : > { %v8554_v6 = vpop.f32.mrb[28].mxu1 }
 0x6c2   : > { %v8556_v16 = vpop.f32.mrb[29].mxu1  ;;  %v4056_v5 = vmul.f32 %v8554_v6, %v8554_v6  ;;  %v4014_v26 = vsel %vm1364_vm4, %v8554_v6, 0.0 }
 0x6c3   : > { %v4012_v44 = vsel %vm1364_vm4, %v8556_v16, 0.0  ;;  %v4055_v46 = vmul.f32 %v8556_v16, %v8556_v16 }
 0x6c4   : > { %v4013_v22 = vadd.f32 %v4012_v44, %v4011_v1  ;;  %v4116_v34 = vsel %vm1364_vm4, %v4056_v5, 0.0 }
 0x6c5   : > { %v4114_v58 = vsel %vm1364_vm4, %v4055_v46, 0.0  ;;  %v8567_v50 = vpop.f32.mrb[30].mxu1 }
 0x6c6   : > { %v4115_v21 = vadd.f32 %v4114_v58, %v4113_v40  ;;  %v8569_v52 = vpop.f32.mrb[31].mxu1  ;;  %v4015_v38 = vadd.f32 %v4014_v26, %v4013_v22  ;;  %v4058_v8 = vmul.f32 %v8567_v50, %v8567_v50  ;;  %v4018_v48 = vsel %vm1364_vm4, %v8567_v50, 0.0 }
 0x6c7   : > { %v4016_v23 = vsel %vm1364_vm4, %v8569_v52, 0.0  ;;  %v4057_v54 = vmul.f32 %v8569_v52, %v8569_v52 }
 0x6c8   : > { %v4017_v19 = vadd.f32 %v4016_v23, %v4015_v38  ;;  %v4117_v53 = vadd.f32 %v4116_v34, %v4115_v21  ;;  %v4120_v55 = vsel %vm1364_vm4, %v4058_v8, 0.0 }
 0x6c9   : > { %v4118_v47 = vsel %vm1364_vm4, %v4057_v54, 0.0 }
 0x6ca   : > { %v4019_v39 = vadd.f32 %v4018_v48, %v4017_v19  ;;  %v4119_v27 = vadd.f32 %v4118_v47, %v4117_v53 }
 0x6cc   : > { %v4020_v0 = vrot.slane %v4019_v39, 4  ;;  %v4121_v4 = vadd.f32 %v4120_v55, %v4119_v27 }
 0x6ce   : > { %v4021_v61 = vadd.f32 %v4020_v0, %v4019_v39  ;;  %v4122_v10 = vrot.slane %v4121_v4, 4 }
 0x6d0   : > { %v4022_v41 = vrot.slane %v4021_v61, 2  ;;  %v4123_v9 = vadd.f32 %v4122_v10, %v4121_v4 }
 0x6d2   : > { %v4023_v12 = vadd.f32 %v4022_v41, %v4021_v61  ;;  %v4124_v51 = vrot.slane %v4123_v9, 2 }
 0x6d4   : > { %v4024_v63 = vrot.slane %v4023_v12, 1  ;;  %v4125_v11 = vadd.f32 %v4124_v51, %v4123_v9 }
 0x6d6   : > { %v4025_v1 = vadd.f32 %v4024_v63, %v4023_v12  ;;  %v4126_v29 = vrot.slane %v4125_v11, 1 }
 0x6d8   : > { %v8582_v40 = vmul.f32 0.00390625, %v4025_v1  ;;  %v4127_v5 = vadd.f32 %v4126_v29, %v4125_v11 }
 0x6da   : > { %v4128_v44 = vmul.f32 0.00390625, %v4127_v5  ;;  %v4129_v46 = vmul.f32 %v8582_v40, %v8582_v40  ;;  %v4132_v22 = vsub.f32 %v8170_v7, %v8582_v40  ;;  %v4133_v26 = vsub.f32 %v8159_v32, %v8582_v40 }
 0x6db   : > { %v4134_v58 = vsub.f32 %v8222_v36, %v8582_v40  ;;  %v4135_v21 = vsub.f32 %v8219_v57, %v8582_v40  ;;  %v4136_v38 = vsub.f32 %v8260_v24, %v8582_v40  ;;  %v4137_v34 = vsub.f32 %v8257_v17, %v8582_v40 }
 0x6dc   : > { %v4130_v8 = vsub.f32 %v4128_v44, %v4129_v46  ;;  %v4138_v23 = vsub.f32 %v8298_v18, %v8582_v40  ;;  %v4139_v7 = vsub.f32 %v8295_v13, %v8582_v40  ;;  %v4140_v32 = vsub.f32 %v8351_v15, %v8582_v40 }
 0x6dd   : > { %v4141_v36 = vsub.f32 %v8346_v37, %v8582_v40  ;;  %v4142_v57 = vsub.f32 %v8386_v35, %v8582_v40  ;;  %v4143_v24 = vsub.f32 %v8383_v25, %v8582_v40  ;;  %v4144_v17 = vsub.f32 %v8444_v3, %v8582_v40 }
 0x6de   : > { %v4131_v54 = vmax.f32 %v4130_v8, 0.0  ;;  %v4145_v18 = vsub.f32 %v8442_v42, %v8582_v40  ;;  %v4146_v13 = vsub.f32 %v8458_v49, %v8582_v40  ;;  %v4147_v15 = vsub.f32 %v8456_v14, %v8582_v40  ;;  %v4623_v8 = vld [vmem:[%s4706_s17 + $0x8] sm:$0xff] }
 0x6df   : > { %v4148_v37 = vsub.f32 %v8472_v60, %v8582_v40  ;;  %v4149_v35 = vsub.f32 %v8470_v33, %v8582_v40  ;;  %v4150_v25 = vsub.f32 %v8486_v30, %v8582_v40  ;;  %v4151_v3 = vsub.f32 %v8484_v20, %v8582_v40 }
 0x6e0   : > { %v4152_v42 = vsub.f32 %v8500_v28, %v8582_v40  ;;  %v4153_v49 = vsub.f32 %v8498_v59, %v8582_v40  ;;  %v4154_v14 = vsub.f32 %v8514_v62, %v8582_v40  ;;  %v4155_v60 = vsub.f32 %v8512_v43, %v8582_v40 }
 0x6e1   : > { %v4156_v33 = vsub.f32 %v8528_v2, %v8582_v40  ;;  %v4157_v30 = vsub.f32 %v8526_v56, %v8582_v40  ;;  %v4158_v20 = vsub.f32 %v8542_v31, %v8582_v40  ;;  %v4159_v28 = vsub.f32 %v8540_v45, %v8582_v40 }
 0x6e2   : > { %v4160_v59 = vsub.f32 %v8556_v16, %v8582_v40  ;;  %v4161_v62 = vsub.f32 %v8554_v6, %v8582_v40  ;;  %v4162_v43 = vsub.f32 %v8569_v52, %v8582_v40  ;;  %v4163_v2 = vsub.f32 %v8567_v50, %v8582_v40 }
 0x6e3   : > { %v4164_v19 = vadd.f32 1e-05, %v4131_v54  ;;  %v4627_v54 = vld [vmem:[%s4706_s17 + $0x28] sm:$0xff] }
 0x6e5   : > { %4620 = vrsqrt.f32 %v4164_v19  ;;  %v4637_v19 = vld [vmem:[%s4706_s17 + $0x78] sm:$0xff] }
 0x6ef   : > { %v4621_v56 = vpop.eup %4620 }
 0x6f0   : > { %v4166_v53 = vmul.f32 %v4621_v56, %v4132_v22  ;;  %v4167_v31 = vmul.f32 %v4621_v56, %v4133_v26  ;;  %v4168_v48 = vmul.f32 %v4621_v56, %v4134_v58  ;;  %v4169_v47 = vmul.f32 %v4621_v56, %v4135_v21 }
 0x6f1   : > { %v4170_v45 = vmul.f32 %v4621_v56, %v4136_v38  ;;  %v4171_v39 = vmul.f32 %v4621_v56, %v4137_v34  ;;  %v4172_v27 = vmul.f32 %v4621_v56, %v4138_v23  ;;  %v4173_v16 = vmul.f32 %v4621_v56, %v4139_v7  ;;  %v4622_v38 = vld [vmem:[%s4706_s17] sm:$0xff]  ;;  %v4624_v7 = vld [vmem:[%s4706_s17 + $0x10] sm:$0xff] }
 0x6f2   : > { %v4174_v55 = vmul.f32 %v4621_v56, %v4140_v32  ;;  %v4175_v0 = vmul.f32 %v4621_v56, %v4141_v36  ;;  %v4176_v6 = vmul.f32 %v4621_v56, %v4142_v57  ;;  %v4177_v4 = vmul.f32 %v4621_v56, %v4143_v24  ;;  %v4625_v36 = vld [vmem:[%s4706_s17 + $0x18] sm:$0xff]  ;;  %v4626_v24 = vld [vmem:[%s4706_s17 + $0x20] sm:$0xff] }
 0x6f3   : > { %v4178_v61 = vmul.f32 %v4621_v56, %v4144_v17  ;;  %v4179_v52 = vmul.f32 %v4621_v56, %v4145_v18  ;;  %v4180_v10 = vmul.f32 %v4621_v56, %v4146_v13  ;;  %v4181_v50 = vmul.f32 %v4621_v56, %v4147_v15  ;;  %v4628_v13 = vld [vmem:[%s4706_s17 + $0x30] sm:$0xff] }
 0x6f4   : > { %v4182_v41 = vmul.f32 %v4621_v56, %v4148_v37  ;;  %v4183_v9 = vmul.f32 %v4621_v56, %v4149_v35  ;;  %v4184_v12 = vmul.f32 %v4621_v56, %v4150_v25  ;;  %v4185_v51 = vmul.f32 %v4621_v56, %v4151_v3  ;;  %v4629_v37 = vld [vmem:[%s4706_s17 + $0x38] sm:$0xff]  ;;  %v4630_v25 = vld [vmem:[%s4706_s17 + $0x40] sm:$0xff] }
 0x6f5   : > { %v8650_v63 = vmul.f32 %v4621_v56, %v4152_v42  ;;  %v8652_v11 = vmul.f32 %v4621_v56, %v4153_v49  ;;  %v8654_v1 = vmul.f32 %v4621_v56, %v4154_v14  ;;  %v8656_v29 = vmul.f32 %v4621_v56, %v4155_v60  ;;  %v4631_v42 = vld [vmem:[%s4706_s17 + $0x48] sm:$0xff]  ;;  %v4632_v14 = vld [vmem:[%s4706_s17 + $0x50] sm:$0xff] }
 0x6f6   : > { %v8658_v40 = vmul.f32 %v4621_v56, %v4156_v33  ;;  %v8660_v5 = vmul.f32 %v4621_v56, %v4157_v30  ;;  %v8662_v44 = vmul.f32 %v4621_v56, %v4158_v20  ;;  %v8664_v46 = vmul.f32 %v4621_v56, %v4159_v28  ;;  %v4633_v33 = vld [vmem:[%s4706_s17 + $0x58] sm:$0xff]  ;;  %v4634_v20 = vld [vmem:[%s4706_s17 + $0x60] sm:$0xff] }
 0x6f7   : > { %v8673_v22 = vmul.f32 %v4621_v56, %v4160_v59  ;;  %v8675_v26 = vmul.f32 %v4621_v56, %v4161_v62  ;;  %v8677_v58 = vmul.f32 %v4621_v56, %v4162_v43  ;;  %v8679_v21 = vmul.f32 %v4621_v56, %v4163_v2  ;;  %v4635_v59 = vld [vmem:[%s4706_s17 + $0x68] sm:$0xff]  ;;  %v4636_v43 = vld [vmem:[%s4706_s17 + $0x70] sm:$0xff] }
 0x6f8   : > { %v4198_v34 = vadd.f32 %v4622_v38, %v4166_v53  ;;  %v4199_v23 = vadd.f32 %v4623_v8, %v4167_v31  ;;  %v4200_v32 = vadd.f32 %v4624_v7, %v4168_v48  ;;  %v4201_v57 = vadd.f32 %v4625_v36, %v4169_v47  ;;  %v4638_v53 = vld [vmem:[%s4706_s17 + $0x80] sm:$0xff]  ;;  %v4639_v48 = vld [vmem:[%s4706_s17 + $0x88] sm:$0xff]  ;;  %v4652_v38 = vld [vmem:[%s4706_s17 + $0xf0] sm:$0xff] }
 0x6f9   : > { %v4202_v17 = vadd.f32 %v4626_v24, %v4170_v45  ;;  %v4203_v18 = vadd.f32 %v4627_v54, %v4171_v39  ;;  %v4204_v15 = vadd.f32 %v4628_v13, %v4172_v27  ;;  %v4205_v35 = vadd.f32 %v4629_v37, %v4173_v16  ;;  %v4640_v45 = vld [vmem:[%s4706_s17 + $0x90] sm:$0xff]  ;;  %v4641_v27 = vld [vmem:[%s4706_s17 + $0x98] sm:$0xff] }
 0x6fa   : > { %v4206_v3 = vadd.f32 %v4630_v25, %v4174_v55  ;;  %v4207_v49 = vadd.f32 %v4631_v42, %v4175_v0  ;;  %v4208_v60 = vadd.f32 %v4632_v14, %v4176_v6  ;;  %v4209_v30 = vadd.f32 %v4633_v33, %v4177_v4  ;;  %4230 = vst.msk [vmem:[%s8671_s21] sm:$0xff] %vm1364_vm4, %v4198_v34  ;;  %v4642_v55 = vld [vmem:[%s4706_s17 + $0xa0] sm:$0xff]  ;;  %v4643_v6 = vld [vmem:[%s4706_s17 + $0xa8] sm:$0xff]  ;;  %v4653_v8 = vld [vmem:[%s4706_s17 + $0xf8] sm:$0xff] }
 0x6fb   : > { %4231 = vst.msk [vmem:[%s8671_s21 + $0x8] sm:$0xff] %vm1364_vm4, %v4199_v23  ;;  %4232 = vst.msk [vmem:[%s8671_s21 + $0x10] sm:$0xff] %vm1364_vm4, %v4200_v32  ;;  %v4210_v28 = vadd.f32 %v4634_v20, %v4178_v61  ;;  %v4211_v62 = vadd.f32 %v4635_v59, %v4179_v52  ;;  %v4212_v2 = vadd.f32 %v4636_v43, %v4180_v10  ;;  %v4644_v61 = vld [vmem:[%s4706_s17 + $0xb0] sm:$0xff]  ;;  %v4645_v10 = vld [vmem:[%s4706_s17 + $0xb8] sm:$0xff] }
 0x6fc   : > { %4233 = vst.msk [vmem:[%s8671_s21 + $0x18] sm:$0xff] %vm1364_vm4, %v4201_v57  ;;  %v4213_v56 = vadd.f32 %v4637_v19, %v4181_v50  ;;  %4234 = vst.msk [vmem:[%s8671_s21 + $0x20] sm:$0xff] %vm1364_vm4, %v4202_v17  ;;  %v4214_v31 = vadd.f32 %v4638_v53, %v4182_v41  ;;  %v4215_v47 = vadd.f32 %v4639_v48, %v4183_v9  ;;  %v4646_v41 = vld [vmem:[%s4706_s17 + $0xc0] sm:$0xff] }
 0x6fd   : > { %4235 = vst.msk [vmem:[%s8671_s21 + $0x28] sm:$0xff] %vm1364_vm4, %v4203_v18  ;;  %4236 = vst.msk [vmem:[%s8671_s21 + $0x30] sm:$0xff] %vm1364_vm4, %v4204_v15  ;;  %v4216_v39 = vadd.f32 %v4640_v45, %v4184_v12  ;;  %v4217_v16 = vadd.f32 %v4641_v27, %v4185_v51  ;;  %v4218_v0 = vadd.f32 %v4642_v55, %v8650_v63  ;;  %v4647_v12 = vld [vmem:[%s4706_s17 + $0xc8] sm:$0xff]  ;;  %v4648_v63 = vld [vmem:[%s4706_s17 + $0xd0] sm:$0xff] }
 0x6fe   : > { %4237 = vst.msk [vmem:[%s8671_s21 + $0x38] sm:$0xff] %vm1364_vm4, %v4205_v35  ;;  %4238 = vst.msk [vmem:[%s8671_s21 + $0x40] sm:$0xff] %vm1364_vm4, %v4206_v3  ;;  %v4219_v4 = vadd.f32 %v4643_v6, %v8652_v11  ;;  %v4220_v52 = vadd.f32 %v4644_v61, %v8654_v1  ;;  %v4221_v50 = vadd.f32 %v4645_v10, %v8656_v29  ;;  %v4649_v1 = vld [vmem:[%s4706_s17 + $0xd8] sm:$0xff] }
 0x6ff   : > { %4239 = vst.msk [vmem:[%s8671_s21 + $0x48] sm:$0xff] %vm1364_vm4, %v4207_v49  ;;  %4240 = vst.msk [vmem:[%s8671_s21 + $0x50] sm:$0xff] %vm1364_vm4, %v4208_v60  ;;  %v4222_v9 = vadd.f32 %v4646_v41, %v8658_v40  ;;  %v4223_v51 = vadd.f32 %v4647_v12, %v8660_v5  ;;  %v4224_v11 = vadd.f32 %v4648_v63, %v8662_v44  ;;  %v4650_v40 = vld [vmem:[%s4706_s17 + $0xe0] sm:$0xff]  ;;  %v4651_v44 = vld [vmem:[%s4706_s17 + $0xe8] sm:$0xff] }
 0x700   : > { %4241 = vst.msk [vmem:[%s8671_s21 + $0x58] sm:$0xff] %vm1364_vm4, %v4209_v30  ;;  %4242 = vst.msk [vmem:[%s8671_s21 + $0x60] sm:$0xff] %vm1364_vm4, %v4210_v28  ;;  %v4225_v29 = vadd.f32 %v4649_v1, %v8664_v46  ;;  %v4226_v5 = vadd.f32 %v4650_v40, %v8673_v22  ;;  %v4227_v46 = vadd.f32 %v4651_v44, %v8675_v26 }
 0x701   : > { %4243 = vst.msk [vmem:[%s8671_s21 + $0x68] sm:$0xff] %vm1364_vm4, %v4211_v62  ;;  %4244 = vst.msk [vmem:[%s8671_s21 + $0x70] sm:$0xff] %vm1364_vm4, %v4212_v2  ;;  %v4228_v34 = vadd.f32 %v4652_v38, %v8677_v58  ;;  %v4229_v23 = vadd.f32 %v4653_v8, %v8679_v21 }
 0x702   : > { %4245 = vst.msk [vmem:[%s8671_s21 + $0x78] sm:$0xff] %vm1364_vm4, %v4213_v56  ;;  %4246 = vst.msk [vmem:[%s8671_s21 + $0x80] sm:$0xff] %vm1364_vm4, %v4214_v31 }
 0x703   : > { %4247 = vst.msk [vmem:[%s8671_s21 + $0x88] sm:$0xff] %vm1364_vm4, %v4215_v47  ;;  %4248 = vst.msk [vmem:[%s8671_s21 + $0x90] sm:$0xff] %vm1364_vm4, %v4216_v39 }
 0x704   : > { %4249 = vst.msk [vmem:[%s8671_s21 + $0x98] sm:$0xff] %vm1364_vm4, %v4217_v16  ;;  %4250 = vst.msk [vmem:[%s8671_s21 + $0xa0] sm:$0xff] %vm1364_vm4, %v4218_v0 }
 0x705   : > { %4251 = vst.msk [vmem:[%s8671_s21 + $0xa8] sm:$0xff] %vm1364_vm4, %v4219_v4  ;;  %4252 = vst.msk [vmem:[%s8671_s21 + $0xb0] sm:$0xff] %vm1364_vm4, %v4220_v52 }
 0x706   : > { %4253 = vst.msk [vmem:[%s8671_s21 + $0xb8] sm:$0xff] %vm1364_vm4, %v4221_v50  ;;  %4254 = vst.msk [vmem:[%s8671_s21 + $0xc0] sm:$0xff] %vm1364_vm4, %v4222_v9 }
 0x707   : > { %4255 = vst.msk [vmem:[%s8671_s21 + $0xc8] sm:$0xff] %vm1364_vm4, %v4223_v51  ;;  %4256 = vst.msk [vmem:[%s8671_s21 + $0xd0] sm:$0xff] %vm1364_vm4, %v4224_v11 }
 0x708   : > { %4257 = vst.msk [vmem:[%s8671_s21 + $0xd8] sm:$0xff] %vm1364_vm4, %v4225_v29  ;;  %4258 = vst.msk [vmem:[%s8671_s21 + $0xe0] sm:$0xff] %vm1364_vm4, %v4226_v5 }
 0x709   : > { %4259 = vst.msk [vmem:[%s8671_s21 + $0xe8] sm:$0xff] %vm1364_vm4, %v4227_v46  ;;  %4260 = vst.msk [vmem:[%s8671_s21 + $0xf0] sm:$0xff] %vm1364_vm4, %v4228_v34 }
 0x70a   : > { %4261 = vst.msk [vmem:[%s8671_s21 + $0xf8] sm:$0xff] %vm1364_vm4, %v4229_v23 }
 0x70b PF: > { %s13_s12 = sadd.s32 1, %s4660_s12  }
 0x70c   : > { %p10_p4 = scmp.ge.s32.totalorder %s13_s12, 4  }
 0x70e   :  { %12 = sbr.rel (!%p10_p4) target bundleno = 1 (0x1), region = 62 }

</bundles_post_ra>
